<compile_context>
chip_gen: v5e
topology: v5e:2x2
jax: 0.10.0
libtpu: 0.0.40
codegen_flags: <defaults>
</compile_context>

<pallas_src>
import jax
import jax.numpy as jnp
from jax import lax
from jax.experimental import pallas as pl
from jax.experimental.pallas import tpu as pltpu

_LANE = 128
_SUB = 8
_TINY_ELEMS = 32 * 1024          # below ~128 KiB per input: plain XLA wins
_MAX_WIDTH = 16 * 1024           # cap on the lane (column) width of the view
_MAX_ROWS_PER_BLOCK = 2048       # keeps per-block accumulation chains short


def _plain_loss(csi_est, csi_label):
    """Tiny-input fast path / fallback (exact same math, fused by XLA)."""
    d = (csi_est - csi_label).astype(jnp.float32)
    return jnp.mean(jnp.sum(d * d, axis=-1))


def _default_num_parallel():
    """2 partial sums only on 2-TensorCore chips (v7x); 1 on v5e/v6e."""
    try:
        kind = jax.devices()[0].device_kind.lower()
    except Exception:
        return 1
    return 2 if ("v7" in kind or "7x" in kind) else 1


def _choose_width(total):
    """Pick C | total so the free reshape to (total // C, C) is lane-dense.

    Prefers the largest multiple-of-128 divisor <= _MAX_WIDTH; otherwise the
    largest divisor in [256, _MAX_WIDTH] (costs a little VMEM lane padding but
    never an HBM copy). Returns None if no usable divisor exists.
    """
    best = None
    c = _LANE
    while c <= min(_MAX_WIDTH, total):
        if total % c == 0:
            best = c
        c += _LANE
    if best is not None:
        return best
    i = 1
    while i * i <= total:
        if total % i == 0:
            for cand in (i, total // i):
                if 256 <= cand <= _MAX_WIDTH and (best is None or cand > best):
                    best = cand
        i += 1
    return best


def complex_mse_loss(csi_est, csi_label, *, block_bytes=4 * 1024 * 1024,
                     num_parallel=None, min_pallas_elems=_TINY_ELEMS):
    """csi_est, csi_label: (B, M, 2) float arrays. Returns scalar float32 loss."""
    assert csi_est.shape == csi_label.shape
    B, M, ch = csi_est.shape
    assert ch == 2

    if csi_est.dtype != jnp.float32:
        csi_est = csi_est.astype(jnp.float32)
    if csi_label.dtype != jnp.float32:
        csi_label = csi_label.astype(jnp.float32)

    total = B * M * 2

    # Tiny-input fast path (review item): dispatch overhead dominates here.
    if total < min_pallas_elems:
        return _plain_loss(csi_est, csi_label)

    C = _choose_width(total)
    if C is None:
        # Pathological factorization (e.g. 2 * large prime): XLA's own fused
        # reduction is near-roofline for this; no point forcing a bad layout.
        return _plain_loss(csi_est, csi_label)
    R = total // C

    # Row-block size: ~block_bytes per input per buffer, a multiple of 8 rows
    # (or the full extent when R is small). Capped so the per-block per-column
    # accumulation chain stays far below the per-block DMA time even on v7x.
    bytes_per_row = C * 4
    rows_per_block = max(_SUB, (block_bytes // bytes_per_row) // _SUB * _SUB)
    rows_per_block = min(rows_per_block, _MAX_ROWS_PER_BLOCK)
    if rows_per_block >= R:
        rows_per_block = R
    n_blocks = -(-R // rows_per_block)

    P = _default_num_parallel() if num_parallel is None else int(num_parallel)
    P = max(1, min(P, n_blocks))
    steps_per_p = -(-n_blocks // P)

    needs_block_guard = P * steps_per_p > n_blocks      # static
    needs_row_mask = (R % rows_per_block) != 0          # static
    inv_bm = 1.0 / float(B * M)

    # Free reshapes (contiguous, row-major): no HBM copy, no padding.
    est2d = csi_est.reshape(R, C)
    lab2d = csi_label.reshape(R, C)

    def kernel(est_ref, lab_ref, out_ref, acc_ref):
        p = pl.program_id(0)      # parallel shard (megacore on v7x)
        g = pl.program_id(1)      # reduction step (innermost grid axis)

        @pl.when(g == 0)
        def _init():
            acc_ref[...] = jnp.zeros_like(acc_ref)

        blk = p * steps_per_p + g

        def _accumulate():
            d = est_ref[...] - lab_ref[...]
            sq = d * d
            if needs_row_mask:
                # Mask garbage rows of the (possibly partial) boundary block.
                row = blk * rows_per_block + lax.broadcasted_iota(
                    jnp.int32, (rows_per_block, 1), 0)
                sq = jnp.where(row < R, sq, 0.0)
            # Sublane-axis reduce: C/128 independent per-lane-column chains.
            acc_ref[...] += jnp.sum(sq, axis=0, keepdims=True)

        if needs_block_guard:
            # Duplicate (clamped) blocks contribute nothing.
            pl.when(blk < n_blocks)(_accumulate)
        else:
            _accumulate()

        @pl.when(g == steps_per_p - 1)
        def _finalize():
            # Cross-lane reduce (XLU, off the DMA path) + mean scale in-kernel.
            val = jnp.sum(acc_ref[...]) * inv_bm
            out_ref[...] = jnp.full(out_ref.shape, val, dtype=out_ref.dtype)

    def in_index_map(p, g):
        blk = p * steps_per_p + g
        if needs_block_guard:
            blk = jnp.minimum(blk, n_blocks - 1)   # never issue a fully-OOB DMA
        return (blk, 0)

    in_spec = pl.BlockSpec((rows_per_block, C), in_index_map)
    out_spec = pl.BlockSpec((1, _SUB, _LANE), lambda p, g: (p, 0, 0))

    partials = pl.pallas_call(
        kernel,
        out_shape=jax.ShapeDtypeStruct((P, _SUB, _LANE), jnp.float32),
        grid_spec=pltpu.PrefetchScalarGridSpec(
            num_scalar_prefetch=0,
            grid=(P, steps_per_p),
            in_specs=[in_spec, in_spec],
            out_specs=out_spec,
            scratch_shapes=[pltpu.VMEM((1, C), jnp.float32)],
        ),
        compiler_params=pltpu.CompilerParams(
            dimension_semantics=("parallel", "arbitrary"),
            vmem_limit_bytes=32 * 1024 * 1024,
        ),
        cost_estimate=pl.CostEstimate(
            flops=3 * total,
            transcendentals=0,
            bytes_accessed=2 * total * 4 + P * _SUB * _LANE * 4,
        ),
    )(est2d, lab2d)

    # Tiny glue: add the P per-shard scalars (each already scaled by 1/(B*M)).
    return jnp.sum(partials[:, 0, 0])


if __name__ == "__main__":
    import numpy as np

    def ref_loss_np(est, lab):
        est = np.asarray(est, dtype=np.float64)
        lab = np.asarray(lab, dtype=np.float64)
        diff = est - lab
        mag = np.sqrt(np.square(diff[..., 0]) + np.square(diff[..., 1]))
        return np.mean(np.square(mag))

    def make(k, b, m):
        k1, k2 = jax.random.split(k)
        est = jax.random.normal(k1, (b, m, 2), dtype=jnp.float32)
        lab = jax.random.normal(k2, (b, m, 2), dtype=jnp.float32)
        return est, lab

    cases = [
        # (B, M, kwargs) — exercising: tiny fast path, aligned single-block
        # Pallas path, ragged rows + masking + duplicate-block guard with P=2,
        # non-multiple-of-128 column width, and multi-step aligned accumulation.
        (4, 256, {}),                                                # fast path
        (3, 500, {}),                                                # fast path, ragged
        (64, 2048, {}),                                              # pallas, 1 block
        (160, 1024, dict(block_bytes=128 * 1024, num_parallel=2)),   # mask + dup guard
        (88, 875, dict(block_bytes=128 * 1024, num_parallel=1)),     # C=15400 + mask
        (256, 2048, dict(block_bytes=512 * 1024)),                   # multi-step aligned
    ]

    key = jax.random.PRNGKey(0)
    keys = jax.random.split(key, len(cases))
    for (b, m, kw), k in zip(cases, keys):
        est, lab = make(k, b, m)
        got = jax.block_until_ready(complex_mse_loss(est, lab, **kw))
        want = ref_loss_np(est, lab)
        assert np.allclose(np.float64(got), want, rtol=1e-4, atol=1e-6), (
            (b, m, kw), float(got), float(want))

    print("KERNEL_OK")
</pallas_src>

<mosaic_0001>
module attributes {stable_mosaic.version = 11 : i64} {
  func.func @kernel(%arg0: i32, %arg1: i32, %arg2: memref<16x16384xf32, #tpu.memory_space<vmem>>, %arg3: memref<16x16384xf32, #tpu.memory_space<vmem>>, %arg4: memref<1x8x128xf32, #tpu.memory_space<vmem>>, %arg5: memref<1x16384xf32, #tpu.memory_space<vmem>>) attributes {dimension_semantics = [#tpu.dimension_semantics<parallel>, #tpu.dimension_semantics<arbitrary>], iteration_bounds = array<i64: 1, 1>, scalar_prefetch = 0 : i64, scratch_operands = 1 : i64, tpu.core_type = #tpu.core_type<tc>, window_params = [{transform_indices = @transform_0, window_bounds = array<i64: 16, 16384>}, {transform_indices = @transform_1, window_bounds = array<i64: 16, 16384>}, {transform_indices = @transform_2, window_bounds = array<i64: 1, 8, 128>}]} {
    %c0_i32 = arith.constant 0 : i32
    %0 = arith.cmpi eq, %arg1, %c0_i32 : i32
    %1 = arith.extui %0 : i1 to i32
    %c0_i32_0 = arith.constant 0 : i32
    %2 = arith.cmpi ne, %1, %c0_i32_0 : i32
    scf.if %2 {
      %cst_10 = arith.constant 0.000000e+00 : f32
      %15 = vector.broadcast %cst_10 : f32 to vector<1x16384xf32>
      %c0_11 = arith.constant 0 : index
      %c0_12 = arith.constant 0 : index
      %16 = vector.load %arg5[%c0_11, %c0_12] : memref<1x16384xf32, #tpu.memory_space<vmem>>, vector<1x16384xf32>
      tpu.vector_store %arg5[%c0_11, %c0_12], %15 {strides = array<i32>} : memref<1x16384xf32, #tpu.memory_space<vmem>>, vector<1x16384xf32>,
    } else {
    }
    %c0 = arith.constant 0 : index
    %c0_1 = arith.constant 0 : index
    %3 = vector.load %arg2[%c0, %c0_1] : memref<16x16384xf32, #tpu.memory_space<vmem>>, vector<16x16384xf32>
    %c0_2 = arith.constant 0 : index
    %c0_3 = arith.constant 0 : index
    %4 = vector.load %arg3[%c0_2, %c0_3] : memref<16x16384xf32, #tpu.memory_space<vmem>>, vector<16x16384xf32>
    %5 = arith.subf %3, %4 : vector<16x16384xf32>
    %6 = arith.mulf %5, %5 : vector<16x16384xf32>
    %c0_4 = arith.constant 0 : index
    %c0_5 = arith.constant 0 : index
    %7 = vector.load %arg5[%c0_4, %c0_5] : memref<1x16384xf32, #tpu.memory_space<vmem>>, vector<1x16384xf32>
    %cst = arith.constant dense<0.000000e+00> : vector<16384xf32>
    %8 = vector.multi_reduction <add>, %6, %cst [0] : vector<16x16384xf32> to vector<16384xf32>
    %9 = vector.shape_cast %8 : vector<16384xf32> to vector<1x16384xf32>
    %10 = arith.addf %7, %9 : vector<1x16384xf32>
    %c0_6 = arith.constant 0 : index
    %c0_7 = arith.constant 0 : index
    %11 = vector.load %arg5[%c0_6, %c0_7] : memref<1x16384xf32, #tpu.memory_space<vmem>>, vector<1x16384xf32>
    tpu.vector_store %arg5[%c0_6, %c0_7], %10 {strides = array<i32>} : memref<1x16384xf32, #tpu.memory_space<vmem>>, vector<1x16384xf32>,
    %c0_i32_8 = arith.constant 0 : i32
    %12 = arith.cmpi eq, %arg1, %c0_i32_8 : i32
    %13 = arith.extui %12 : i1 to i32
    %c0_i32_9 = arith.constant 0 : i32
    %14 = arith.cmpi ne, %13, %c0_i32_9 : i32
    scf.if %14 {
      %c0_10 = arith.constant 0 : index
      %c0_11 = arith.constant 0 : index
      %15 = vector.load %arg5[%c0_10, %c0_11] : memref<1x16384xf32, #tpu.memory_space<vmem>>, vector<1x16384xf32>
      %16 = vector.shape_cast %15 : vector<1x16384xf32> to vector<1x1x16384xf32>
      %cst_12 = arith.constant dense<0.000000e+00> : vector<1xf32>
      %17 = vector.multi_reduction <add>, %16, %cst_12 [1, 2] : vector<1x1x16384xf32> to vector<1xf32>
      %18 = vector.shape_cast %17 : vector<1xf32> to vector<1x1x1xf32>
      %19 = vector.extract %18[0, 0, 0] : f32 from vector<1x1x1xf32>
      %cst_13 = arith.constant 7.62939453E-6 : f32
      %20 = arith.mulf %19, %cst_13 : f32
      %21 = vector.broadcast %20 : f32 to vector<1x8x128xf32>
      %c0_14 = arith.constant 0 : index
      %c0_15 = arith.constant 0 : index
      %c0_16 = arith.constant 0 : index
      %22 = vector.load %arg4[%c0_14, %c0_15, %c0_16] : memref<1x8x128xf32, #tpu.memory_space<vmem>>, vector<1x8x128xf32>
      tpu.vector_store %arg4[%c0_14, %c0_15, %c0_16], %21 {strides = array<i32>} : memref<1x8x128xf32, #tpu.memory_space<vmem>>, vector<1x8x128xf32>,
    } else {
    }
    return
  }
  func.func @transform_0(%arg0: i32, %arg1: i32) -> (i32, i32) {
    %c1_i32 = arith.constant 1 : i32
    %0 = arith.muli %arg0, %c1_i32 : i32
    %1 = arith.addi %0, %arg1 : i32
    %c0_i32 = arith.constant 0 : i32
    %c0_i32_0 = arith.constant 0 : i32
    return %1, %c0_i32 : i32, i32
  }
  func.func @transform_1(%arg0: i32, %arg1: i32) -> (i32, i32) {
    %c1_i32 = arith.constant 1 : i32
    %0 = arith.muli %arg0, %c1_i32 : i32
    %1 = arith.addi %0, %arg1 : i32
    %c0_i32 = arith.constant 0 : i32
    %c0_i32_0 = arith.constant 0 : i32
    return %1, %c0_i32 : i32, i32
  }
  func.func @transform_2(%arg0: i32, %arg1: i32) -> (i32, i32, i32) {
    %c0_i32 = arith.constant 0 : i32
    %c0_i32_0 = arith.constant 0 : i32
    %c0_i32_1 = arith.constant 0 : i32
    return %arg0, %c0_i32, %c0_i32_0 : i32, i32, i32
  }
}

</mosaic_0001>

<bundles_post_ra>
// kernel: tpu_custom_call.1
= control target key start
LH: loop header
LB: loop body
LE: loop exit
PB: predicated region body
PF: predicated region fallthrough
CT: control target
= control target key end

     0   :  { %7 = vsyncpa [#allocation4], 0  ;;  %s6931_s0 = inlined_call_operand.hbm [shape: f32[16,16384], index: 0, kind: input, shape index: {}]   ;;  %s6932_s1 = inlined_call_operand.hbm [shape: f32[16,16384], index: 1, kind: input, shape index: {}]   ;;  %s6933_s2 = inlined_call_operand.hbm [shape: f32[1,8,128], index: 2, kind: output, shape index: {}]  }
   0x1   :  { %8 = vsyncpa [#allocation7], 0 }
   0x2   :  { %9 = vsyncpa [#allocation5], 0  ;;  %s19_s11 = sshll.u32 %s6931_s0, 4  ;;  %s3082_s12 = smov [#allocation3]   ;;  %s20_s11 = int_to_ptr.hbm [resolvable:$true] %s19_s11 }
   0x3   :  { %s21_s13 = sshll.u32 %s3082_s12, 4  ;;  %s37_s16 = sshll.u32 %s6932_s1, 4  ;;  %s22_s13 = int_to_ptr.vmem [resolvable:$true] %s21_s13  ;;  %s38_s16 = int_to_ptr.hbm [resolvable:$true] %s37_s16 }
   0x4   :  { %s3083_s17 = smov 16384   ;;  %s3084_s18 = smov 1024  }
   0x5   :  { %27 = dma.hbm_to_vmem [thread:$0]  %s20_s11, 32768, %s22_s13, [#allocation4], %s3083_s17, %s3083_s17, %s3084_s18  }
   0x6   :  { %s3085_s19 = smov [#allocation6]  }
   0x7   :  { %s39_s20 = sshll.u32 %s3085_s19, 4  ;;  %s40_s20 = int_to_ptr.vmem [resolvable:$true] %s39_s20 }
   0x8   :  { %45 = dma.hbm_to_vmem [thread:$0]  %s38_s16, 32768, %s40_s20, [#allocation7], %s3083_s17, %s3083_s17, %s3084_s18  }
   0x9   :  { %3076 = dma.done.wait [#allocation4], 32768  }
   0xa   :  { %3077 = vsyncadd [#allocation4], 4294934528 }
   0xb   :  { %3078 = dma.done.wait [#allocation7], 32768  }
   0xc   :  { %3079 = vsyncadd [#allocation7], 4294934528  ;;  %v79_v0 = vld [vmem:[#allocation3 + $0x8] sm:$0xff]  ;;  %v80_v1 = vld [vmem:[#allocation3 + $0x10] sm:$0xff]  ;;  %vm2254_vm0 = vcmask 1040384   ;;  %vm2256_vm1 = vcmask 1042434  }
   0xd   :  { %v81_v2 = vld [vmem:[#allocation3 + $0x18] sm:$0xff]  ;;  %v82_v3 = vld [vmem:[#allocation3 + $0x20] sm:$0xff]  ;;  %v83_v4 = vld [vmem:[#allocation3 + $0x28] sm:$0xff]  ;;  %vm2258_vm2 = vcmask 1041408   ;;  %vm2260_vm3 = vcmask 1044484   ;;  %vm2262_vm4 = vcmask 1046534  }
   0xe   :  { %v84_v5 = vld [vmem:[#allocation3 + $0x30] sm:$0xff]  ;;  %v85_v6 = vld [vmem:[#allocation3 + $0x38] sm:$0xff]  ;;  %v335_v7 = vld [vmem:[#allocation6 + $0x8] sm:$0xff]  ;;  %vm2264_vm5 = vcmask 1045508   ;;  %vm2266_vm6 = vcmask 1043456   ;;  %s3086_s0 = smov [#allocation8]  }
   0xf   :  { %v336_v8 = vld [vmem:[#allocation6 + $0x10] sm:$0xff]  ;;  %v78_v9 = vld [vmem:[#allocation3] sm:$0xff]  ;;  %v87_v10 = vld [vmem:[#allocation3 + $0x48] sm:$0xff]  ;;  %v591_v30 = vsub.f32 %v79_v0, %v335_v7  ;;  %s2984_s1 = sshll.u32 %s3086_s0, 4  ;;  %s2986_s23 = sshll.u32 %s6933_s2, 4  ;;  %s2985_s1 = int_to_ptr.vmem [resolvable:$true] %s2984_s1  ;;  %s2987_s23 = int_to_ptr.hbm [resolvable:$true] %s2986_s23 }
  0x10   :  { %v88_v11 = vld [vmem:[#allocation3 + $0x50] sm:$0xff]  ;;  %v89_v12 = vld [vmem:[#allocation3 + $0x58] sm:$0xff]  ;;  %v334_v13 = vld [vmem:[#allocation6] sm:$0xff]  ;;  %v592_v31 = vsub.f32 %v80_v1, %v336_v8 }
  0x11   :  { %v337_v14 = vld [vmem:[#allocation6 + $0x18] sm:$0xff]  ;;  %v338_v15 = vld [vmem:[#allocation6 + $0x20] sm:$0xff]  ;;  %v339_v16 = vld [vmem:[#allocation6 + $0x28] sm:$0xff]  ;;  %v590_v39 = vsub.f32 %v78_v9, %v334_v13  ;;  %v3116_v61 = vmul.f32 %v591_v30, %v591_v30 }
  0x12   :  { %v90_v17 = vld [vmem:[#allocation3 + $0x60] sm:$0xff]  ;;  %v91_v18 = vld [vmem:[#allocation3 + $0x68] sm:$0xff]  ;;  %v92_v19 = vld [vmem:[#allocation3 + $0x70] sm:$0xff]  ;;  %v593_v32 = vsub.f32 %v81_v2, %v337_v14  ;;  %v594_v35 = vsub.f32 %v82_v3, %v338_v15  ;;  %v595_v36 = vsub.f32 %v83_v4, %v339_v16  ;;  %v3118_v62 = vmul.f32 %v592_v31, %v592_v31 }
  0x13   :  { %v93_v20 = vld [vmem:[#allocation3 + $0x78] sm:$0xff]  ;;  %v340_v21 = vld [vmem:[#allocation6 + $0x30] sm:$0xff]  ;;  %v343_v23 = vld [vmem:[#allocation6 + $0x48] sm:$0xff]  ;;  %7024 = vst [vmem:[#allocation12_spill] sm:$0xff] %v3116_v61 }
  0x14   :  { %v341_v22 = vld [vmem:[#allocation6 + $0x38] sm:$0xff]  ;;  %v344_v24 = vld [vmem:[#allocation6 + $0x50] sm:$0xff]  ;;  %v346_v26 = vld [vmem:[#allocation6 + $0x60] sm:$0xff]  ;;  %v596_v37 = vsub.f32 %v84_v5, %v340_v21  ;;  %v599_v40 = vsub.f32 %v87_v10, %v343_v23  ;;  %7025 = vst [vmem:[#allocation13_spill] sm:$0xff] %v3118_v62  ;;  %v3120_v63 = vmul.f32 %v593_v32, %v593_v32  ;;  %v3130_v8 = vmul.f32 %v594_v35, %v594_v35 }
  0x15   :  { %v345_v25 = vld [vmem:[#allocation6 + $0x58] sm:$0xff]  ;;  %v347_v27 = vld [vmem:[#allocation6 + $0x68] sm:$0xff]  ;;  %v348_v28 = vld [vmem:[#allocation6 + $0x70] sm:$0xff]  ;;  %v597_v38 = vsub.f32 %v85_v6, %v341_v22  ;;  %v600_v41 = vsub.f32 %v88_v11, %v344_v24  ;;  %v602_v49 = vsub.f32 %v90_v17, %v346_v26  ;;  %v3132_v9 = vmul.f32 %v595_v36, %v595_v36 }
  0x16   :  { %v349_v29 = vld [vmem:[#allocation6 + $0x78] sm:$0xff]  ;;  %v86_v33 = vld [vmem:[#allocation3 + $0x40] sm:$0xff]  ;;  %v601_v42 = vsub.f32 %v89_v12, %v345_v25  ;;  %v95_v43 = vld [vmem:[#allocation3 + $0x88] sm:$0xff]  ;;  %v603_v50 = vsub.f32 %v91_v18, %v347_v27  ;;  %v604_v51 = vsub.f32 %v92_v19, %v348_v28  ;;  %7026 = vst [vmem:[#allocation14_spill] sm:$0xff] %v3120_v63  ;;  %v3134_v10 = vmul.f32 %v596_v37, %v596_v37 }
  0x17   :  { %v342_v34 = vld [vmem:[#allocation6 + $0x40] sm:$0xff]  ;;  %v96_v44 = vld [vmem:[#allocation3 + $0x90] sm:$0xff]  ;;  %v97_v45 = vld [vmem:[#allocation3 + $0x98] sm:$0xff]  ;;  %v605_v52 = vsub.f32 %v93_v20, %v349_v29  ;;  %7027 = vst [vmem:[#allocation15_spill] sm:$0xff] %v3130_v8  ;;  %v3136_v11 = vmul.f32 %v597_v38, %v597_v38  ;;  %v3138_v19 = vmul.f32 %v590_v39, %v590_v39  ;;  %v3140_v20 = vmul.f32 %v599_v40, %v599_v40 }
  0x18   :  { %v351_v46 = vld [vmem:[#allocation6 + $0x88] sm:$0xff]  ;;  %v352_v47 = vld [vmem:[#allocation6 + $0x90] sm:$0xff]  ;;  %v353_v48 = vld [vmem:[#allocation6 + $0x98] sm:$0xff]  ;;  %v598_v60 = vsub.f32 %v86_v33, %v342_v34  ;;  %7028 = vst [vmem:[#allocation16_spill] sm:$0xff] %v3132_v9  ;;  %v3142_v21 = vmul.f32 %v600_v41, %v600_v41  ;;  %v3144_v22 = vmul.f32 %v601_v42, %v601_v42  ;;  %v3146_v30 = vmul.f32 %v602_v49, %v602_v49 }
  0x19   :  { %v3108_v53 = vld [vmem:[#allocation3 + $0xa0] sm:$0xff]  ;;  %v3110_v54 = vld [vmem:[#allocation3 + $0xa8] sm:$0xff]  ;;  %v3112_v55 = vld [vmem:[#allocation3 + $0xb0] sm:$0xff]  ;;  %7029 = vst [vmem:[#allocation17_spill] sm:$0xff] %v3134_v10  ;;  %v3148_v31 = vmul.f32 %v603_v50, %v603_v50  ;;  %v3150_v32 = vmul.f32 %v604_v51, %v604_v51  ;;  %v3152_v33 = vmul.f32 %v605_v52, %v605_v52  ;;  %v3162_v41 = vsub.f32 %v95_v43, %v351_v46 }
  0x1a   :  { %v3114_v56 = vld [vmem:[#allocation3 + $0xb8] sm:$0xff]  ;;  %v354_v57 = vld [vmem:[#allocation6 + $0xa0] sm:$0xff]  ;;  %v355_v58 = vld [vmem:[#allocation6 + $0xa8] sm:$0xff]  ;;  %7030 = vst [vmem:[#allocation18_spill] sm:$0xff] %v3136_v11  ;;  %v3164_v42 = vsub.f32 %v96_v44, %v352_v47  ;;  %v3166_v49 = vsub.f32 %v97_v45, %v353_v48  ;;  %v3168_v50 = vmul.f32 %v598_v60, %v598_v60 }
  0x1b   :  { %v356_v59 = vld [vmem:[#allocation6 + $0xb0] sm:$0xff]  ;;  %v3122_v0 = vld [vmem:[#allocation3 + $0x80] sm:$0xff]  ;;  %v3126_v2 = vld [vmem:[#allocation3 + $0x408] sm:$0xff]  ;;  %7031 = vst [vmem:[#allocation19_spill] sm:$0xff] %v3138_v19  ;;  %v3179_v43 = vsub.f32 %v3108_v53, %v354_v57  ;;  %v3182_v44 = vsub.f32 %v3110_v54, %v355_v58 }
  0x1c   :  { %v3124_v1 = vld [vmem:[#allocation3 + $0x400] sm:$0xff]  ;;  %v3128_v3 = vld [vmem:[#allocation3 + $0x410] sm:$0xff]  ;;  %v357_v5 = vld [vmem:[#allocation6 + $0xb8] sm:$0xff]  ;;  %7032 = vst [vmem:[#allocation20_spill] sm:$0xff] %v3140_v20  ;;  %v3185_v45 = vsub.f32 %v3112_v55, %v356_v59 }
  0x1d   :  { %v350_v4 = vld [vmem:[#allocation6 + $0x80] sm:$0xff]  ;;  %v463_v7 = vld [vmem:[#allocation6 + $0x408] sm:$0xff]  ;;  %v209_v12 = vld [vmem:[#allocation3 + $0x418] sm:$0xff]  ;;  %7033 = vst [vmem:[#allocation21_spill] sm:$0xff] %v3142_v21  ;;  %v3188_v46 = vsub.f32 %v3114_v56, %v357_v5 }
  0x1e   :  { %v462_v6 = vld [vmem:[#allocation6 + $0x400] sm:$0xff]  ;;  %v211_v14 = vld [vmem:[#allocation3 + $0x428] sm:$0xff]  ;;  %v212_v15 = vld [vmem:[#allocation3 + $0x430] sm:$0xff]  ;;  %7034 = vst [vmem:[#allocation22_spill] sm:$0xff] %v3144_v22  ;;  %v3199_v54 = vsub.f32 %v3122_v0, %v350_v4  ;;  %v3205_v56 = vsub.f32 %v3126_v2, %v463_v7 }
  0x1f   :  { %v210_v13 = vld [vmem:[#allocation3 + $0x420] sm:$0xff]  ;;  %v464_v16 = vld [vmem:[#allocation6 + $0x410] sm:$0xff]  ;;  %v465_v17 = vld [vmem:[#allocation6 + $0x418] sm:$0xff]  ;;  %7035 = vst [vmem:[#allocation23_spill] sm:$0xff] %v3146_v30  ;;  %v3202_v55 = vsub.f32 %v3124_v1, %v462_v6 }
  0x20   :  { %v466_v18 = vld [vmem:[#allocation6 + $0x420] sm:$0xff]  ;;  %v213_v23 = vld [vmem:[#allocation3 + $0x438] sm:$0xff]  ;;  %v215_v25 = vld [vmem:[#allocation3 + $0x448] sm:$0xff]  ;;  %7036 = vst [vmem:[#allocation24_spill] sm:$0xff] %v3148_v31  ;;  %v3208_v58 = vsub.f32 %v3128_v3, %v464_v16  ;;  %v3212_v10 = vsub.f32 %v209_v12, %v465_v17 }
  0x21   :  { %v214_v24 = vld [vmem:[#allocation3 + $0x440] sm:$0xff]  ;;  %v216_v26 = vld [vmem:[#allocation3 + $0x450] sm:$0xff]  ;;  %v467_v27 = vld [vmem:[#allocation6 + $0x428] sm:$0xff]  ;;  %7037 = vst [vmem:[#allocation25_spill] sm:$0xff] %v3150_v32  ;;  %v3214_v9 = vsub.f32 %v210_v13, %v466_v18 }
  0x22   :  { %v468_v28 = vld [vmem:[#allocation6 + $0x430] sm:$0xff]  ;;  %v469_v29 = vld [vmem:[#allocation6 + $0x438] sm:$0xff]  ;;  %7038 = vst [vmem:[#allocation26_spill] sm:$0xff] %v3152_v33  ;;  %v3156_v35 = vld [vmem:[#allocation3 + $0x460] sm:$0xff]  ;;  %v3216_v0 = vsub.f32 %v211_v14, %v467_v27 }
  0x23   :  { %v3154_v34 = vld [vmem:[#allocation3 + $0x458] sm:$0xff]  ;;  %v3158_v36 = vld [vmem:[#allocation3 + $0x468] sm:$0xff]  ;;  %v3160_v37 = vld [vmem:[#allocation3 + $0x470] sm:$0xff]  ;;  %7039 = vst [vmem:[#allocation27_spill] sm:$0xff] %v3168_v50  ;;  %v3218_v4 = vsub.f32 %v212_v15, %v468_v28  ;;  %v3232_v18 = vsub.f32 %v213_v23, %v469_v29 }
  0x24   :  { %v470_v38 = vld [vmem:[#allocation6 + $0x440] sm:$0xff]  ;;  %v471_v39 = vld [vmem:[#allocation6 + $0x448] sm:$0xff]  ;;  %v472_v40 = vld [vmem:[#allocation6 + $0x450] sm:$0xff]  ;;  %7040 = vst [vmem:[#allocation28_spill] sm:$0xff] %v3202_v55 }
  0x25   :  { %v3170_v51 = vld [vmem:[#allocation3 + $0x478] sm:$0xff]  ;;  %v3172_v52 = vld [vmem:[#allocation3 + $0x480] sm:$0xff]  ;;  %v3174_v33 = vld [vmem:[#allocation3 + $0x488] sm:$0xff]  ;;  %7041 = vst [vmem:[#allocation29_spill] sm:$0xff] %v3205_v56  ;;  %v3234_v14 = vsub.f32 %v214_v24, %v470_v38  ;;  %v3236_v15 = vsub.f32 %v215_v25, %v471_v39  ;;  %v3238_v27 = vsub.f32 %v216_v26, %v472_v40 }
  0x26   :  { %v3176_v32 = vld [vmem:[#allocation3 + $0x490] sm:$0xff]  ;;  %v473_v31 = vld [vmem:[#allocation6 + $0x458] sm:$0xff]  ;;  %v474_v30 = vld [vmem:[#allocation6 + $0x460] sm:$0xff]  ;;  %7042 = vst [vmem:[#allocation30_spill] sm:$0xff] %v3208_v58 }
  0x27   :  { %v475_v22 = vld [vmem:[#allocation6 + $0x468] sm:$0xff]  ;;  %v3190_v47 = vld [vmem:[#allocation3 + $0x498] sm:$0xff]  ;;  %v3192_v48 = vld [vmem:[#allocation3 + $0x4a0] sm:$0xff]  ;;  %7043 = vst [vmem:[#allocation31_spill] sm:$0xff] %v3212_v10  ;;  %v3257_v26 = vsub.f32 %v3154_v34, %v473_v31  ;;  %v3260_v29 = vsub.f32 %v3156_v35, %v474_v30 }
  0x28   :  { %v3194_v60 = vld [vmem:[#allocation3 + $0x4a8] sm:$0xff]  ;;  %v3196_v21 = vld [vmem:[#allocation3 + $0x4b0] sm:$0xff]  ;;  %v477_v53 = vld [vmem:[#allocation6 + $0x478] sm:$0xff]  ;;  %7044 = vst [vmem:[#allocation32_spill] sm:$0xff] %v3214_v9  ;;  %v3263_v38 = vsub.f32 %v3158_v36, %v475_v22 }
  0x29   :  { %v476_v20 = vld [vmem:[#allocation6 + $0x470] sm:$0xff]  ;;  %v478_v57 = vld [vmem:[#allocation6 + $0x480] sm:$0xff]  ;;  %v3210_v59 = vld [vmem:[#allocation3 + $0x4b8] sm:$0xff]  ;;  %7045 = vst [vmem:[#allocation33_spill] sm:$0xff] %v3216_v0  ;;  %v3285_v22 = vsub.f32 %v3170_v51, %v477_v53 }
  0x2a   :  { %v479_v5 = vld [vmem:[#allocation6 + $0x488] sm:$0xff]  ;;  %v480_v50 = vld [vmem:[#allocation6 + $0x490] sm:$0xff]  ;;  %v481_v11 = vld [vmem:[#allocation6 + $0x498] sm:$0xff]  ;;  %7046 = vst [vmem:[#allocation34_spill] sm:$0xff] %v3218_v4  ;;  %v3266_v39 = vsub.f32 %v3160_v37, %v476_v20  ;;  %v3288_v20 = vsub.f32 %v3172_v52, %v478_v57 }
  0x2b   :  { %v3220_v1 = vld [vmem:[#allocation3 + $0xc0] sm:$0xff]  ;;  %v3222_v2 = vld [vmem:[#allocation3 + $0xc8] sm:$0xff]  ;;  %v3224_v6 = vld [vmem:[#allocation3 + $0xd0] sm:$0xff]  ;;  %7047 = vst [vmem:[#allocation35_spill] sm:$0xff] %v3232_v18  ;;  %v3291_v35 = vsub.f32 %v3174_v33, %v479_v5  ;;  %v3294_v36 = vsub.f32 %v3176_v32, %v480_v50  ;;  %v3313_v33 = vsub.f32 %v3190_v47, %v481_v11 }
  0x2c   :  { %v3226_v3 = vld [vmem:[#allocation6 + $0xc0] sm:$0xff]  ;;  %v3228_v7 = vld [vmem:[#allocation6 + $0xc8] sm:$0xff]  ;;  %v3230_v16 = vld [vmem:[#allocation6 + $0xd0] sm:$0xff]  ;;  %7048 = vst [vmem:[#allocation36_spill] sm:$0xff] %v3234_v14 }
  0x2d   :  { %v482_v12 = vld [vmem:[#allocation6 + $0x4a0] sm:$0xff]  ;;  %v483_v17 = vld [vmem:[#allocation6 + $0x4a8] sm:$0xff]  ;;  %v484_v13 = vld [vmem:[#allocation6 + $0x4b0] sm:$0xff]  ;;  %7049 = vst [vmem:[#allocation37_spill] sm:$0xff] %v3236_v15 }
  0x2e   :  { %7050 = vst [vmem:[#allocation38_spill] sm:$0xff] %v3238_v27  ;;  %v3240_v28 = vld [vmem:[#allocation3 + $0xd8] sm:$0xff]  ;;  %v3242_v8 = vld [vmem:[#allocation3 + $0xe0] sm:$0xff]  ;;  %v3244_v63 = vld [vmem:[#allocation3 + $0xe8] sm:$0xff]  ;;  %v3316_v32 = vsub.f32 %v3192_v48, %v482_v12  ;;  %v3319_v50 = vsub.f32 %v3194_v60, %v483_v17  ;;  %v3322_v57 = vsub.f32 %v3196_v21, %v484_v13  ;;  %v3345_v21 = vmul.f32 %v3199_v54, %v3199_v54 }
  0x2f   :  { %v3246_v62 = vld [vmem:[#allocation3 + $0xf0] sm:$0xff]  ;;  %v3248_v61 = vld [vmem:[#allocation6 + $0xd8] sm:$0xff]  ;;  %v3250_v19 = vld [vmem:[#allocation6 + $0xe0] sm:$0xff]  ;;  %7051 = vst [vmem:[#allocation39_spill] sm:$0xff] %v3257_v26  ;;  %v3349_v12 = vmul.f32 %v3162_v41, %v3162_v41  ;;  %v3353_v17 = vmul.f32 %v3164_v42, %v3164_v42  ;;  %v3373_v42 = vsub.f32 %v3220_v1, %v3226_v3 }
  0x30   :  { %v3252_v23 = vld [vmem:[#allocation6 + $0xe8] sm:$0xff]  ;;  %v3254_v24 = vld [vmem:[#allocation6 + $0xf0] sm:$0xff]  ;;  %v485_v25 = vld [vmem:[#allocation6 + $0x4b8] sm:$0xff]  ;;  %7052 = vst [vmem:[#allocation40_spill] sm:$0xff] %v3260_v29 }
  0x31   :  { %7053 = vst [vmem:[#allocation41_spill] sm:$0xff] %v3263_v38  ;;  %v3268_v40 = vld [vmem:[#allocation3 + $0xf8] sm:$0xff]  ;;  %v3270_v27 = vld [vmem:[#allocation3 + $0x100] sm:$0xff]  ;;  %v3272_v15 = vld [vmem:[#allocation3 + $0x108] sm:$0xff]  ;;  %v3341_v60 = vsub.f32 %v3210_v59, %v485_v25  ;;  %v3417_v0 = vsub.f32 %v3246_v62, %v3254_v24 }
  0x32   :  { %7054 = vst [vmem:[#allocation42_spill] sm:$0xff] %v3266_v39  ;;  %v3274_v14 = vld [vmem:[#allocation3 + $0x110] sm:$0xff]  ;;  %v3276_v18 = vld [vmem:[#allocation6 + $0xf8] sm:$0xff]  ;;  %v3278_v31 = vld [vmem:[#allocation6 + $0x100] sm:$0xff] }
  0x33   :  { %v3280_v30 = vld [vmem:[#allocation6 + $0x108] sm:$0xff]  ;;  %v3282_v34 = vld [vmem:[#allocation6 + $0x110] sm:$0xff]  ;;  %7055 = vst [vmem:[#allocation43_spill] sm:$0xff] %v3285_v22  ;;  %v3296_v37 = vld [vmem:[#allocation3 + $0x118] sm:$0xff]  ;;  %v3437_v62 = vsub.f32 %v3268_v40, %v3276_v18 }
  0x34   :  { %7056 = vst [vmem:[#allocation44_spill] sm:$0xff] %v3288_v20  ;;  %v3298_v39 = vld [vmem:[#allocation3 + $0x120] sm:$0xff]  ;;  %v3300_v38 = vld [vmem:[#allocation3 + $0x128] sm:$0xff]  ;;  %v3302_v29 = vld [vmem:[#allocation3 + $0x130] sm:$0xff]  ;;  %v3445_v24 = vsub.f32 %v3272_v15, %v3280_v30  ;;  %v3449_v56 = vsub.f32 %v3274_v14, %v3282_v34 }
  0x35   :  { %7057 = vst [vmem:[#allocation45_spill] sm:$0xff] %v3291_v35  ;;  %v3304_v26 = vld [vmem:[#allocation6 + $0x118] sm:$0xff]  ;;  %v3306_v51 = vld [vmem:[#allocation6 + $0x120] sm:$0xff]  ;;  %v3308_v52 = vld [vmem:[#allocation6 + $0x128] sm:$0xff] }
  0x36   :  { %7058 = vst [vmem:[#allocation46_spill] sm:$0xff] %v3294_v36  ;;  %v3310_v53 = vld [vmem:[#allocation6 + $0x130] sm:$0xff]  ;;  %v3324_v5 = vld [vmem:[#allocation3 + $0x138] sm:$0xff]  ;;  %v3326_v36 = vld [vmem:[#allocation3 + $0x140] sm:$0xff]  ;;  %v3469_v14 = vsub.f32 %v3296_v37, %v3304_v26  ;;  %v3473_v30 = vsub.f32 %v3298_v39, %v3306_v51  ;;  %v3477_v34 = vsub.f32 %v3300_v38, %v3308_v52 }
  0x37   :  { %7059 = vst [vmem:[#allocation47_spill] sm:$0xff] %v3313_v33  ;;  %v3328_v35 = vld [vmem:[#allocation3 + $0x148] sm:$0xff]  ;;  %v3330_v20 = vld [vmem:[#allocation3 + $0x150] sm:$0xff]  ;;  %v3332_v22 = vld [vmem:[#allocation6 + $0x138] sm:$0xff] }
  0x38   :  { %7060 = vst [vmem:[#allocation48_spill] sm:$0xff] %v3316_v32  ;;  %v3334_v11 = vld [vmem:[#allocation6 + $0x140] sm:$0xff]  ;;  %v3336_v47 = vld [vmem:[#allocation6 + $0x148] sm:$0xff]  ;;  %v3338_v48 = vld [vmem:[#allocation6 + $0x150] sm:$0xff] }
  0x39   :  { %7061 = vst [vmem:[#allocation49_spill] sm:$0xff] %v3319_v50  ;;  %v3355_v13 = vld [vmem:[#allocation3 + $0x158] sm:$0xff]  ;;  %v3359_v50 = vld [vmem:[#allocation3 + $0x168] sm:$0xff]  ;;  %v3361_v59 = vld [vmem:[#allocation3 + $0x170] sm:$0xff]  ;;  %v3505_v52 = vsub.f32 %v3326_v36, %v3334_v11 }
  0x3a   :  { %7062 = vst [vmem:[#allocation50_spill] sm:$0xff] %v3322_v57  ;;  %v3357_v57 = vld [vmem:[#allocation3 + $0x160] sm:$0xff]  ;;  %v3363_v25 = vld [vmem:[#allocation6 + $0x158] sm:$0xff]  ;;  %v3369_v41 = vld [vmem:[#allocation6 + $0x170] sm:$0xff] }
  0x3b   :  { %7063 = vst [vmem:[#allocation51_spill] sm:$0xff] %v3341_v60  ;;  %v3365_v54 = vld [vmem:[#allocation6 + $0x160] sm:$0xff]  ;;  %v3385_v60 = vmul.f32 %v3166_v49, %v3166_v49  ;;  %v3387_v32 = vld [vmem:[#allocation3 + $0x178] sm:$0xff]  ;;  %v3391_v4 = vld [vmem:[#allocation3 + $0x188] sm:$0xff]  ;;  %v3405_v49 = vsub.f32 %v3240_v28, %v3248_v61 }
  0x3c   :  { %7064 = vst [vmem:[#allocation52_spill] sm:$0xff] %v3345_v21  ;;  %v3367_v21 = vld [vmem:[#allocation6 + $0x168] sm:$0xff]  ;;  %v3389_v33 = vld [vmem:[#allocation3 + $0x180] sm:$0xff]  ;;  %v3393_v1 = vld [vmem:[#allocation3 + $0x190] sm:$0xff] }
  0x3d   :  { %7065 = vst [vmem:[#allocation53_spill] sm:$0xff] %v3349_v12  ;;  %v3381_v12 = vsub.f32 %v3224_v6, %v3230_v16  ;;  %v3395_v3 = vld [vmem:[#allocation6 + $0x178] sm:$0xff]  ;;  %v3401_v6 = vld [vmem:[#allocation6 + $0x190] sm:$0xff]  ;;  %v3409_v16 = vsub.f32 %v3242_v8, %v3250_v19  ;;  %v3421_v10 = vld [vmem:[#allocation3 + $0x1a0] sm:$0xff] }
  0x3e   :  { %7066 = vst [vmem:[#allocation54_spill] sm:$0xff] %v3353_v17  ;;  %v3377_v17 = vsub.f32 %v3222_v2, %v3228_v7  ;;  %v3397_v2 = vld [vmem:[#allocation6 + $0x180] sm:$0xff]  ;;  %v3399_v7 = vld [vmem:[#allocation6 + $0x188] sm:$0xff]  ;;  %v3419_v9 = vld [vmem:[#allocation3 + $0x198] sm:$0xff] }
  0x3f   :  { %7067 = vst [vmem:[#allocation55_spill] sm:$0xff] %v3381_v12  ;;  %v3423_v58 = vld [vmem:[#allocation3 + $0x1a8] sm:$0xff]  ;;  %v3425_v61 = vld [vmem:[#allocation3 + $0x1b0] sm:$0xff]  ;;  %v3427_v28 = vld [vmem:[#allocation6 + $0x198] sm:$0xff] }
  0x40   :  { %7068 = vst [vmem:[#allocation56_spill] sm:$0xff] %v3385_v60  ;;  %v3413_v60 = vsub.f32 %v3244_v63, %v3252_v23  ;;  %v3429_v8 = vld [vmem:[#allocation6 + $0x1a0] sm:$0xff]  ;;  %v3431_v19 = vld [vmem:[#allocation6 + $0x1a8] sm:$0xff]  ;;  %v3433_v63 = vld [vmem:[#allocation6 + $0x1b0] sm:$0xff]  ;;  %v3441_v23 = vsub.f32 %v3270_v27, %v3278_v31 }
  0x41   :  { %7069 = vst [vmem:[#allocation57_spill] sm:$0xff] %v3405_v49  ;;  %v3451_v55 = vld [vmem:[#allocation3 + $0x1b8] sm:$0xff]  ;;  %v3457_v18 = vld [vmem:[#allocation3 + $0x1d0] sm:$0xff]  ;;  %v3461_v27 = vld [vmem:[#allocation6 + $0x1c0] sm:$0xff] }
  0x42   :  { %7070 = vst [vmem:[#allocation58_spill] sm:$0xff] %v3409_v16  ;;  %v3459_v40 = vld [vmem:[#allocation6 + $0x1b8] sm:$0xff]  ;;  %v3463_v31 = vld [vmem:[#allocation6 + $0x1c8] sm:$0xff]  ;;  %v3465_v15 = vld [vmem:[#allocation6 + $0x1d0] sm:$0xff] }
  0x43   :  { %7071 = vst [vmem:[#allocation59_spill] sm:$0xff] %v3413_v60  ;;  %v3455_v60 = vld [vmem:[#allocation3 + $0x1c8] sm:$0xff]  ;;  %v3489_v26 = vld [vmem:[#allocation3 + $0x1f0] sm:$0xff]  ;;  %v3491_v37 = vld [vmem:[#allocation6 + $0x1d8] sm:$0xff] }
  0x44   :  { %7072 = vst [vmem:[#allocation60_spill] sm:$0xff] %v3417_v0  ;;  %v3453_v0 = vld [vmem:[#allocation3 + $0x1c0] sm:$0xff]  ;;  %v3495_v51 = vld [vmem:[#allocation6 + $0x1e8] sm:$0xff]  ;;  %v3497_v38 = vld [vmem:[#allocation6 + $0x1f0] sm:$0xff] }
  0x45   :  { %7073 = vst [vmem:[#allocation61_spill] sm:$0xff] %v3437_v62  ;;  %v3487_v62 = vld [vmem:[#allocation3 + $0x1e8] sm:$0xff]  ;;  %v3493_v39 = vld [vmem:[#allocation6 + $0x1e0] sm:$0xff]  ;;  %v312_v16 = vld [vmem:[#allocation3 + $0x750] sm:$0xff] }
  0x46   :  { %7074 = vst [vmem:[#allocation62_spill] sm:$0xff] %v3441_v23  ;;  %v3485_v23 = vld [vmem:[#allocation3 + $0x1e0] sm:$0xff]  ;;  %v3527_v11 = vld [vmem:[#allocation6 + $0x208] sm:$0xff]  ;;  %v565_v49 = vld [vmem:[#allocation6 + $0x738] sm:$0xff] }
  0x47   :  { %7075 = vst [vmem:[#allocation63_spill] sm:$0xff] %v3445_v24  ;;  %v3483_v24 = vld [vmem:[#allocation3 + $0x1d8] sm:$0xff]  ;;  %v3525_v36 = vld [vmem:[#allocation6 + $0x200] sm:$0xff] }
  0x48   :  { %7076 = vst [vmem:[#allocation64_spill] sm:$0xff] %v3449_v56  ;;  %v3481_v56 = vsub.f32 %v3302_v29, %v3310_v53  ;;  %v3501_v29 = vsub.f32 %v3324_v5, %v3332_v22  ;;  %v3509_v53 = vsub.f32 %v3328_v35, %v3336_v47  ;;  %v3521_v22 = vld [vmem:[#allocation3 + $0x210] sm:$0xff]  ;;  %v3523_v5 = vld [vmem:[#allocation6 + $0x1f8] sm:$0xff]  ;;  %v3537_v47 = vsub.f32 %v3357_v57, %v3365_v54  ;;  %v3557_v57 = vld [vmem:[#allocation6 + $0x220] sm:$0xff] }
  0x49   :  { %7077 = vst [vmem:[#allocation65_spill] sm:$0xff] %v3469_v14  ;;  %v3519_v14 = vld [vmem:[#allocation3 + $0x208] sm:$0xff]  ;;  %v3529_v35 = vld [vmem:[#allocation6 + $0x210] sm:$0xff]  ;;  %v566_v12 = vld [vmem:[#allocation6 + $0x740] sm:$0xff] }
  0x4a   :  { %7078 = vst [vmem:[#allocation66_spill] sm:$0xff] %v3473_v30  ;;  %v3517_v30 = vld [vmem:[#allocation3 + $0x200] sm:$0xff]  ;;  %v3559_v54 = vld [vmem:[#allocation6 + $0x228] sm:$0xff] }
  0x4b   :  { %7079 = vst [vmem:[#allocation67_spill] sm:$0xff] %v3477_v34  ;;  %v3515_v34 = vld [vmem:[#allocation3 + $0x1f8] sm:$0xff] }
  0x4c   :  { %7080 = vst [vmem:[#allocation68_spill] sm:$0xff] %v3481_v56  ;;  %v3513_v56 = vsub.f32 %v3330_v20, %v3338_v48  ;;  %v3533_v20 = vsub.f32 %v3355_v13, %v3363_v25  ;;  %v3541_v48 = vsub.f32 %v3359_v50, %v3367_v21  ;;  %v3553_v13 = vld [vmem:[#allocation3 + $0x230] sm:$0xff]  ;;  %v3555_v25 = vld [vmem:[#allocation6 + $0x218] sm:$0xff]  ;;  %v3565_v21 = vsub.f32 %v3387_v32, %v3395_v3 }
  0x4d   :  { %7081 = vst [vmem:[#allocation69_spill] sm:$0xff] %v3501_v29  ;;  %v3551_v29 = vld [vmem:[#allocation3 + $0x228] sm:$0xff]  ;;  %v3561_v50 = vld [vmem:[#allocation6 + $0x230] sm:$0xff]  ;;  %v3587_v3 = vld [vmem:[#allocation6 + $0x238] sm:$0xff] }
  0x4e   :  { %7082 = vst [vmem:[#allocation70_spill] sm:$0xff] %v3505_v52  ;;  %v3549_v52 = vld [vmem:[#allocation3 + $0x220] sm:$0xff]  ;;  %v3585_v32 = vld [vmem:[#allocation3 + $0x250] sm:$0xff] }
  0x4f   :  { %7083 = vst [vmem:[#allocation71_spill] sm:$0xff] %v3509_v53  ;;  %v3547_v53 = vld [vmem:[#allocation3 + $0x218] sm:$0xff] }
  0x50   :  { %7084 = vst [vmem:[#allocation72_spill] sm:$0xff] %v3513_v56  ;;  %v3545_v56 = vsub.f32 %v3361_v59, %v3369_v41  ;;  %v3569_v59 = vsub.f32 %v3389_v33, %v3397_v2  ;;  %v3573_v41 = vsub.f32 %v3391_v4, %v3399_v7  ;;  %v3589_v33 = vld [vmem:[#allocation6 + $0x240] sm:$0xff]  ;;  %v3591_v2 = vld [vmem:[#allocation6 + $0x248] sm:$0xff]  ;;  %v3593_v4 = vld [vmem:[#allocation6 + $0x250] sm:$0xff]  ;;  %v3601_v7 = vsub.f32 %v3421_v10, %v3429_v8 }
  0x51   :  { %7085 = vst [vmem:[#allocation73_spill] sm:$0xff] %v3533_v20  ;;  %v3583_v20 = vld [vmem:[#allocation3 + $0x248] sm:$0xff]  ;;  %v3621_v10 = vld [vmem:[#allocation6 + $0x260] sm:$0xff] }
  0x52   :  { %7086 = vst [vmem:[#allocation74_spill] sm:$0xff] %v3537_v47  ;;  %v3581_v47 = vld [vmem:[#allocation3 + $0x240] sm:$0xff]  ;;  %v3623_v8 = vld [vmem:[#allocation6 + $0x268] sm:$0xff] }
  0x53   :  { %7087 = vst [vmem:[#allocation75_spill] sm:$0xff] %v3541_v48  ;;  %v3579_v48 = vld [vmem:[#allocation3 + $0x238] sm:$0xff] }
  0x54   :  { %7088 = vst [vmem:[#allocation76_spill] sm:$0xff] %v3545_v56  ;;  %v3577_v56 = vsub.f32 %v3393_v1, %v3401_v6  ;;  %v3597_v1 = vsub.f32 %v3419_v9, %v3427_v28  ;;  %v3605_v6 = vsub.f32 %v3423_v58, %v3431_v19  ;;  %v3617_v9 = vld [vmem:[#allocation3 + $0x270] sm:$0xff]  ;;  %v3619_v28 = vld [vmem:[#allocation6 + $0x258] sm:$0xff]  ;;  %v3633_v19 = vsub.f32 %v3453_v0, %v3461_v27  ;;  %v3653_v0 = vld [vmem:[#allocation6 + $0x280] sm:$0xff] }
  0x55   :  { %7089 = vst [vmem:[#allocation77_spill] sm:$0xff] %v3565_v21  ;;  %v3615_v21 = vld [vmem:[#allocation3 + $0x268] sm:$0xff]  ;;  %v3625_v58 = vld [vmem:[#allocation6 + $0x270] sm:$0xff] }
  0x56   :  { %7090 = vst [vmem:[#allocation78_spill] sm:$0xff] %v3569_v59  ;;  %v3613_v59 = vld [vmem:[#allocation3 + $0x260] sm:$0xff]  ;;  %v3655_v27 = vld [vmem:[#allocation6 + $0x288] sm:$0xff] }
  0x57   :  { %7091 = vst [vmem:[#allocation79_spill] sm:$0xff] %v3573_v41  ;;  %v3611_v41 = vld [vmem:[#allocation3 + $0x258] sm:$0xff] }
  0x58   :  { %7092 = vst [vmem:[#allocation80_spill] sm:$0xff] %v3577_v56  ;;  %v3609_v56 = vsub.f32 %v3425_v61, %v3433_v63  ;;  %v3629_v61 = vsub.f32 %v3451_v55, %v3459_v40  ;;  %v3637_v63 = vsub.f32 %v3455_v60, %v3463_v31  ;;  %v3649_v55 = vld [vmem:[#allocation3 + $0x290] sm:$0xff]  ;;  %v3651_v40 = vld [vmem:[#allocation6 + $0x278] sm:$0xff]  ;;  %v3665_v31 = vsub.f32 %v3485_v23, %v3493_v39  ;;  %v3685_v23 = vld [vmem:[#allocation6 + $0x2a0] sm:$0xff] }
  0x59   :  { %7093 = vst [vmem:[#allocation81_spill] sm:$0xff] %v3597_v1  ;;  %v3647_v1 = vld [vmem:[#allocation3 + $0x288] sm:$0xff]  ;;  %v3657_v60 = vld [vmem:[#allocation6 + $0x290] sm:$0xff] }
  0x5a   :  { %7094 = vst [vmem:[#allocation82_spill] sm:$0xff] %v3601_v7  ;;  %v3645_v7 = vld [vmem:[#allocation3 + $0x280] sm:$0xff]  ;;  %v3687_v39 = vld [vmem:[#allocation6 + $0x2a8] sm:$0xff] }
  0x5b   :  { %7095 = vst [vmem:[#allocation83_spill] sm:$0xff] %v3605_v6  ;;  %v3643_v6 = vld [vmem:[#allocation3 + $0x278] sm:$0xff] }
  0x5c   :  { %7096 = vst [vmem:[#allocation84_spill] sm:$0xff] %v3609_v56  ;;  %v3641_v56 = vsub.f32 %v3457_v18, %v3465_v15  ;;  %v3661_v18 = vsub.f32 %v3483_v24, %v3491_v37  ;;  %v3669_v15 = vsub.f32 %v3487_v62, %v3495_v51  ;;  %v3681_v24 = vld [vmem:[#allocation3 + $0x2b0] sm:$0xff]  ;;  %v3683_v37 = vld [vmem:[#allocation6 + $0x298] sm:$0xff]  ;;  %v3697_v51 = vsub.f32 %v3517_v30, %v3525_v36  ;;  %v3717_v30 = vld [vmem:[#allocation6 + $0x2c0] sm:$0xff] }
  0x5d   :  { %7097 = vst [vmem:[#allocation85_spill] sm:$0xff] %v3629_v61  ;;  %v3679_v61 = vld [vmem:[#allocation3 + $0x2a8] sm:$0xff]  ;;  %v3689_v62 = vld [vmem:[#allocation6 + $0x2b0] sm:$0xff] }
  0x5e   :  { %7098 = vst [vmem:[#allocation86_spill] sm:$0xff] %v3633_v19  ;;  %v3677_v19 = vld [vmem:[#allocation3 + $0x2a0] sm:$0xff]  ;;  %v3719_v36 = vld [vmem:[#allocation6 + $0x2c8] sm:$0xff] }
  0x5f   :  { %7099 = vst [vmem:[#allocation87_spill] sm:$0xff] %v3637_v63  ;;  %v3675_v63 = vld [vmem:[#allocation3 + $0x298] sm:$0xff] }
  0x60   :  { %7100 = vst [vmem:[#allocation88_spill] sm:$0xff] %v3641_v56  ;;  %v3673_v56 = vsub.f32 %v3489_v26, %v3497_v38  ;;  %v3693_v26 = vsub.f32 %v3515_v34, %v3523_v5  ;;  %v3701_v38 = vsub.f32 %v3519_v14, %v3527_v11  ;;  %v3713_v34 = vld [vmem:[#allocation3 + $0x2d0] sm:$0xff]  ;;  %v3715_v5 = vld [vmem:[#allocation6 + $0x2b8] sm:$0xff]  ;;  %v3729_v11 = vsub.f32 %v3549_v52, %v3557_v57  ;;  %v3749_v52 = vld [vmem:[#allocation6 + $0x2e0] sm:$0xff] }
  0x61   :  { %7101 = vst [vmem:[#allocation89_spill] sm:$0xff] %v3661_v18  ;;  %v3711_v18 = vld [vmem:[#allocation3 + $0x2c8] sm:$0xff]  ;;  %v3721_v14 = vld [vmem:[#allocation6 + $0x2d0] sm:$0xff] }
  0x62   :  { %7102 = vst [vmem:[#allocation90_spill] sm:$0xff] %v3665_v31  ;;  %v3709_v31 = vld [vmem:[#allocation3 + $0x2c0] sm:$0xff]  ;;  %v3751_v57 = vld [vmem:[#allocation6 + $0x2e8] sm:$0xff] }
  0x63   :  { %7103 = vst [vmem:[#allocation91_spill] sm:$0xff] %v3669_v15  ;;  %v3707_v15 = vld [vmem:[#allocation3 + $0x2b8] sm:$0xff] }
  0x64   :  { %7104 = vst [vmem:[#allocation92_spill] sm:$0xff] %v3673_v56  ;;  %v3705_v56 = vsub.f32 %v3521_v22, %v3529_v35  ;;  %v3725_v22 = vsub.f32 %v3547_v53, %v3555_v25  ;;  %v3733_v35 = vsub.f32 %v3551_v29, %v3559_v54  ;;  %v3745_v53 = vld [vmem:[#allocation3 + $0x2f0] sm:$0xff]  ;;  %v3747_v25 = vld [vmem:[#allocation6 + $0x2d8] sm:$0xff]  ;;  %v3761_v54 = vsub.f32 %v3581_v47, %v3589_v33  ;;  %v3781_v47 = vld [vmem:[#allocation6 + $0x300] sm:$0xff] }
  0x65   :  { %7105 = vst [vmem:[#allocation93_spill] sm:$0xff] %v3693_v26  ;;  %v3743_v26 = vld [vmem:[#allocation3 + $0x2e8] sm:$0xff]  ;;  %v3753_v29 = vld [vmem:[#allocation6 + $0x2f0] sm:$0xff] }
  0x66   :  { %7106 = vst [vmem:[#allocation94_spill] sm:$0xff] %v3697_v51  ;;  %v3741_v51 = vld [vmem:[#allocation3 + $0x2e0] sm:$0xff]  ;;  %v3783_v33 = vld [vmem:[#allocation6 + $0x308] sm:$0xff] }
  0x67   :  { %7107 = vst [vmem:[#allocation95_spill] sm:$0xff] %v3701_v38  ;;  %v3739_v38 = vld [vmem:[#allocation3 + $0x2d8] sm:$0xff] }
  0x68   :  { %7108 = vst [vmem:[#allocation96_spill] sm:$0xff] %v3705_v56  ;;  %v3737_v56 = vsub.f32 %v3553_v13, %v3561_v50  ;;  %v3757_v13 = vsub.f32 %v3579_v48, %v3587_v3  ;;  %v3765_v50 = vsub.f32 %v3583_v20, %v3591_v2  ;;  %v3777_v48 = vld [vmem:[#allocation3 + $0x310] sm:$0xff]  ;;  %v3779_v3 = vld [vmem:[#allocation6 + $0x2f8] sm:$0xff]  ;;  %v3793_v2 = vsub.f32 %v3613_v59, %v3621_v10  ;;  %v3813_v59 = vld [vmem:[#allocation6 + $0x320] sm:$0xff] }
  0x69   :  { %7109 = vst [vmem:[#allocation97_spill] sm:$0xff] %v3725_v22  ;;  %v3775_v22 = vld [vmem:[#allocation3 + $0x308] sm:$0xff]  ;;  %v3785_v20 = vld [vmem:[#allocation6 + $0x310] sm:$0xff] }
  0x6a   :  { %7110 = vst [vmem:[#allocation98_spill] sm:$0xff] %v3729_v11  ;;  %v3773_v11 = vld [vmem:[#allocation3 + $0x300] sm:$0xff]  ;;  %v3815_v10 = vld [vmem:[#allocation6 + $0x328] sm:$0xff] }
  0x6b   :  { %7111 = vst [vmem:[#allocation99_spill] sm:$0xff] %v3733_v35  ;;  %v3771_v35 = vld [vmem:[#allocation3 + $0x2f8] sm:$0xff] }
  0x6c   :  { %7112 = vst [vmem:[#allocation100_spill] sm:$0xff] %v3737_v56  ;;  %v3769_v56 = vsub.f32 %v3585_v32, %v3593_v4  ;;  %v3789_v32 = vsub.f32 %v3611_v41, %v3619_v28  ;;  %v3797_v4 = vsub.f32 %v3615_v21, %v3623_v8  ;;  %v3809_v41 = vld [vmem:[#allocation3 + $0x330] sm:$0xff]  ;;  %v3811_v28 = vld [vmem:[#allocation6 + $0x318] sm:$0xff]  ;;  %v3825_v8 = vsub.f32 %v3645_v7, %v3653_v0  ;;  %v3845_v7 = vld [vmem:[#allocation6 + $0x340] sm:$0xff] }
  0x6d   :  { %7113 = vst [vmem:[#allocation101_spill] sm:$0xff] %v3757_v13  ;;  %v3807_v13 = vld [vmem:[#allocation3 + $0x328] sm:$0xff]  ;;  %v3817_v21 = vld [vmem:[#allocation6 + $0x330] sm:$0xff] }
  0x6e   :  { %7114 = vst [vmem:[#allocation102_spill] sm:$0xff] %v3761_v54  ;;  %v3805_v54 = vld [vmem:[#allocation3 + $0x320] sm:$0xff]  ;;  %v3847_v0 = vld [vmem:[#allocation6 + $0x348] sm:$0xff] }
  0x6f   :  { %7115 = vst [vmem:[#allocation103_spill] sm:$0xff] %v3765_v50  ;;  %v3803_v50 = vld [vmem:[#allocation3 + $0x318] sm:$0xff] }
  0x70   :  { %7116 = vst [vmem:[#allocation104_spill] sm:$0xff] %v3769_v56  ;;  %v3801_v56 = vsub.f32 %v3617_v9, %v3625_v58  ;;  %v3821_v9 = vsub.f32 %v3643_v6, %v3651_v40  ;;  %v3829_v58 = vsub.f32 %v3647_v1, %v3655_v27  ;;  %v3841_v6 = vld [vmem:[#allocation3 + $0x350] sm:$0xff]  ;;  %v3843_v40 = vld [vmem:[#allocation6 + $0x338] sm:$0xff]  ;;  %v3857_v27 = vsub.f32 %v3677_v19, %v3685_v23  ;;  %v3877_v19 = vld [vmem:[#allocation6 + $0x360] sm:$0xff] }
  0x71   :  { %7117 = vst [vmem:[#allocation105_spill] sm:$0xff] %v3789_v32  ;;  %v3839_v32 = vld [vmem:[#allocation3 + $0x348] sm:$0xff]  ;;  %v3849_v1 = vld [vmem:[#allocation6 + $0x350] sm:$0xff] }
  0x72   :  { %7118 = vst [vmem:[#allocation106_spill] sm:$0xff] %v3793_v2  ;;  %v3837_v2 = vld [vmem:[#allocation3 + $0x340] sm:$0xff]  ;;  %v3879_v23 = vld [vmem:[#allocation6 + $0x368] sm:$0xff] }
  0x73   :  { %7119 = vst [vmem:[#allocation107_spill] sm:$0xff] %v3797_v4  ;;  %v3835_v4 = vld [vmem:[#allocation3 + $0x338] sm:$0xff] }
  0x74   :  { %7120 = vst [vmem:[#allocation108_spill] sm:$0xff] %v3801_v56  ;;  %v3833_v56 = vsub.f32 %v3649_v55, %v3657_v60  ;;  %v3853_v55 = vsub.f32 %v3675_v63, %v3683_v37  ;;  %v3861_v60 = vsub.f32 %v3679_v61, %v3687_v39  ;;  %v3873_v63 = vld [vmem:[#allocation3 + $0x370] sm:$0xff]  ;;  %v3875_v37 = vld [vmem:[#allocation6 + $0x358] sm:$0xff]  ;;  %v3889_v39 = vsub.f32 %v3709_v31, %v3717_v30  ;;  %v3909_v31 = vld [vmem:[#allocation6 + $0x380] sm:$0xff] }
  0x75   :  { %7121 = vst [vmem:[#allocation109_spill] sm:$0xff] %v3821_v9  ;;  %v3871_v9 = vld [vmem:[#allocation3 + $0x368] sm:$0xff]  ;;  %v3881_v61 = vld [vmem:[#allocation6 + $0x370] sm:$0xff] }
  0x76   :  { %7122 = vst [vmem:[#allocation110_spill] sm:$0xff] %v3825_v8  ;;  %v3869_v8 = vld [vmem:[#allocation3 + $0x360] sm:$0xff]  ;;  %v3911_v30 = vld [vmem:[#allocation6 + $0x388] sm:$0xff] }
  0x77   :  { %7123 = vst [vmem:[#allocation111_spill] sm:$0xff] %v3829_v58  ;;  %v3867_v58 = vld [vmem:[#allocation3 + $0x358] sm:$0xff] }
  0x78   :  { %7124 = vst [vmem:[#allocation112_spill] sm:$0xff] %v3833_v56  ;;  %v3865_v56 = vsub.f32 %v3681_v24, %v3689_v62  ;;  %v3885_v24 = vsub.f32 %v3707_v15, %v3715_v5  ;;  %v3893_v62 = vsub.f32 %v3711_v18, %v3719_v36  ;;  %v3905_v15 = vld [vmem:[#allocation3 + $0x390] sm:$0xff]  ;;  %v3907_v5 = vld [vmem:[#allocation6 + $0x378] sm:$0xff]  ;;  %v3921_v36 = vsub.f32 %v3741_v51, %v3749_v52  ;;  %v3941_v51 = vld [vmem:[#allocation6 + $0x3a0] sm:$0xff] }
  0x79   :  { %7125 = vst [vmem:[#allocation113_spill] sm:$0xff] %v3853_v55  ;;  %v3903_v55 = vld [vmem:[#allocation3 + $0x388] sm:$0xff]  ;;  %v3913_v18 = vld [vmem:[#allocation6 + $0x390] sm:$0xff] }
  0x7a   :  { %7126 = vst [vmem:[#allocation114_spill] sm:$0xff] %v3857_v27  ;;  %v3901_v27 = vld [vmem:[#allocation3 + $0x380] sm:$0xff]  ;;  %v3943_v52 = vld [vmem:[#allocation6 + $0x3a8] sm:$0xff] }
  0x7b   :  { %7127 = vst [vmem:[#allocation115_spill] sm:$0xff] %v3861_v60  ;;  %v3899_v60 = vld [vmem:[#allocation3 + $0x378] sm:$0xff] }
  0x7c   :  { %7128 = vst [vmem:[#allocation116_spill] sm:$0xff] %v3865_v56  ;;  %v3897_v56 = vsub.f32 %v3713_v34, %v3721_v14  ;;  %v3917_v34 = vsub.f32 %v3739_v38, %v3747_v25  ;;  %v3925_v14 = vsub.f32 %v3743_v26, %v3751_v57  ;;  %v3937_v38 = vld [vmem:[#allocation3 + $0x3b0] sm:$0xff]  ;;  %v3939_v25 = vld [vmem:[#allocation6 + $0x398] sm:$0xff]  ;;  %v3953_v57 = vsub.f32 %v3773_v11, %v3781_v47  ;;  %v3973_v11 = vld [vmem:[#allocation6 + $0x3c0] sm:$0xff] }
  0x7d   :  { %7129 = vst [vmem:[#allocation117_spill] sm:$0xff] %v3885_v24  ;;  %v3935_v24 = vld [vmem:[#allocation3 + $0x3a8] sm:$0xff]  ;;  %v3945_v26 = vld [vmem:[#allocation6 + $0x3b0] sm:$0xff] }
  0x7e   :  { %7130 = vst [vmem:[#allocation118_spill] sm:$0xff] %v3889_v39  ;;  %v3933_v39 = vld [vmem:[#allocation3 + $0x3a0] sm:$0xff]  ;;  %v3975_v47 = vld [vmem:[#allocation6 + $0x3c8] sm:$0xff] }
  0x7f   :  { %7131 = vst [vmem:[#allocation119_spill] sm:$0xff] %v3893_v62  ;;  %v3931_v62 = vld [vmem:[#allocation3 + $0x398] sm:$0xff] }
  0x80   :  { %7132 = vst [vmem:[#allocation120_spill] sm:$0xff] %v3897_v56  ;;  %v3929_v56 = vsub.f32 %v3745_v53, %v3753_v29  ;;  %v3949_v53 = vsub.f32 %v3771_v35, %v3779_v3  ;;  %v3957_v29 = vsub.f32 %v3775_v22, %v3783_v33  ;;  %v3969_v35 = vld [vmem:[#allocation3 + $0x3d0] sm:$0xff]  ;;  %v3971_v3 = vld [vmem:[#allocation6 + $0x3b8] sm:$0xff]  ;;  %v3985_v33 = vsub.f32 %v3805_v54, %v3813_v59  ;;  %v4005_v54 = vld [vmem:[#allocation6 + $0x3e0] sm:$0xff] }
  0x81   :  { %7133 = vst [vmem:[#allocation121_spill] sm:$0xff] %v3917_v34  ;;  %v3967_v34 = vld [vmem:[#allocation3 + $0x3c8] sm:$0xff]  ;;  %v3977_v22 = vld [vmem:[#allocation6 + $0x3d0] sm:$0xff] }
  0x82   :  { %7134 = vst [vmem:[#allocation122_spill] sm:$0xff] %v3921_v36  ;;  %v3965_v36 = vld [vmem:[#allocation3 + $0x3c0] sm:$0xff]  ;;  %v4007_v59 = vld [vmem:[#allocation6 + $0x3e8] sm:$0xff] }
  0x83   :  { %7135 = vst [vmem:[#allocation123_spill] sm:$0xff] %v3925_v14  ;;  %v3963_v14 = vld [vmem:[#allocation3 + $0x3b8] sm:$0xff] }
  0x84   :  { %7136 = vst [vmem:[#allocation124_spill] sm:$0xff] %v3929_v56  ;;  %v3961_v56 = vsub.f32 %v3777_v48, %v3785_v20  ;;  %v3981_v48 = vsub.f32 %v3803_v50, %v3811_v28  ;;  %v3989_v20 = vsub.f32 %v3807_v13, %v3815_v10  ;;  %v4001_v50 = vld [vmem:[#allocation3 + $0x3f0] sm:$0xff]  ;;  %v4003_v28 = vld [vmem:[#allocation6 + $0x3d8] sm:$0xff]  ;;  %v4017_v10 = vsub.f32 %v3837_v2, %v3845_v7  ;;  %v4037_v2 = vld [vmem:[#allocation6 + $0x4c0] sm:$0xff] }
  0x85   :  { %7137 = vst [vmem:[#allocation125_spill] sm:$0xff] %v3949_v53  ;;  %v3999_v53 = vld [vmem:[#allocation3 + $0x3e8] sm:$0xff]  ;;  %v4009_v13 = vld [vmem:[#allocation6 + $0x3f0] sm:$0xff] }
  0x86   :  { %7138 = vst [vmem:[#allocation126_spill] sm:$0xff] %v3953_v57  ;;  %v3997_v57 = vld [vmem:[#allocation3 + $0x3e0] sm:$0xff]  ;;  %v4039_v7 = vld [vmem:[#allocation6 + $0x4c8] sm:$0xff] }
  0x87   :  { %7139 = vst [vmem:[#allocation127_spill] sm:$0xff] %v3957_v29  ;;  %v3995_v29 = vld [vmem:[#allocation3 + $0x3d8] sm:$0xff] }
  0x88   :  { %7140 = vst [vmem:[#allocation128_spill] sm:$0xff] %v3961_v56  ;;  %v3993_v56 = vsub.f32 %v3809_v41, %v3817_v21  ;;  %v4013_v41 = vsub.f32 %v3835_v4, %v3843_v40  ;;  %v4021_v21 = vsub.f32 %v3839_v32, %v3847_v0  ;;  %v4033_v4 = vld [vmem:[#allocation3 + $0x4d0] sm:$0xff]  ;;  %v4035_v40 = vld [vmem:[#allocation6 + $0x3f8] sm:$0xff]  ;;  %v4049_v0 = vsub.f32 %v3869_v8, %v3877_v19  ;;  %v4069_v8 = vld [vmem:[#allocation6 + $0x4e0] sm:$0xff] }
  0x89   :  { %7141 = vst [vmem:[#allocation129_spill] sm:$0xff] %v3981_v48  ;;  %v4031_v48 = vld [vmem:[#allocation3 + $0x4c8] sm:$0xff]  ;;  %v4041_v32 = vld [vmem:[#allocation6 + $0x4d0] sm:$0xff] }
  0x8a   :  { %7142 = vst [vmem:[#allocation130_spill] sm:$0xff] %v3985_v33  ;;  %v4029_v33 = vld [vmem:[#allocation3 + $0x4c0] sm:$0xff]  ;;  %v4071_v19 = vld [vmem:[#allocation6 + $0x4e8] sm:$0xff] }
  0x8b   :  { %7143 = vst [vmem:[#allocation131_spill] sm:$0xff] %v3989_v20  ;;  %v4027_v20 = vld [vmem:[#allocation3 + $0x3f8] sm:$0xff] }
  0x8c   :  { %7144 = vst [vmem:[#allocation132_spill] sm:$0xff] %v3993_v56  ;;  %v4025_v56 = vsub.f32 %v3841_v6, %v3849_v1  ;;  %v4045_v6 = vsub.f32 %v3867_v58, %v3875_v37  ;;  %v4053_v1 = vsub.f32 %v3871_v9, %v3879_v23  ;;  %v4065_v58 = vld [vmem:[#allocation3 + $0x4f0] sm:$0xff]  ;;  %v4067_v37 = vld [vmem:[#allocation6 + $0x4d8] sm:$0xff]  ;;  %v4081_v23 = vsub.f32 %v3901_v27, %v3909_v31  ;;  %v4101_v27 = vld [vmem:[#allocation6 + $0x500] sm:$0xff] }
  0x8d   :  { %7145 = vst [vmem:[#allocation133_spill] sm:$0xff] %v4013_v41  ;;  %v4063_v41 = vld [vmem:[#allocation3 + $0x4e8] sm:$0xff]  ;;  %v4073_v9 = vld [vmem:[#allocation6 + $0x4f0] sm:$0xff] }
  0x8e   :  { %7146 = vst [vmem:[#allocation134_spill] sm:$0xff] %v4017_v10  ;;  %v4061_v10 = vld [vmem:[#allocation3 + $0x4e0] sm:$0xff]  ;;  %v4103_v31 = vld [vmem:[#allocation6 + $0x508] sm:$0xff] }
  0x8f   :  { %7147 = vst [vmem:[#allocation135_spill] sm:$0xff] %v4021_v21  ;;  %v4059_v21 = vld [vmem:[#allocation3 + $0x4d8] sm:$0xff] }
  0x90   :  { %7148 = vst [vmem:[#allocation136_spill] sm:$0xff] %v4025_v56  ;;  %v4057_v56 = vsub.f32 %v3873_v63, %v3881_v61  ;;  %v4077_v63 = vsub.f32 %v3899_v60, %v3907_v5  ;;  %v4085_v61 = vsub.f32 %v3903_v55, %v3911_v30  ;;  %v4097_v60 = vld [vmem:[#allocation3 + $0x510] sm:$0xff]  ;;  %v4099_v5 = vld [vmem:[#allocation6 + $0x4f8] sm:$0xff]  ;;  %v4113_v30 = vsub.f32 %v3933_v39, %v3941_v51  ;;  %v4133_v39 = vld [vmem:[#allocation6 + $0x520] sm:$0xff] }
  0x91   :  { %7149 = vst [vmem:[#allocation137_spill] sm:$0xff] %v4045_v6  ;;  %v4095_v6 = vld [vmem:[#allocation3 + $0x508] sm:$0xff]  ;;  %v4105_v55 = vld [vmem:[#allocation6 + $0x510] sm:$0xff] }
  0x92   :  { %7150 = vst [vmem:[#allocation138_spill] sm:$0xff] %v4049_v0  ;;  %v4093_v0 = vld [vmem:[#allocation3 + $0x500] sm:$0xff]  ;;  %v4135_v51 = vld [vmem:[#allocation6 + $0x528] sm:$0xff] }
  0x93   :  { %7151 = vst [vmem:[#allocation139_spill] sm:$0xff] %v4053_v1  ;;  %v4091_v1 = vld [vmem:[#allocation3 + $0x4f8] sm:$0xff] }
  0x94   :  { %7152 = vst [vmem:[#allocation140_spill] sm:$0xff] %v4057_v56  ;;  %v4089_v56 = vsub.f32 %v3905_v15, %v3913_v18  ;;  %v4109_v15 = vsub.f32 %v3931_v62, %v3939_v25  ;;  %v4117_v18 = vsub.f32 %v3935_v24, %v3943_v52  ;;  %v4129_v62 = vld [vmem:[#allocation3 + $0x530] sm:$0xff]  ;;  %v4131_v25 = vld [vmem:[#allocation6 + $0x518] sm:$0xff]  ;;  %v4145_v52 = vsub.f32 %v3965_v36, %v3973_v11  ;;  %v4165_v36 = vld [vmem:[#allocation6 + $0x540] sm:$0xff] }
  0x95   :  { %7153 = vst [vmem:[#allocation141_spill] sm:$0xff] %v4077_v63  ;;  %v4127_v63 = vld [vmem:[#allocation3 + $0x528] sm:$0xff]  ;;  %v4137_v24 = vld [vmem:[#allocation6 + $0x530] sm:$0xff] }
  0x96   :  { %7154 = vst [vmem:[#allocation142_spill] sm:$0xff] %v4081_v23  ;;  %v4125_v23 = vld [vmem:[#allocation3 + $0x520] sm:$0xff]  ;;  %v4167_v11 = vld [vmem:[#allocation6 + $0x548] sm:$0xff] }
  0x97   :  { %7155 = vst [vmem:[#allocation143_spill] sm:$0xff] %v4085_v61  ;;  %v4123_v61 = vld [vmem:[#allocation3 + $0x518] sm:$0xff] }
  0x98   :  { %7156 = vst [vmem:[#allocation144_spill] sm:$0xff] %v4089_v56  ;;  %v4121_v56 = vsub.f32 %v3937_v38, %v3945_v26  ;;  %v4141_v38 = vsub.f32 %v3963_v14, %v3971_v3  ;;  %v4149_v26 = vsub.f32 %v3967_v34, %v3975_v47  ;;  %v4161_v14 = vld [vmem:[#allocation3 + $0x550] sm:$0xff]  ;;  %v4163_v3 = vld [vmem:[#allocation6 + $0x538] sm:$0xff]  ;;  %v4177_v47 = vsub.f32 %v3997_v57, %v4005_v54  ;;  %v4197_v57 = vld [vmem:[#allocation6 + $0x560] sm:$0xff] }
  0x99   :  { %7157 = vst [vmem:[#allocation145_spill] sm:$0xff] %v4109_v15  ;;  %v4159_v15 = vld [vmem:[#allocation3 + $0x548] sm:$0xff]  ;;  %v4169_v34 = vld [vmem:[#allocation6 + $0x550] sm:$0xff] }
  0x9a   :  { %7158 = vst [vmem:[#allocation146_spill] sm:$0xff] %v4113_v30  ;;  %v4157_v30 = vld [vmem:[#allocation3 + $0x540] sm:$0xff]  ;;  %v4199_v54 = vld [vmem:[#allocation6 + $0x568] sm:$0xff] }
  0x9b   :  { %7159 = vst [vmem:[#allocation147_spill] sm:$0xff] %v4117_v18  ;;  %v4155_v18 = vld [vmem:[#allocation3 + $0x538] sm:$0xff] }
  0x9c   :  { %7160 = vst [vmem:[#allocation148_spill] sm:$0xff] %v4121_v56  ;;  %v4153_v56 = vsub.f32 %v3969_v35, %v3977_v22  ;;  %v4173_v35 = vsub.f32 %v3995_v29, %v4003_v28  ;;  %v4181_v22 = vsub.f32 %v3999_v53, %v4007_v59  ;;  %v4193_v29 = vld [vmem:[#allocation3 + $0x570] sm:$0xff]  ;;  %v4195_v28 = vld [vmem:[#allocation6 + $0x558] sm:$0xff]  ;;  %v4209_v59 = vsub.f32 %v4029_v33, %v4037_v2  ;;  %v4229_v33 = vld [vmem:[#allocation6 + $0x580] sm:$0xff] }
  0x9d   :  { %7161 = vst [vmem:[#allocation149_spill] sm:$0xff] %v4141_v38  ;;  %v4191_v38 = vld [vmem:[#allocation3 + $0x568] sm:$0xff]  ;;  %v4201_v53 = vld [vmem:[#allocation6 + $0x570] sm:$0xff] }
  0x9e   :  { %7162 = vst [vmem:[#allocation150_spill] sm:$0xff] %v4145_v52  ;;  %v4189_v52 = vld [vmem:[#allocation3 + $0x560] sm:$0xff]  ;;  %v4231_v2 = vld [vmem:[#allocation6 + $0x588] sm:$0xff] }
  0x9f   :  { %7163 = vst [vmem:[#allocation151_spill] sm:$0xff] %v4149_v26  ;;  %v4187_v26 = vld [vmem:[#allocation3 + $0x558] sm:$0xff] }
  0xa0   :  { %7164 = vst [vmem:[#allocation152_spill] sm:$0xff] %v4153_v56  ;;  %v4185_v56 = vsub.f32 %v4001_v50, %v4009_v13  ;;  %v4205_v50 = vsub.f32 %v4027_v20, %v4035_v40  ;;  %v4213_v13 = vsub.f32 %v4031_v48, %v4039_v7  ;;  %v4225_v20 = vld [vmem:[#allocation3 + $0x590] sm:$0xff]  ;;  %v4227_v40 = vld [vmem:[#allocation6 + $0x578] sm:$0xff]  ;;  %v4241_v7 = vsub.f32 %v4061_v10, %v4069_v8  ;;  %v4261_v10 = vld [vmem:[#allocation6 + $0x5a0] sm:$0xff] }
  0xa1   :  { %7165 = vst [vmem:[#allocation153_spill] sm:$0xff] %v4173_v35  ;;  %v4223_v35 = vld [vmem:[#allocation3 + $0x588] sm:$0xff]  ;;  %v4233_v48 = vld [vmem:[#allocation6 + $0x590] sm:$0xff] }
  0xa2   :  { %7166 = vst [vmem:[#allocation154_spill] sm:$0xff] %v4177_v47  ;;  %v4221_v47 = vld [vmem:[#allocation3 + $0x580] sm:$0xff]  ;;  %v4263_v8 = vld [vmem:[#allocation6 + $0x5a8] sm:$0xff] }
  0xa3   :  { %7167 = vst [vmem:[#allocation155_spill] sm:$0xff] %v4181_v22  ;;  %v4219_v22 = vld [vmem:[#allocation3 + $0x578] sm:$0xff] }
  0xa4   :  { %7168 = vst [vmem:[#allocation156_spill] sm:$0xff] %v4185_v56  ;;  %v4217_v56 = vsub.f32 %v4033_v4, %v4041_v32  ;;  %v4237_v4 = vsub.f32 %v4059_v21, %v4067_v37  ;;  %v4245_v32 = vsub.f32 %v4063_v41, %v4071_v19  ;;  %v4257_v21 = vld [vmem:[#allocation3 + $0x5b0] sm:$0xff]  ;;  %v4259_v37 = vld [vmem:[#allocation6 + $0x598] sm:$0xff]  ;;  %v4273_v19 = vsub.f32 %v4093_v0, %v4101_v27  ;;  %v4293_v0 = vld [vmem:[#allocation6 + $0x5c0] sm:$0xff] }
  0xa5   :  { %7169 = vst [vmem:[#allocation157_spill] sm:$0xff] %v4205_v50  ;;  %v4255_v50 = vld [vmem:[#allocation3 + $0x5a8] sm:$0xff]  ;;  %v4265_v41 = vld [vmem:[#allocation6 + $0x5b0] sm:$0xff] }
  0xa6   :  { %7170 = vst [vmem:[#allocation158_spill] sm:$0xff] %v4209_v59  ;;  %v4253_v59 = vld [vmem:[#allocation3 + $0x5a0] sm:$0xff]  ;;  %v4295_v27 = vld [vmem:[#allocation6 + $0x5c8] sm:$0xff] }
  0xa7   :  { %7171 = vst [vmem:[#allocation159_spill] sm:$0xff] %v4213_v13  ;;  %v4251_v13 = vld [vmem:[#allocation3 + $0x598] sm:$0xff] }
  0xa8   :  { %7172 = vst [vmem:[#allocation160_spill] sm:$0xff] %v4217_v56  ;;  %v4249_v56 = vsub.f32 %v4065_v58, %v4073_v9  ;;  %v4269_v58 = vsub.f32 %v4091_v1, %v4099_v5  ;;  %v4277_v9 = vsub.f32 %v4095_v6, %v4103_v31  ;;  %v4289_v1 = vld [vmem:[#allocation3 + $0x5d0] sm:$0xff]  ;;  %v4291_v5 = vld [vmem:[#allocation6 + $0x5b8] sm:$0xff]  ;;  %v4305_v31 = vsub.f32 %v4125_v23, %v4133_v39  ;;  %v4325_v23 = vld [vmem:[#allocation6 + $0x5e0] sm:$0xff] }
  0xa9   :  { %7173 = vst [vmem:[#allocation161_spill] sm:$0xff] %v4237_v4  ;;  %v4287_v4 = vld [vmem:[#allocation3 + $0x5c8] sm:$0xff]  ;;  %v4297_v6 = vld [vmem:[#allocation6 + $0x5d0] sm:$0xff] }
  0xaa   :  { %7174 = vst [vmem:[#allocation162_spill] sm:$0xff] %v4241_v7  ;;  %v4285_v7 = vld [vmem:[#allocation3 + $0x5c0] sm:$0xff]  ;;  %v4327_v39 = vld [vmem:[#allocation6 + $0x5e8] sm:$0xff] }
  0xab   :  { %7175 = vst [vmem:[#allocation163_spill] sm:$0xff] %v4245_v32  ;;  %v4283_v32 = vld [vmem:[#allocation3 + $0x5b8] sm:$0xff] }
  0xac   :  { %7176 = vst [vmem:[#allocation164_spill] sm:$0xff] %v4249_v56  ;;  %v4281_v56 = vsub.f32 %v4097_v60, %v4105_v55  ;;  %v4301_v60 = vsub.f32 %v4123_v61, %v4131_v25  ;;  %v4309_v55 = vsub.f32 %v4127_v63, %v4135_v51  ;;  %v4321_v61 = vld [vmem:[#allocation3 + $0x5f0] sm:$0xff]  ;;  %v4323_v25 = vld [vmem:[#allocation6 + $0x5d8] sm:$0xff]  ;;  %v4337_v51 = vsub.f32 %v4157_v30, %v4165_v36  ;;  %v4357_v30 = vld [vmem:[#allocation6 + $0x600] sm:$0xff] }
  0xad   :  { %7177 = vst [vmem:[#allocation165_spill] sm:$0xff] %v4269_v58  ;;  %v4319_v58 = vld [vmem:[#allocation3 + $0x5e8] sm:$0xff]  ;;  %v4329_v63 = vld [vmem:[#allocation6 + $0x5f0] sm:$0xff] }
  0xae   :  { %7178 = vst [vmem:[#allocation166_spill] sm:$0xff] %v4273_v19  ;;  %v4317_v19 = vld [vmem:[#allocation3 + $0x5e0] sm:$0xff]  ;;  %v4359_v36 = vld [vmem:[#allocation6 + $0x608] sm:$0xff] }
  0xaf   :  { %7179 = vst [vmem:[#allocation167_spill] sm:$0xff] %v4277_v9  ;;  %v4315_v9 = vld [vmem:[#allocation3 + $0x5d8] sm:$0xff] }
  0xb0   :  { %7180 = vst [vmem:[#allocation168_spill] sm:$0xff] %v4281_v56  ;;  %v4313_v56 = vsub.f32 %v4129_v62, %v4137_v24  ;;  %v4333_v62 = vsub.f32 %v4155_v18, %v4163_v3  ;;  %v4341_v24 = vsub.f32 %v4159_v15, %v4167_v11  ;;  %v4353_v18 = vld [vmem:[#allocation3 + $0x610] sm:$0xff]  ;;  %v4355_v3 = vld [vmem:[#allocation6 + $0x5f8] sm:$0xff]  ;;  %v4369_v11 = vsub.f32 %v4189_v52, %v4197_v57  ;;  %v4389_v52 = vld [vmem:[#allocation6 + $0x620] sm:$0xff] }
  0xb1   :  { %7181 = vst [vmem:[#allocation169_spill] sm:$0xff] %v4301_v60  ;;  %v4351_v60 = vld [vmem:[#allocation3 + $0x608] sm:$0xff]  ;;  %v4361_v15 = vld [vmem:[#allocation6 + $0x610] sm:$0xff] }
  0xb2   :  { %7182 = vst [vmem:[#allocation170_spill] sm:$0xff] %v4305_v31  ;;  %v4349_v31 = vld [vmem:[#allocation3 + $0x600] sm:$0xff]  ;;  %v4391_v57 = vld [vmem:[#allocation6 + $0x628] sm:$0xff] }
  0xb3   :  { %7183 = vst [vmem:[#allocation171_spill] sm:$0xff] %v4309_v55  ;;  %v4347_v55 = vld [vmem:[#allocation3 + $0x5f8] sm:$0xff] }
  0xb4   :  { %7184 = vst [vmem:[#allocation172_spill] sm:$0xff] %v4313_v56  ;;  %v4345_v56 = vsub.f32 %v4161_v14, %v4169_v34  ;;  %v4365_v14 = vsub.f32 %v4187_v26, %v4195_v28  ;;  %v4373_v34 = vsub.f32 %v4191_v38, %v4199_v54  ;;  %v4385_v26 = vld [vmem:[#allocation3 + $0x630] sm:$0xff]  ;;  %v4387_v28 = vld [vmem:[#allocation6 + $0x618] sm:$0xff]  ;;  %v4401_v54 = vsub.f32 %v4221_v47, %v4229_v33  ;;  %v4421_v47 = vld [vmem:[#allocation6 + $0x640] sm:$0xff] }
  0xb5   :  { %7185 = vst [vmem:[#allocation173_spill] sm:$0xff] %v4333_v62  ;;  %v4383_v62 = vld [vmem:[#allocation3 + $0x628] sm:$0xff]  ;;  %v4393_v38 = vld [vmem:[#allocation6 + $0x630] sm:$0xff] }
  0xb6   :  { %7186 = vst [vmem:[#allocation174_spill] sm:$0xff] %v4337_v51  ;;  %v4381_v51 = vld [vmem:[#allocation3 + $0x620] sm:$0xff]  ;;  %v4423_v33 = vld [vmem:[#allocation6 + $0x648] sm:$0xff] }
  0xb7   :  { %7187 = vst [vmem:[#allocation175_spill] sm:$0xff] %v4341_v24  ;;  %v4379_v24 = vld [vmem:[#allocation3 + $0x618] sm:$0xff] }
  0xb8   :  { %7188 = vst [vmem:[#allocation176_spill] sm:$0xff] %v4345_v56  ;;  %v4377_v56 = vsub.f32 %v4193_v29, %v4201_v53  ;;  %v4397_v29 = vsub.f32 %v4219_v22, %v4227_v40  ;;  %v4405_v53 = vsub.f32 %v4223_v35, %v4231_v2  ;;  %v4417_v22 = vld [vmem:[#allocation3 + $0x650] sm:$0xff]  ;;  %v4419_v40 = vld [vmem:[#allocation6 + $0x638] sm:$0xff]  ;;  %v4433_v2 = vsub.f32 %v4253_v59, %v4261_v10  ;;  %v4453_v59 = vld [vmem:[#allocation6 + $0x660] sm:$0xff] }
  0xb9   :  { %7189 = vst [vmem:[#allocation177_spill] sm:$0xff] %v4365_v14  ;;  %v4415_v14 = vld [vmem:[#allocation3 + $0x648] sm:$0xff]  ;;  %v4425_v35 = vld [vmem:[#allocation6 + $0x650] sm:$0xff] }
  0xba   :  { %7190 = vst [vmem:[#allocation178_spill] sm:$0xff] %v4369_v11  ;;  %v4413_v11 = vld [vmem:[#allocation3 + $0x640] sm:$0xff]  ;;  %v4455_v10 = vld [vmem:[#allocation6 + $0x668] sm:$0xff] }
  0xbb   :  { %7191 = vst [vmem:[#allocation179_spill] sm:$0xff] %v4373_v34  ;;  %v4411_v34 = vld [vmem:[#allocation3 + $0x638] sm:$0xff] }
  0xbc   :  { %7192 = vst [vmem:[#allocation180_spill] sm:$0xff] %v4377_v56  ;;  %v4409_v56 = vsub.f32 %v4225_v20, %v4233_v48  ;;  %v4429_v20 = vsub.f32 %v4251_v13, %v4259_v37  ;;  %v4437_v48 = vsub.f32 %v4255_v50, %v4263_v8  ;;  %v4449_v13 = vld [vmem:[#allocation3 + $0x670] sm:$0xff]  ;;  %v4451_v37 = vld [vmem:[#allocation6 + $0x658] sm:$0xff]  ;;  %v4465_v8 = vsub.f32 %v4285_v7, %v4293_v0  ;;  %v4485_v7 = vld [vmem:[#allocation6 + $0x680] sm:$0xff] }
  0xbd   :  { %7193 = vst [vmem:[#allocation181_spill] sm:$0xff] %v4397_v29  ;;  %v4447_v29 = vld [vmem:[#allocation3 + $0x668] sm:$0xff]  ;;  %v4457_v50 = vld [vmem:[#allocation6 + $0x670] sm:$0xff] }
  0xbe   :  { %7194 = vst [vmem:[#allocation182_spill] sm:$0xff] %v4401_v54  ;;  %v4445_v54 = vld [vmem:[#allocation3 + $0x660] sm:$0xff]  ;;  %v4487_v0 = vld [vmem:[#allocation6 + $0x688] sm:$0xff] }
  0xbf   :  { %7195 = vst [vmem:[#allocation183_spill] sm:$0xff] %v4405_v53  ;;  %v4443_v53 = vld [vmem:[#allocation3 + $0x658] sm:$0xff] }
  0xc0   :  { %7196 = vst [vmem:[#allocation184_spill] sm:$0xff] %v4409_v56  ;;  %v4441_v56 = vsub.f32 %v4257_v21, %v4265_v41  ;;  %v4461_v21 = vsub.f32 %v4283_v32, %v4291_v5  ;;  %v4469_v41 = vsub.f32 %v4287_v4, %v4295_v27  ;;  %v4481_v32 = vld [vmem:[#allocation3 + $0x690] sm:$0xff]  ;;  %v4483_v5 = vld [vmem:[#allocation6 + $0x678] sm:$0xff]  ;;  %v4497_v27 = vsub.f32 %v4317_v19, %v4325_v23  ;;  %v4517_v19 = vld [vmem:[#allocation6 + $0x6a0] sm:$0xff] }
  0xc1   :  { %7197 = vst [vmem:[#allocation185_spill] sm:$0xff] %v4429_v20  ;;  %v4479_v20 = vld [vmem:[#allocation3 + $0x688] sm:$0xff]  ;;  %v4489_v4 = vld [vmem:[#allocation6 + $0x690] sm:$0xff] }
  0xc2   :  { %7198 = vst [vmem:[#allocation186_spill] sm:$0xff] %v4433_v2  ;;  %v4477_v2 = vld [vmem:[#allocation3 + $0x680] sm:$0xff]  ;;  %v4519_v23 = vld [vmem:[#allocation6 + $0x6a8] sm:$0xff] }
  0xc3   :  { %7199 = vst [vmem:[#allocation187_spill] sm:$0xff] %v4437_v48  ;;  %v4475_v48 = vld [vmem:[#allocation3 + $0x678] sm:$0xff] }
  0xc4   :  { %7200 = vst [vmem:[#allocation188_spill] sm:$0xff] %v4441_v56  ;;  %v4473_v56 = vsub.f32 %v4289_v1, %v4297_v6  ;;  %v4493_v1 = vsub.f32 %v4315_v9, %v4323_v25  ;;  %v4501_v6 = vsub.f32 %v4319_v58, %v4327_v39  ;;  %v4513_v9 = vld [vmem:[#allocation3 + $0x6b0] sm:$0xff]  ;;  %v4515_v25 = vld [vmem:[#allocation6 + $0x698] sm:$0xff]  ;;  %v4529_v39 = vsub.f32 %v4349_v31, %v4357_v30  ;;  %v551_v31 = vld [vmem:[#allocation6 + $0x6c8] sm:$0xff] }
  0xc5   :  { %7201 = vst [vmem:[#allocation189_spill] sm:$0xff] %v4461_v21  ;;  %v4511_v21 = vld [vmem:[#allocation3 + $0x6a8] sm:$0xff]  ;;  %v4521_v58 = vld [vmem:[#allocation6 + $0x6b0] sm:$0xff] }
  0xc6   :  { %7202 = vst [vmem:[#allocation190_spill] sm:$0xff] %v4465_v8  ;;  %v4509_v8 = vld [vmem:[#allocation3 + $0x6a0] sm:$0xff]  ;;  %v552_v30 = vld [vmem:[#allocation6 + $0x6d0] sm:$0xff] }
  0xc7   :  { %7203 = vst [vmem:[#allocation191_spill] sm:$0xff] %v4469_v41  ;;  %v4507_v41 = vld [vmem:[#allocation3 + $0x698] sm:$0xff] }
  0xc8   :  { %7204 = vst [vmem:[#allocation192_spill] sm:$0xff] %v4473_v56  ;;  %v4505_v56 = vsub.f32 %v4321_v61, %v4329_v63  ;;  %v4525_v61 = vsub.f32 %v4347_v55, %v4355_v3  ;;  %v4533_v63 = vsub.f32 %v4351_v60, %v4359_v36  ;;  %v4545_v55 = vld [vmem:[#allocation3 + $0x6d0] sm:$0xff]  ;;  %v549_v3 = vld [vmem:[#allocation6 + $0x6b8] sm:$0xff]  ;;  %v4549_v60 = vsub.f32 %v4379_v24, %v4387_v28 }
  0xc9   :  { %7205 = vst [vmem:[#allocation193_spill] sm:$0xff] %v4493_v1  ;;  %v4543_v1 = vld [vmem:[#allocation3 + $0x6c8] sm:$0xff]  ;;  %v4557_v36 = vsub.f32 %v4383_v62, %v4391_v57  ;;  %v4569_v24 = vld [vmem:[#allocation3 + $0x6f0] sm:$0xff]  ;;  %v553_v28 = vld [vmem:[#allocation6 + $0x6d8] sm:$0xff]  ;;  %v4573_v62 = vsub.f32 %v4411_v34, %v4419_v40  ;;  %v4581_v57 = vsub.f32 %v4415_v14, %v4423_v33  ;;  %v4597_v14 = vsub.f32 %v4443_v53, %v4451_v37 }
  0xca   :  { %7206 = vst [vmem:[#allocation194_spill] sm:$0xff] %v4497_v27  ;;  %v4541_v27 = vld [vmem:[#allocation3 + $0x6c0] sm:$0xff]  ;;  %v4593_v34 = vld [vmem:[#allocation3 + $0x710] sm:$0xff]  ;;  %v557_v40 = vld [vmem:[#allocation6 + $0x6f8] sm:$0xff]  ;;  %v4605_v33 = vsub.f32 %v4447_v29, %v4455_v10  ;;  %v4621_v29 = vsub.f32 %v4475_v48, %v4483_v5  ;;  %v4629_v10 = vsub.f32 %v4479_v20, %v4487_v0  ;;  %v4637_v5 = vsub.f32 %v4507_v41, %v4515_v25 }
  0xcb   :  { %7207 = vst [vmem:[#allocation195_spill] sm:$0xff] %v4501_v6  ;;  %v4539_v6 = vld [vmem:[#allocation3 + $0x6b8] sm:$0xff]  ;;  %v4617_v53 = vld [vmem:[#allocation3 + $0x730] sm:$0xff]  ;;  %v567_v48 = vld [vmem:[#allocation6 + $0x748] sm:$0xff]  ;;  %v4645_v20 = vsub.f32 %v4511_v21, %v4519_v23  ;;  %v4658_v21 = vsub.f32 %v4543_v1, %v551_v31 }
  0xcc   :  { %7208 = vst [vmem:[#allocation196_spill] sm:$0xff] %v4505_v56  ;;  %v4537_v56 = vsub.f32 %v4353_v18, %v4361_v15  ;;  %v4553_v18 = vsub.f32 %v4381_v51, %v4389_v52  ;;  %v4561_v15 = vsub.f32 %v4385_v26, %v4393_v38  ;;  %v555_v51 = vld [vmem:[#allocation6 + $0x6e8] sm:$0xff]  ;;  %v556_v52 = vld [vmem:[#allocation6 + $0x6f0] sm:$0xff]  ;;  %v4577_v26 = vsub.f32 %v4413_v11, %v4421_v47  ;;  %v561_v37 = vld [vmem:[#allocation6 + $0x718] sm:$0xff] }
  0xcd   :  { %7209 = vst [vmem:[#allocation197_spill] sm:$0xff] %v4525_v61  ;;  %v550_v61 = vld [vmem:[#allocation6 + $0x6c0] sm:$0xff]  ;;  %v4585_v38 = vsub.f32 %v4417_v22, %v4425_v35  ;;  %v559_v11 = vld [vmem:[#allocation6 + $0x708] sm:$0xff]  ;;  %v560_v47 = vld [vmem:[#allocation6 + $0x710] sm:$0xff]  ;;  %v4601_v22 = vsub.f32 %v4445_v54, %v4453_v59  ;;  %v4609_v35 = vsub.f32 %v4449_v13, %v4457_v50  ;;  %v4625_v13 = vsub.f32 %v4477_v2, %v4485_v7 }
  0xce   :  { %7210 = vst [vmem:[#allocation198_spill] sm:$0xff] %v4529_v39  ;;  %v4567_v39 = vld [vmem:[#allocation3 + $0x6e8] sm:$0xff]  ;;  %v564_v59 = vld [vmem:[#allocation6 + $0x730] sm:$0xff]  ;;  %v4633_v50 = vsub.f32 %v4481_v32, %v4489_v4  ;;  %v4641_v2 = vsub.f32 %v4509_v8, %v4517_v19  ;;  %v4649_v32 = vsub.f32 %v4513_v9, %v4521_v58  ;;  %v313_v7 = vld [vmem:[#allocation3 + $0x758] sm:$0xff]  ;;  %v4652_v25 = vsub.f32 %v4539_v6, %v549_v3 }
  0xcf   :  { %7211 = vst [vmem:[#allocation199_spill] sm:$0xff] %v4533_v63  ;;  %v4565_v63 = vld [vmem:[#allocation3 + $0x6e0] sm:$0xff]  ;;  %v563_v54 = vld [vmem:[#allocation6 + $0x728] sm:$0xff]  ;;  %v4655_v8 = vsub.f32 %v4541_v27, %v550_v61  ;;  %v4661_v19 = vsub.f32 %v4545_v55, %v552_v30  ;;  %v317_v9 = vld [vmem:[#allocation3 + $0x778] sm:$0xff]  ;;  %v4670_v27 = vsub.f32 %v4567_v39, %v555_v51  ;;  %v4673_v1 = vsub.f32 %v4569_v24, %v556_v52 }
  0xd0   :  { %7212 = vst [vmem:[#allocation200_spill] sm:$0xff] %v4537_v56  ;;  %v4563_v56 = vld [vmem:[#allocation3 + $0x6d8] sm:$0xff]  ;;  %v314_v0 = vld [vmem:[#allocation3 + $0x760] sm:$0xff]  ;;  %v315_v4 = vld [vmem:[#allocation3 + $0x768] sm:$0xff]  ;;  %v4685_v39 = vsub.f32 %v4593_v34, %v560_v47 }
  0xd1   :  { %7213 = vst [vmem:[#allocation201_spill] sm:$0xff] %v4549_v60  ;;  %v554_v60 = vld [vmem:[#allocation6 + $0x6e0] sm:$0xff]  ;;  %v319_v58 = vld [vmem:[#allocation3 + $0x788] sm:$0xff]  ;;  %v321_v61 = vld [vmem:[#allocation3 + $0x798] sm:$0xff] }
  0xd2   :  { %7214 = vst [vmem:[#allocation202_spill] sm:$0xff] %v4553_v18  ;;  %v4591_v18 = vld [vmem:[#allocation3 + $0x708] sm:$0xff]  ;;  %v570_v41 = vld [vmem:[#allocation6 + $0x760] sm:$0xff]  ;;  %v4667_v6 = vsub.f32 %v4565_v63, %v554_v60  ;;  %v324_v31 = vld [vmem:[#allocation3 + $0x7b0] sm:$0xff] }
  0xd3   :  { %7215 = vst [vmem:[#allocation203_spill] sm:$0xff] %v4557_v36  ;;  %v4589_v36 = vld [vmem:[#allocation3 + $0x700] sm:$0xff]  ;;  %v323_v3 = vld [vmem:[#allocation3 + $0x7a8] sm:$0xff]  ;;  %v4682_v63 = vsub.f32 %v4591_v18, %v559_v11  ;;  %v325_v60 = vld [vmem:[#allocation3 + $0x7b8] sm:$0xff]  ;;  %v4697_v18 = vsub.f32 %v4617_v53, %v564_v59  ;;  %v4709_v59 = vsub.f32 %v314_v0, %v570_v41 }
  0xd4   :  { %7216 = vst [vmem:[#allocation204_spill] sm:$0xff] %v4561_v15  ;;  %v4587_v15 = vld [vmem:[#allocation3 + $0x6f8] sm:$0xff]  ;;  %v318_v23 = vld [vmem:[#allocation3 + $0x780] sm:$0xff]  ;;  %v328_v51 = vld [vmem:[#allocation3 + $0x7d0] sm:$0xff] }
  0xd5   :  { %7217 = vst [vmem:[#allocation205_spill] sm:$0xff] %v4573_v62  ;;  %v558_v62 = vld [vmem:[#allocation6 + $0x700] sm:$0xff]  ;;  %v577_v52 = vld [vmem:[#allocation6 + $0x798] sm:$0xff]  ;;  %v332_v11 = vld [vmem:[#allocation3 + $0x7f0] sm:$0xff] }
  0xd6   :  { %7218 = vst [vmem:[#allocation206_spill] sm:$0xff] %v4577_v26  ;;  %v4615_v26 = vld [vmem:[#allocation3 + $0x728] sm:$0xff]  ;;  %v322_v55 = vld [vmem:[#allocation3 + $0x7a0] sm:$0xff]  ;;  %v580_v47 = vld [vmem:[#allocation6 + $0x7b0] sm:$0xff] }
  0xd7   :  { %7219 = vst [vmem:[#allocation207_spill] sm:$0xff] %v4581_v57  ;;  %v4613_v57 = vld [vmem:[#allocation3 + $0x720] sm:$0xff] }
  0xd8   :  { %7220 = vst [vmem:[#allocation208_spill] sm:$0xff] %v4585_v38  ;;  %v4611_v38 = vld [vmem:[#allocation3 + $0x718] sm:$0xff]  ;;  %v574_v30 = vld [vmem:[#allocation6 + $0x780] sm:$0xff] }
  0xd9   :  { %7221 = vst [vmem:[#allocation209_spill] sm:$0xff] %v4597_v14  ;;  %v562_v14 = vld [vmem:[#allocation6 + $0x720] sm:$0xff] }
  0xda   :  { %7222 = vst [vmem:[#allocation210_spill] sm:$0xff] %v4601_v22  ;;  %v311_v22 = vld [vmem:[#allocation3 + $0x748] sm:$0xff]  ;;  %v326_v24 = vld [vmem:[#allocation3 + $0x7c0] sm:$0xff] }
  0xdb   :  { %7223 = vst [vmem:[#allocation211_spill] sm:$0xff] %v4605_v33  ;;  %v310_v33 = vld [vmem:[#allocation3 + $0x740] sm:$0xff] }
  0xdc   :  { %7224 = vst [vmem:[#allocation212_spill] sm:$0xff] %v4609_v35  ;;  %v309_v35 = vld [vmem:[#allocation3 + $0x738] sm:$0xff]  ;;  %v330_v34 = vld [vmem:[#allocation3 + $0x7e0] sm:$0xff] }
  0xdd   :  { %7225 = vst [vmem:[#allocation213_spill] sm:$0xff] %v4621_v29  ;;  %v4664_v29 = vsub.f32 %v4563_v56, %v553_v28  ;;  %v4679_v56 = vsub.f32 %v4589_v36, %v558_v62  ;;  %v327_v28 = vld [vmem:[#allocation3 + $0x7c8] sm:$0xff]  ;;  %v4694_v36 = vsub.f32 %v4615_v26, %v563_v54  ;;  %v329_v62 = vld [vmem:[#allocation3 + $0x7d8] sm:$0xff] }
  0xde   :  { %7226 = vst [vmem:[#allocation214_spill] sm:$0xff] %v4625_v13  ;;  %v569_v13 = vld [vmem:[#allocation6 + $0x758] sm:$0xff]  ;;  %v583_v26 = vld [vmem:[#allocation6 + $0x7c8] sm:$0xff] }
  0xdf   :  { %7227 = vst [vmem:[#allocation215_spill] sm:$0xff] %v4629_v10  ;;  %v568_v10 = vld [vmem:[#allocation6 + $0x750] sm:$0xff]  ;;  %v585_v54 = vld [vmem:[#allocation6 + $0x7d8] sm:$0xff]  ;;  %v4707_v53 = vsub.f32 %v313_v7, %v569_v13  ;;  %v4735_v0 = vsub.f32 %v327_v28, %v583_v26  ;;  %v7273_v26 = vld [vmem:[#allocation67_spill] sm:$0xff] }
  0xe0   :  { %7228 = vst [vmem:[#allocation216_spill] sm:$0xff] %v4633_v50  ;;  %v316_v50 = vld [vmem:[#allocation3 + $0x770] sm:$0xff]  ;;  %v589_v13 = vld [vmem:[#allocation6 + $0x7f8] sm:$0xff] }
  0xe1   :  { %7229 = vst [vmem:[#allocation217_spill] sm:$0xff] %v4637_v5  ;;  %v573_v5 = vld [vmem:[#allocation6 + $0x778] sm:$0xff] }
  0xe2   :  { %7230 = vst [vmem:[#allocation218_spill] sm:$0xff] %v4641_v2  ;;  %v572_v2 = vld [vmem:[#allocation6 + $0x770] sm:$0xff] }
  0xe3   :  { %7231 = vst [vmem:[#allocation219_spill] sm:$0xff] %v4645_v20  ;;  %v571_v20 = vld [vmem:[#allocation6 + $0x768] sm:$0xff] }
  0xe4   :  { %7232 = vst [vmem:[#allocation220_spill] sm:$0xff] %v4649_v32  ;;  %v320_v32 = vld [vmem:[#allocation3 + $0x790] sm:$0xff] }
  0xe5   :  { %7233 = vst [vmem:[#allocation221_spill] sm:$0xff] %v4655_v8  ;;  %v4676_v8 = vsub.f32 %v4587_v15, %v557_v40  ;;  %v4691_v15 = vsub.f32 %v4613_v57, %v562_v14  ;;  %v331_v40 = vld [vmem:[#allocation3 + $0x7e8] sm:$0xff]  ;;  %v4705_v57 = vsub.f32 %v312_v16, %v568_v10  ;;  %v584_v14 = vld [vmem:[#allocation6 + $0x7d0] sm:$0xff]  ;;  %v333_v10 = vld [vmem:[#allocation3 + $0x7f8] sm:$0xff] }
  0xe6   :  { %7234 = vst [vmem:[#allocation222_spill] sm:$0xff] %v4658_v21  ;;  %v576_v21 = vld [vmem:[#allocation6 + $0x790] sm:$0xff] }
  0xe7   :  { %7235 = vst [vmem:[#allocation223_spill] sm:$0xff] %v4661_v19  ;;  %v575_v19 = vld [vmem:[#allocation6 + $0x788] sm:$0xff] }
  0xe8   :  { %7236 = vst [vmem:[#allocation224_spill] sm:$0xff] %v4667_v6  ;;  %v4688_v6 = vsub.f32 %v4611_v38, %v561_v37  ;;  %v4701_v38 = vsub.f32 %v310_v33, %v566_v12  ;;  %v4703_v37 = vsub.f32 %v311_v22, %v567_v48  ;;  %v4715_v12 = vsub.f32 %v317_v9, %v573_v5 }
  0xe9   :  { %7237 = vst [vmem:[#allocation225_spill] sm:$0xff] %v4670_v27  ;;  %v579_v27 = vld [vmem:[#allocation6 + $0x7a8] sm:$0xff]  ;;  %v4717_v22 = vsub.f32 %v318_v23, %v574_v30  ;;  %v4719_v16 = vsub.f32 %v319_v58, %v575_v19  ;;  %v4721_v33 = vsub.f32 %v320_v32, %v576_v21  ;;  %v4723_v48 = vsub.f32 %v321_v61, %v577_v52  ;;  %v7257_v30 = vld [vmem:[#allocation59_spill] sm:$0xff] }
  0xea   :  { %7238 = vst [vmem:[#allocation226_spill] sm:$0xff] %v4673_v1  ;;  %v578_v1 = vld [vmem:[#allocation6 + $0x7a0] sm:$0xff]  ;;  %v4739_v32 = vsub.f32 %v329_v62, %v585_v54  ;;  %v4747_v9 = vsub.f32 %v333_v10, %v589_v13  ;;  %v4751_v23 = vmul.f32 %v3179_v43, %v3179_v43  ;;  %v4755_v58 = vmul.f32 %v3182_v44, %v3182_v44  ;;  %v7275_v54 = vld [vmem:[#allocation68_spill] sm:$0xff]  ;;  %v7279_v13 = vld [vmem:[#allocation70_spill] sm:$0xff] }
  0xeb   :  { %7239 = vst [vmem:[#allocation227_spill] sm:$0xff] %v4679_v56  ;;  %v4699_v56 = vsub.f32 %v309_v35, %v565_v49  ;;  %v587_v49 = vld [vmem:[#allocation6 + $0x7e8] sm:$0xff]  ;;  %v588_v35 = vld [vmem:[#allocation6 + $0x7f0] sm:$0xff]  ;;  %v4725_v7 = vsub.f32 %v322_v55, %v578_v1  ;;  %v4763_v1 = vmul.f32 %v3188_v46, %v3188_v46  ;;  %v4767_v61 = vmul.f32 %v3373_v42, %v3373_v42  ;;  %v7251_v55 = vld [vmem:[#allocation55_spill] sm:$0xff] }
  0xec   :  { %7240 = vst [vmem:[#allocation228_spill] sm:$0xff] %v4682_v63  ;;  %v582_v63 = vld [vmem:[#allocation6 + $0x7c0] sm:$0xff]  ;;  %v4743_v21 = vsub.f32 %v331_v40, %v587_v49  ;;  %v4745_v19 = vsub.f32 %v332_v11, %v588_v35  ;;  %v4771_v43 = vmul.f32 %v3377_v17, %v3377_v17  ;;  %v4775_v44 = vmul.f32 %v7251_v55, %v7251_v55  ;;  %v7271_v11 = vld [vmem:[#allocation66_spill] sm:$0xff]  ;;  %v7277_v35 = vld [vmem:[#allocation69_spill] sm:$0xff] }
  0xed   :  { %7241 = vst [vmem:[#allocation229_spill] sm:$0xff] %v4685_v39  ;;  %v581_v39 = vld [vmem:[#allocation6 + $0x7b8] sm:$0xff]  ;;  %v4733_v5 = vsub.f32 %v326_v24, %v582_v63  ;;  %v4787_v42 = vmul.f32 %v7257_v30, %v7257_v30  ;;  %v7259_v63 = vld [vmem:[#allocation60_spill] sm:$0xff]  ;;  %v4823_v49 = vmul.f32 %v7275_v54, %v7275_v54  ;;  %v4827_v10 = vmul.f32 %v7277_v35, %v7277_v35  ;;  %v7293_v35 = vld [vmem:[#allocation77_spill] sm:$0xff] }
  0xee   :  { %7242 = vst [vmem:[#allocation230_spill] sm:$0xff] %v4691_v15  ;;  %v586_v15 = vld [vmem:[#allocation6 + $0x7e0] sm:$0xff]  ;;  %v4791_v17 = vmul.f32 %v7259_v63, %v7259_v63  ;;  %v7263_v24 = vld [vmem:[#allocation62_spill] sm:$0xff]  ;;  %v4831_v55 = vmul.f32 %v7279_v13, %v7279_v13  ;;  %v7283_v30 = vld [vmem:[#allocation72_spill] sm:$0xff]  ;;  %v4859_v13 = vmul.f32 %v7293_v35, %v7293_v35 }
  0xef   :  { %7243 = vst [vmem:[#allocation231_spill] sm:$0xff] %v4694_v36  ;;  %v4713_v36 = vsub.f32 %v316_v50, %v572_v2  ;;  %v4729_v50 = vsub.f32 %v324_v31, %v580_v47  ;;  %v4731_v2 = vsub.f32 %v325_v60, %v581_v39  ;;  %v4741_v41 = vsub.f32 %v330_v34, %v586_v15  ;;  %v7255_v31 = vld [vmem:[#allocation58_spill] sm:$0xff]  ;;  %v7261_v39 = vld [vmem:[#allocation61_spill] sm:$0xff]  ;;  %v7267_v15 = vld [vmem:[#allocation64_spill] sm:$0xff] }
  0xf0   :  { %7244 = vst [vmem:[#allocation232_spill] sm:$0xff] %v4697_v18  ;;  %v4711_v18 = vsub.f32 %v315_v4, %v571_v20  ;;  %v4727_v20 = vsub.f32 %v323_v3, %v579_v27  ;;  %v4737_v4 = vsub.f32 %v328_v51, %v584_v14  ;;  %v4759_v27 = vmul.f32 %v3185_v45, %v3185_v45  ;;  %v7253_v3 = vld [vmem:[#allocation57_spill] sm:$0xff]  ;;  %v7265_v51 = vld [vmem:[#allocation63_spill] sm:$0xff] }
  0xf1   :  { %7245 = vst [vmem:[#allocation233_spill] sm:$0xff] %v4751_v23  ;;  %v4779_v45 = vmul.f32 %v7253_v3, %v7253_v3  ;;  %v4783_v46 = vmul.f32 %v7255_v31, %v7255_v31  ;;  %v4795_v60 = vmul.f32 %v7261_v39, %v7261_v39  ;;  %v4799_v28 = vmul.f32 %v7263_v24, %v7263_v24  ;;  %v7269_v34 = vld [vmem:[#allocation65_spill] sm:$0xff]  ;;  %v7281_v3 = vld [vmem:[#allocation71_spill] sm:$0xff] }
  0xf2   :  { %7246 = vst [vmem:[#allocation234_spill] sm:$0xff] %v4755_v58  ;;  %v4803_v52 = vmul.f32 %v7265_v51, %v7265_v51  ;;  %v4807_v62 = vmul.f32 %v7267_v15, %v7267_v15  ;;  %v4811_v40 = vmul.f32 %v7269_v34, %v7269_v34  ;;  %v4815_v47 = vmul.f32 %v7271_v11, %v7271_v11  ;;  %v7285_v39 = vld [vmem:[#allocation73_spill] sm:$0xff]  ;;  %v7287_v51 = vld [vmem:[#allocation74_spill] sm:$0xff]  ;;  %v7289_v34 = vld [vmem:[#allocation75_spill] sm:$0xff] }
  0xf3   :  { %7247 = vst [vmem:[#allocation235_spill] sm:$0xff] %v4759_v27  ;;  %v4819_v14 = vmul.f32 %v7273_v26, %v7273_v26  ;;  %v4835_v31 = vmul.f32 %v7281_v3, %v7281_v3  ;;  %v4839_v63 = vmul.f32 %v7283_v30, %v7283_v30  ;;  %v4843_v24 = vmul.f32 %v7285_v39, %v7285_v39  ;;  %v7291_v26 = vld [vmem:[#allocation76_spill] sm:$0xff]  ;;  %v7295_v3 = vld [vmem:[#allocation78_spill] sm:$0xff]  ;;  %v7297_v39 = vld [vmem:[#allocation79_spill] sm:$0xff] }
  0xf4   :  { %7248 = vst [vmem:[#allocation236_spill] sm:$0xff] %v4763_v1  ;;  %v4847_v15 = vmul.f32 %v7287_v51, %v7287_v51  ;;  %v4851_v11 = vmul.f32 %v7289_v34, %v7289_v34  ;;  %v4855_v54 = vmul.f32 %v7291_v26, %v7291_v26  ;;  %v4863_v30 = vmul.f32 %v7295_v3, %v7295_v3  ;;  %v7475_v1 = vld [vmem:[#allocation46_spill] sm:$0xff]  ;;  %v7477_v27 = vld [vmem:[#allocation47_spill] sm:$0xff]  ;;  %v7479_v58 = vld [vmem:[#allocation48_spill] sm:$0xff] }
  0xf5   :  { %7249 = vst [vmem:[#allocation237_spill] sm:$0xff] %v4767_v61  ;;  %v4867_v51 = vmul.f32 %v7297_v39, %v7297_v39  ;;  %v7329_v61 = vld [vmem:[#allocation95_spill] sm:$0xff]  ;;  %v7481_v23 = vld [vmem:[#allocation49_spill] sm:$0xff] }
  0xf6   :  { %7250 = vst [vmem:[#allocation238_spill] sm:$0xff] %v4771_v43  ;;  %v7327_v43 = vld [vmem:[#allocation94_spill] sm:$0xff] }
  0xf7   :  { %7252 = vst [vmem:[#allocation55_spill] sm:$0xff] %v4775_v44  ;;  %v7325_v44 = vld [vmem:[#allocation93_spill] sm:$0xff] }
  0xf8   :  { %7254 = vst [vmem:[#allocation57_spill] sm:$0xff] %v4779_v45  ;;  %v7323_v45 = vld [vmem:[#allocation92_spill] sm:$0xff] }
  0xf9   :  { %7256 = vst [vmem:[#allocation58_spill] sm:$0xff] %v4783_v46  ;;  %v7321_v46 = vld [vmem:[#allocation91_spill] sm:$0xff] }
  0xfa   :  { %7258 = vst [vmem:[#allocation59_spill] sm:$0xff] %v4787_v42  ;;  %v7319_v42 = vld [vmem:[#allocation90_spill] sm:$0xff] }
  0xfb   :  { %7260 = vst [vmem:[#allocation60_spill] sm:$0xff] %v4791_v17  ;;  %v7317_v17 = vld [vmem:[#allocation89_spill] sm:$0xff] }
  0xfc   :  { %7262 = vst [vmem:[#allocation61_spill] sm:$0xff] %v4795_v60  ;;  %v7315_v60 = vld [vmem:[#allocation88_spill] sm:$0xff] }
  0xfd   :  { %7264 = vst [vmem:[#allocation62_spill] sm:$0xff] %v4799_v28  ;;  %v7313_v28 = vld [vmem:[#allocation87_spill] sm:$0xff] }
  0xfe   :  { %7266 = vst [vmem:[#allocation63_spill] sm:$0xff] %v4803_v52  ;;  %v7311_v52 = vld [vmem:[#allocation86_spill] sm:$0xff] }
  0xff   :  { %7268 = vst [vmem:[#allocation64_spill] sm:$0xff] %v4807_v62  ;;  %v7309_v62 = vld [vmem:[#allocation85_spill] sm:$0xff] }
 0x100   :  { %7270 = vst [vmem:[#allocation65_spill] sm:$0xff] %v4811_v40  ;;  %v7307_v40 = vld [vmem:[#allocation84_spill] sm:$0xff] }
 0x101   :  { %7272 = vst [vmem:[#allocation66_spill] sm:$0xff] %v4815_v47  ;;  %v7305_v47 = vld [vmem:[#allocation83_spill] sm:$0xff]  ;;  %v4887_v39 = vmul.f32 %v7307_v40, %v7307_v40  ;;  %v4907_v40 = vmul.f32 %v7317_v17, %v7317_v17  ;;  %v4927_v17 = vmul.f32 %v7327_v43, %v7327_v43 }
 0x102   :  { %7274 = vst [vmem:[#allocation67_spill] sm:$0xff] %v4819_v14  ;;  %v7303_v14 = vld [vmem:[#allocation82_spill] sm:$0xff]  ;;  %v4883_v3 = vmul.f32 %v7305_v47, %v7305_v47  ;;  %v4903_v47 = vmul.f32 %v7315_v60, %v7315_v60  ;;  %v4923_v60 = vmul.f32 %v7325_v44, %v7325_v44 }
 0x103   :  { %7276 = vst [vmem:[#allocation68_spill] sm:$0xff] %v4823_v49  ;;  %v7301_v49 = vld [vmem:[#allocation81_spill] sm:$0xff]  ;;  %v4879_v35 = vmul.f32 %v7303_v14, %v7303_v14  ;;  %v4899_v14 = vmul.f32 %v7313_v28, %v7313_v28  ;;  %v4919_v28 = vmul.f32 %v7323_v45, %v7323_v45 }
 0x104   :  { %7278 = vst [vmem:[#allocation69_spill] sm:$0xff] %v4827_v10  ;;  %v7299_v10 = vld [vmem:[#allocation80_spill] sm:$0xff]  ;;  %v4875_v26 = vmul.f32 %v7301_v49, %v7301_v49  ;;  %v4895_v49 = vmul.f32 %v7311_v52, %v7311_v52  ;;  %v4915_v52 = vmul.f32 %v7321_v46, %v7321_v46 }
 0x105   :  { %7280 = vst [vmem:[#allocation70_spill] sm:$0xff] %v4831_v55  ;;  %v4871_v34 = vmul.f32 %v7299_v10, %v7299_v10  ;;  %v4891_v10 = vmul.f32 %v7309_v62, %v7309_v62  ;;  %v4911_v62 = vmul.f32 %v7319_v42, %v7319_v42  ;;  %v4931_v42 = vmul.f32 %v7329_v61, %v7329_v61 }
 0x106   :  { %7282 = vst [vmem:[#allocation71_spill] sm:$0xff] %v4835_v31 }
 0x107   :  { %7284 = vst [vmem:[#allocation72_spill] sm:$0xff] %v4839_v63  ;;  %v7631_v63 = vld [vmem:[#allocation225_spill] sm:$0xff] }
 0x108   :  { %7286 = vst [vmem:[#allocation73_spill] sm:$0xff] %v4843_v24  ;;  %v7604_v24 = vld [vmem:[#allocation14_spill] sm:$0xff] }
 0x109   :  { %7288 = vst [vmem:[#allocation74_spill] sm:$0xff] %v4847_v15  ;;  %v7537_v15 = vld [vmem:[#allocation183_spill] sm:$0xff] }
 0x10a   :  { %7290 = vst [vmem:[#allocation75_spill] sm:$0xff] %v4851_v11  ;;  %v7535_v11 = vld [vmem:[#allocation182_spill] sm:$0xff] }
 0x10b   :  { %7292 = vst [vmem:[#allocation76_spill] sm:$0xff] %v4855_v54  ;;  %v7533_v54 = vld [vmem:[#allocation181_spill] sm:$0xff] }
 0x10c   :  { %7294 = vst [vmem:[#allocation77_spill] sm:$0xff] %v4859_v13  ;;  %v7531_v13 = vld [vmem:[#allocation180_spill] sm:$0xff] }
 0x10d   :  { %7296 = vst [vmem:[#allocation78_spill] sm:$0xff] %v4863_v30  ;;  %v7473_v30 = vld [vmem:[#allocation45_spill] sm:$0xff] }
 0x10e   :  { %7298 = vst [vmem:[#allocation79_spill] sm:$0xff] %v4867_v51  ;;  %v7471_v51 = vld [vmem:[#allocation44_spill] sm:$0xff] }
 0x10f   :  { %7300 = vst [vmem:[#allocation80_spill] sm:$0xff] %v4871_v34  ;;  %v7470_v34 = vld [vmem:[#allocation43_spill] sm:$0xff] }
 0x110   :  { %7302 = vst [vmem:[#allocation81_spill] sm:$0xff] %v4875_v26  ;;  %v7469_v26 = vld [vmem:[#allocation42_spill] sm:$0xff] }
 0x111   :  { %7304 = vst [vmem:[#allocation82_spill] sm:$0xff] %v4879_v35  ;;  %v7468_v35 = vld [vmem:[#allocation41_spill] sm:$0xff] }
 0x112   :  { %7306 = vst [vmem:[#allocation83_spill] sm:$0xff] %v4883_v3  ;;  %v7467_v3 = vld [vmem:[#allocation40_spill] sm:$0xff] }
 0x113   :  { %7308 = vst [vmem:[#allocation84_spill] sm:$0xff] %v4887_v39  ;;  %v7466_v39 = vld [vmem:[#allocation39_spill] sm:$0xff] }
 0x114   :  { %7310 = vst [vmem:[#allocation85_spill] sm:$0xff] %v4891_v10  ;;  %v7465_v10 = vld [vmem:[#allocation38_spill] sm:$0xff] }
 0x115   :  { %7312 = vst [vmem:[#allocation86_spill] sm:$0xff] %v4895_v49  ;;  %v7464_v49 = vld [vmem:[#allocation37_spill] sm:$0xff] }
 0x116   :  { %7314 = vst [vmem:[#allocation87_spill] sm:$0xff] %v4899_v14  ;;  %v7463_v14 = vld [vmem:[#allocation36_spill] sm:$0xff] }
 0x117   :  { %7316 = vst [vmem:[#allocation88_spill] sm:$0xff] %v4903_v47  ;;  %v7462_v47 = vld [vmem:[#allocation35_spill] sm:$0xff] }
 0x118   :  { %7318 = vst [vmem:[#allocation89_spill] sm:$0xff] %v4907_v40  ;;  %v7461_v40 = vld [vmem:[#allocation34_spill] sm:$0xff] }
 0x119   :  { %7320 = vst [vmem:[#allocation90_spill] sm:$0xff] %v4911_v62  ;;  %v7331_v62 = vld [vmem:[#allocation96_spill] sm:$0xff] }
 0x11a   :  { %7322 = vst [vmem:[#allocation91_spill] sm:$0xff] %v4915_v52  ;;  %v4935_v46 = vmul.f32 %v7331_v62, %v7331_v62  ;;  %v7333_v52 = vld [vmem:[#allocation97_spill] sm:$0xff] }
 0x11b   :  { %7324 = vst [vmem:[#allocation92_spill] sm:$0xff] %v4919_v28  ;;  %v4939_v45 = vmul.f32 %v7333_v52, %v7333_v52  ;;  %v7335_v28 = vld [vmem:[#allocation98_spill] sm:$0xff] }
 0x11c   :  { %7326 = vst [vmem:[#allocation93_spill] sm:$0xff] %v4923_v60  ;;  %v4943_v44 = vmul.f32 %v7335_v28, %v7335_v28  ;;  %v7337_v60 = vld [vmem:[#allocation99_spill] sm:$0xff] }
 0x11d   :  { %7328 = vst [vmem:[#allocation94_spill] sm:$0xff] %v4927_v17  ;;  %v4947_v43 = vmul.f32 %v7337_v60, %v7337_v60  ;;  %v7339_v17 = vld [vmem:[#allocation100_spill] sm:$0xff] }
 0x11e   :  { %7330 = vst [vmem:[#allocation95_spill] sm:$0xff] %v4931_v42  ;;  %v4951_v61 = vmul.f32 %v7339_v17, %v7339_v17  ;;  %v7341_v42 = vld [vmem:[#allocation101_spill] sm:$0xff] }
 0x11f   :  { %7332 = vst [vmem:[#allocation96_spill] sm:$0xff] %v4935_v46  ;;  %v4955_v62 = vmul.f32 %v7341_v42, %v7341_v42  ;;  %v7343_v46 = vld [vmem:[#allocation102_spill] sm:$0xff] }
 0x120   :  { %7334 = vst [vmem:[#allocation97_spill] sm:$0xff] %v4939_v45  ;;  %v4959_v52 = vmul.f32 %v7343_v46, %v7343_v46  ;;  %v7345_v45 = vld [vmem:[#allocation103_spill] sm:$0xff] }
 0x121   :  { %7336 = vst [vmem:[#allocation98_spill] sm:$0xff] %v4943_v44  ;;  %v4963_v28 = vmul.f32 %v7345_v45, %v7345_v45  ;;  %v7347_v44 = vld [vmem:[#allocation104_spill] sm:$0xff] }
 0x122   :  { %7338 = vst [vmem:[#allocation99_spill] sm:$0xff] %v4947_v43  ;;  %v4967_v60 = vmul.f32 %v7347_v44, %v7347_v44  ;;  %v7349_v43 = vld [vmem:[#allocation105_spill] sm:$0xff] }
 0x123   :  { %7340 = vst [vmem:[#allocation100_spill] sm:$0xff] %v4951_v61  ;;  %v4971_v17 = vmul.f32 %v7349_v43, %v7349_v43  ;;  %v7351_v61 = vld [vmem:[#allocation106_spill] sm:$0xff] }
 0x124   :  { %7342 = vst [vmem:[#allocation101_spill] sm:$0xff] %v4955_v62  ;;  %v4975_v42 = vmul.f32 %v7351_v61, %v7351_v61  ;;  %v7353_v62 = vld [vmem:[#allocation107_spill] sm:$0xff] }
 0x125   :  { %7344 = vst [vmem:[#allocation102_spill] sm:$0xff] %v4959_v52  ;;  %v4979_v46 = vmul.f32 %v7353_v62, %v7353_v62  ;;  %v7355_v52 = vld [vmem:[#allocation108_spill] sm:$0xff] }
 0x126   :  { %7346 = vst [vmem:[#allocation103_spill] sm:$0xff] %v4963_v28  ;;  %v4983_v45 = vmul.f32 %v7355_v52, %v7355_v52  ;;  %v7357_v28 = vld [vmem:[#allocation109_spill] sm:$0xff] }
 0x127   :  { %7348 = vst [vmem:[#allocation104_spill] sm:$0xff] %v4967_v60  ;;  %v4987_v44 = vmul.f32 %v7357_v28, %v7357_v28  ;;  %v7359_v60 = vld [vmem:[#allocation110_spill] sm:$0xff] }
 0x128   :  { %7350 = vst [vmem:[#allocation105_spill] sm:$0xff] %v4971_v17  ;;  %v4991_v43 = vmul.f32 %v7359_v60, %v7359_v60  ;;  %v7361_v17 = vld [vmem:[#allocation111_spill] sm:$0xff] }
 0x129   :  { %7352 = vst [vmem:[#allocation106_spill] sm:$0xff] %v4975_v42  ;;  %v4995_v61 = vmul.f32 %v7361_v17, %v7361_v17  ;;  %v7363_v42 = vld [vmem:[#allocation112_spill] sm:$0xff] }
 0x12a   :  { %7354 = vst [vmem:[#allocation107_spill] sm:$0xff] %v4979_v46  ;;  %v4999_v62 = vmul.f32 %v7363_v42, %v7363_v42  ;;  %v7365_v46 = vld [vmem:[#allocation113_spill] sm:$0xff] }
 0x12b   :  { %7356 = vst [vmem:[#allocation108_spill] sm:$0xff] %v4983_v45  ;;  %v5003_v52 = vmul.f32 %v7365_v46, %v7365_v46  ;;  %v7367_v45 = vld [vmem:[#allocation114_spill] sm:$0xff] }
 0x12c   :  { %7358 = vst [vmem:[#allocation109_spill] sm:$0xff] %v4987_v44  ;;  %v5007_v28 = vmul.f32 %v7367_v45, %v7367_v45  ;;  %v7369_v44 = vld [vmem:[#allocation115_spill] sm:$0xff] }
 0x12d   :  { %7360 = vst [vmem:[#allocation110_spill] sm:$0xff] %v4991_v43  ;;  %v5011_v60 = vmul.f32 %v7369_v44, %v7369_v44  ;;  %v7371_v43 = vld [vmem:[#allocation116_spill] sm:$0xff] }
 0x12e   :  { %7362 = vst [vmem:[#allocation111_spill] sm:$0xff] %v4995_v61  ;;  %v5015_v17 = vmul.f32 %v7371_v43, %v7371_v43  ;;  %v7373_v61 = vld [vmem:[#allocation117_spill] sm:$0xff] }
 0x12f   :  { %7364 = vst [vmem:[#allocation112_spill] sm:$0xff] %v4999_v62  ;;  %v5019_v42 = vmul.f32 %v7373_v61, %v7373_v61  ;;  %v7375_v62 = vld [vmem:[#allocation118_spill] sm:$0xff] }
 0x130   :  { %7366 = vst [vmem:[#allocation113_spill] sm:$0xff] %v5003_v52  ;;  %v5023_v46 = vmul.f32 %v7375_v62, %v7375_v62  ;;  %v7377_v52 = vld [vmem:[#allocation119_spill] sm:$0xff] }
 0x131   :  { %7368 = vst [vmem:[#allocation114_spill] sm:$0xff] %v5007_v28  ;;  %v5027_v45 = vmul.f32 %v7377_v52, %v7377_v52  ;;  %v7379_v28 = vld [vmem:[#allocation120_spill] sm:$0xff] }
 0x132   :  { %7370 = vst [vmem:[#allocation115_spill] sm:$0xff] %v5011_v60  ;;  %v5031_v44 = vmul.f32 %v7379_v28, %v7379_v28  ;;  %v7381_v60 = vld [vmem:[#allocation121_spill] sm:$0xff] }
 0x133   :  { %7372 = vst [vmem:[#allocation116_spill] sm:$0xff] %v5015_v17  ;;  %v5035_v43 = vmul.f32 %v7381_v60, %v7381_v60  ;;  %v7383_v17 = vld [vmem:[#allocation122_spill] sm:$0xff] }
 0x134   :  { %7374 = vst [vmem:[#allocation117_spill] sm:$0xff] %v5019_v42  ;;  %v5039_v61 = vmul.f32 %v7383_v17, %v7383_v17  ;;  %v7385_v42 = vld [vmem:[#allocation123_spill] sm:$0xff] }
 0x135   :  { %7376 = vst [vmem:[#allocation118_spill] sm:$0xff] %v5023_v46  ;;  %v5043_v62 = vmul.f32 %v7385_v42, %v7385_v42  ;;  %v7387_v46 = vld [vmem:[#allocation124_spill] sm:$0xff] }
 0x136   :  { %7378 = vst [vmem:[#allocation119_spill] sm:$0xff] %v5027_v45  ;;  %v5047_v52 = vmul.f32 %v7387_v46, %v7387_v46  ;;  %v7389_v45 = vld [vmem:[#allocation125_spill] sm:$0xff] }
 0x137   :  { %7380 = vst [vmem:[#allocation120_spill] sm:$0xff] %v5031_v44  ;;  %v5051_v28 = vmul.f32 %v7389_v45, %v7389_v45  ;;  %v7391_v44 = vld [vmem:[#allocation126_spill] sm:$0xff] }
 0x138   :  { %7382 = vst [vmem:[#allocation121_spill] sm:$0xff] %v5035_v43  ;;  %v5055_v60 = vmul.f32 %v7391_v44, %v7391_v44  ;;  %v7393_v43 = vld [vmem:[#allocation127_spill] sm:$0xff] }
 0x139   :  { %7384 = vst [vmem:[#allocation122_spill] sm:$0xff] %v5039_v61  ;;  %v5059_v17 = vmul.f32 %v7393_v43, %v7393_v43  ;;  %v7395_v61 = vld [vmem:[#allocation128_spill] sm:$0xff] }
 0x13a   :  { %7386 = vst [vmem:[#allocation123_spill] sm:$0xff] %v5043_v62  ;;  %v5063_v42 = vmul.f32 %v7395_v61, %v7395_v61  ;;  %v7397_v62 = vld [vmem:[#allocation129_spill] sm:$0xff] }
 0x13b   :  { %7388 = vst [vmem:[#allocation124_spill] sm:$0xff] %v5047_v52  ;;  %v5067_v46 = vmul.f32 %v7397_v62, %v7397_v62  ;;  %v7399_v52 = vld [vmem:[#allocation130_spill] sm:$0xff] }
 0x13c   :  { %7390 = vst [vmem:[#allocation125_spill] sm:$0xff] %v5051_v28  ;;  %v5071_v45 = vmul.f32 %v7399_v52, %v7399_v52  ;;  %v7401_v28 = vld [vmem:[#allocation131_spill] sm:$0xff] }
 0x13d   :  { %7392 = vst [vmem:[#allocation126_spill] sm:$0xff] %v5055_v60  ;;  %v5075_v44 = vmul.f32 %v7401_v28, %v7401_v28  ;;  %v7403_v60 = vld [vmem:[#allocation132_spill] sm:$0xff] }
 0x13e   :  { %7394 = vst [vmem:[#allocation127_spill] sm:$0xff] %v5059_v17  ;;  %v5079_v43 = vmul.f32 %v7403_v60, %v7403_v60  ;;  %v7405_v17 = vld [vmem:[#allocation133_spill] sm:$0xff] }
 0x13f   :  { %7396 = vst [vmem:[#allocation128_spill] sm:$0xff] %v5063_v42  ;;  %v5083_v61 = vmul.f32 %v7405_v17, %v7405_v17  ;;  %v7407_v42 = vld [vmem:[#allocation134_spill] sm:$0xff] }
 0x140   :  { %7398 = vst [vmem:[#allocation129_spill] sm:$0xff] %v5067_v46  ;;  %v5087_v62 = vmul.f32 %v7407_v42, %v7407_v42  ;;  %v7409_v46 = vld [vmem:[#allocation135_spill] sm:$0xff] }
 0x141   :  { %7400 = vst [vmem:[#allocation130_spill] sm:$0xff] %v5071_v45  ;;  %v5091_v52 = vmul.f32 %v7409_v46, %v7409_v46  ;;  %v7411_v45 = vld [vmem:[#allocation136_spill] sm:$0xff] }
 0x142   :  { %7402 = vst [vmem:[#allocation131_spill] sm:$0xff] %v5075_v44  ;;  %v5095_v28 = vmul.f32 %v7411_v45, %v7411_v45  ;;  %v7413_v44 = vld [vmem:[#allocation137_spill] sm:$0xff] }
 0x143   :  { %7404 = vst [vmem:[#allocation132_spill] sm:$0xff] %v5079_v43  ;;  %v5099_v60 = vmul.f32 %v7413_v44, %v7413_v44  ;;  %v7415_v43 = vld [vmem:[#allocation138_spill] sm:$0xff] }
 0x144   :  { %7406 = vst [vmem:[#allocation133_spill] sm:$0xff] %v5083_v61  ;;  %v5103_v17 = vmul.f32 %v7415_v43, %v7415_v43  ;;  %v7417_v61 = vld [vmem:[#allocation139_spill] sm:$0xff] }
 0x145   :  { %7408 = vst [vmem:[#allocation134_spill] sm:$0xff] %v5087_v62  ;;  %v5107_v42 = vmul.f32 %v7417_v61, %v7417_v61  ;;  %v7419_v62 = vld [vmem:[#allocation140_spill] sm:$0xff] }
 0x146   :  { %7410 = vst [vmem:[#allocation135_spill] sm:$0xff] %v5091_v52  ;;  %v5111_v46 = vmul.f32 %v7419_v62, %v7419_v62  ;;  %v7421_v52 = vld [vmem:[#allocation141_spill] sm:$0xff] }
 0x147   :  { %7412 = vst [vmem:[#allocation136_spill] sm:$0xff] %v5095_v28  ;;  %v5115_v45 = vmul.f32 %v7421_v52, %v7421_v52  ;;  %v7423_v28 = vld [vmem:[#allocation142_spill] sm:$0xff] }
 0x148   :  { %7414 = vst [vmem:[#allocation137_spill] sm:$0xff] %v5099_v60  ;;  %v5119_v44 = vmul.f32 %v7423_v28, %v7423_v28  ;;  %v7425_v60 = vld [vmem:[#allocation143_spill] sm:$0xff] }
 0x149   :  { %7416 = vst [vmem:[#allocation138_spill] sm:$0xff] %v5103_v17  ;;  %v5123_v43 = vmul.f32 %v7425_v60, %v7425_v60  ;;  %v7427_v17 = vld [vmem:[#allocation144_spill] sm:$0xff] }
 0x14a   :  { %7418 = vst [vmem:[#allocation139_spill] sm:$0xff] %v5107_v42  ;;  %v5127_v61 = vmul.f32 %v7427_v17, %v7427_v17  ;;  %v7429_v42 = vld [vmem:[#allocation145_spill] sm:$0xff] }
 0x14b   :  { %7420 = vst [vmem:[#allocation140_spill] sm:$0xff] %v5111_v46  ;;  %v5131_v62 = vmul.f32 %v7429_v42, %v7429_v42  ;;  %v7431_v46 = vld [vmem:[#allocation146_spill] sm:$0xff] }
 0x14c   :  { %7422 = vst [vmem:[#allocation141_spill] sm:$0xff] %v5115_v45  ;;  %v5135_v52 = vmul.f32 %v7431_v46, %v7431_v46  ;;  %v7433_v45 = vld [vmem:[#allocation147_spill] sm:$0xff] }
 0x14d   :  { %7424 = vst [vmem:[#allocation142_spill] sm:$0xff] %v5119_v44  ;;  %v5139_v28 = vmul.f32 %v7433_v45, %v7433_v45  ;;  %v7435_v44 = vld [vmem:[#allocation148_spill] sm:$0xff] }
 0x14e   :  { %7426 = vst [vmem:[#allocation143_spill] sm:$0xff] %v5123_v43  ;;  %v5143_v60 = vmul.f32 %v7435_v44, %v7435_v44  ;;  %v7437_v43 = vld [vmem:[#allocation149_spill] sm:$0xff] }
 0x14f   :  { %7428 = vst [vmem:[#allocation144_spill] sm:$0xff] %v5127_v61  ;;  %v5147_v17 = vmul.f32 %v7437_v43, %v7437_v43  ;;  %v7439_v61 = vld [vmem:[#allocation150_spill] sm:$0xff] }
 0x150   :  { %7430 = vst [vmem:[#allocation145_spill] sm:$0xff] %v5131_v62  ;;  %v5151_v42 = vmul.f32 %v7439_v61, %v7439_v61  ;;  %v7441_v62 = vld [vmem:[#allocation151_spill] sm:$0xff] }
 0x151   :  { %7432 = vst [vmem:[#allocation146_spill] sm:$0xff] %v5135_v52  ;;  %v5155_v46 = vmul.f32 %v7441_v62, %v7441_v62  ;;  %v7443_v52 = vld [vmem:[#allocation152_spill] sm:$0xff] }
 0x152   :  { %7434 = vst [vmem:[#allocation147_spill] sm:$0xff] %v5139_v28  ;;  %v5159_v45 = vmul.f32 %v7443_v52, %v7443_v52  ;;  %v7445_v28 = vld [vmem:[#allocation153_spill] sm:$0xff] }
 0x153   :  { %7436 = vst [vmem:[#allocation148_spill] sm:$0xff] %v5143_v60  ;;  %v5163_v44 = vmul.f32 %v7445_v28, %v7445_v28  ;;  %v7447_v60 = vld [vmem:[#allocation154_spill] sm:$0xff] }
 0x154   :  { %7438 = vst [vmem:[#allocation149_spill] sm:$0xff] %v5147_v17  ;;  %v5167_v43 = vmul.f32 %v7447_v60, %v7447_v60  ;;  %v7449_v17 = vld [vmem:[#allocation155_spill] sm:$0xff] }
 0x155   :  { %7440 = vst [vmem:[#allocation150_spill] sm:$0xff] %v5151_v42  ;;  %v5171_v61 = vmul.f32 %v7449_v17, %v7449_v17  ;;  %v7451_v42 = vld [vmem:[#allocation156_spill] sm:$0xff] }
 0x156   :  { %7442 = vst [vmem:[#allocation151_spill] sm:$0xff] %v5155_v46  ;;  %v5175_v62 = vmul.f32 %v7451_v42, %v7451_v42  ;;  %v7453_v46 = vld [vmem:[#allocation157_spill] sm:$0xff] }
 0x157   :  { %7444 = vst [vmem:[#allocation152_spill] sm:$0xff] %v5159_v45  ;;  %v5179_v52 = vmul.f32 %v7453_v46, %v7453_v46  ;;  %v7455_v45 = vld [vmem:[#allocation28_spill] sm:$0xff] }
 0x158   :  { %7446 = vst [vmem:[#allocation153_spill] sm:$0xff] %v5163_v44  ;;  %v5183_v28 = vmul.f32 %v7455_v45, %v7455_v45  ;;  %v7456_v44 = vld [vmem:[#allocation29_spill] sm:$0xff] }
 0x159   :  { %7448 = vst [vmem:[#allocation154_spill] sm:$0xff] %v5167_v43  ;;  %v5187_v60 = vmul.f32 %v7456_v44, %v7456_v44  ;;  %v7457_v43 = vld [vmem:[#allocation30_spill] sm:$0xff]  ;;  %v5207_v44 = vmul.f32 %v7461_v40, %v7461_v40  ;;  %v5227_v40 = vmul.f32 %v7466_v39, %v7466_v39  ;;  %v5247_v39 = vmul.f32 %v7471_v51, %v7471_v51 }
 0x15a   :  { %7450 = vst [vmem:[#allocation155_spill] sm:$0xff] %v5171_v61  ;;  %v5191_v17 = vmul.f32 %v7457_v43, %v7457_v43  ;;  %v7458_v61 = vld [vmem:[#allocation31_spill] sm:$0xff]  ;;  %v5211_v43 = vmul.f32 %v7462_v47, %v7462_v47  ;;  %v5231_v47 = vmul.f32 %v7467_v3, %v7467_v3  ;;  %v5251_v3 = vmul.f32 %v7473_v30, %v7473_v30 }
 0x15b   :  { %7452 = vst [vmem:[#allocation156_spill] sm:$0xff] %v5175_v62  ;;  %v5195_v42 = vmul.f32 %v7458_v61, %v7458_v61  ;;  %v7459_v62 = vld [vmem:[#allocation32_spill] sm:$0xff]  ;;  %v5215_v61 = vmul.f32 %v7463_v14, %v7463_v14  ;;  %v5235_v14 = vmul.f32 %v7468_v35, %v7468_v35  ;;  %v5255_v35 = vmul.f32 %v7475_v1, %v7475_v1 }
 0x15c   :  { %7454 = vst [vmem:[#allocation157_spill] sm:$0xff] %v5179_v52  ;;  %v5199_v46 = vmul.f32 %v7459_v62, %v7459_v62  ;;  %v7460_v52 = vld [vmem:[#allocation33_spill] sm:$0xff]  ;;  %v5219_v62 = vmul.f32 %v7464_v49, %v7464_v49  ;;  %v5239_v49 = vmul.f32 %v7469_v26, %v7469_v26  ;;  %v5259_v26 = vmul.f32 %v7477_v27, %v7477_v27 }
 0x15d   :  { %v5203_v45 = vmul.f32 %v7460_v52, %v7460_v52  ;;  %v5223_v52 = vmul.f32 %v7465_v10, %v7465_v10  ;;  %v5243_v10 = vmul.f32 %v7470_v34, %v7470_v34  ;;  %7472 = vst [vmem:[#allocation28_spill] sm:$0xff] %v5247_v39  ;;  %v5263_v34 = vmul.f32 %v7479_v58, %v7479_v58  ;;  %v7483_v39 = vld [vmem:[#allocation50_spill] sm:$0xff] }
 0x15e   :  { %7474 = vst [vmem:[#allocation29_spill] sm:$0xff] %v5251_v3  ;;  %v5267_v51 = vmul.f32 %v7481_v23, %v7481_v23  ;;  %v5271_v30 = vmul.f32 %v7483_v39, %v7483_v39  ;;  %v7485_v3 = vld [vmem:[#allocation51_spill] sm:$0xff] }
 0x15f   :  { %7476 = vst [vmem:[#allocation30_spill] sm:$0xff] %v5255_v35  ;;  %v5275_v1 = vmul.f32 %v7485_v3, %v7485_v3  ;;  %v7487_v35 = vld [vmem:[#allocation158_spill] sm:$0xff] }
 0x160   :  { %7478 = vst [vmem:[#allocation31_spill] sm:$0xff] %v5259_v26  ;;  %v5279_v27 = vmul.f32 %v7487_v35, %v7487_v35  ;;  %v7489_v26 = vld [vmem:[#allocation159_spill] sm:$0xff] }
 0x161   :  { %7480 = vst [vmem:[#allocation32_spill] sm:$0xff] %v5263_v34  ;;  %v5283_v58 = vmul.f32 %v7489_v26, %v7489_v26  ;;  %v7491_v34 = vld [vmem:[#allocation160_spill] sm:$0xff] }
 0x162   :  { %7482 = vst [vmem:[#allocation33_spill] sm:$0xff] %v5267_v51  ;;  %v5287_v23 = vmul.f32 %v7491_v34, %v7491_v34  ;;  %v7493_v51 = vld [vmem:[#allocation161_spill] sm:$0xff] }
 0x163   :  { %7484 = vst [vmem:[#allocation34_spill] sm:$0xff] %v5271_v30  ;;  %v5291_v39 = vmul.f32 %v7493_v51, %v7493_v51  ;;  %v7495_v30 = vld [vmem:[#allocation162_spill] sm:$0xff] }
 0x164   :  { %7486 = vst [vmem:[#allocation35_spill] sm:$0xff] %v5275_v1  ;;  %v5295_v3 = vmul.f32 %v7495_v30, %v7495_v30  ;;  %v7497_v1 = vld [vmem:[#allocation163_spill] sm:$0xff] }
 0x165   :  { %7488 = vst [vmem:[#allocation36_spill] sm:$0xff] %v5279_v27  ;;  %v5299_v35 = vmul.f32 %v7497_v1, %v7497_v1  ;;  %v7499_v27 = vld [vmem:[#allocation164_spill] sm:$0xff] }
 0x166   :  { %7490 = vst [vmem:[#allocation37_spill] sm:$0xff] %v5283_v58  ;;  %v5303_v26 = vmul.f32 %v7499_v27, %v7499_v27  ;;  %v7501_v58 = vld [vmem:[#allocation165_spill] sm:$0xff] }
 0x167   :  { %7492 = vst [vmem:[#allocation38_spill] sm:$0xff] %v5287_v23  ;;  %v5307_v34 = vmul.f32 %v7501_v58, %v7501_v58  ;;  %v7503_v23 = vld [vmem:[#allocation166_spill] sm:$0xff] }
 0x168   :  { %7494 = vst [vmem:[#allocation39_spill] sm:$0xff] %v5291_v39  ;;  %v5311_v51 = vmul.f32 %v7503_v23, %v7503_v23  ;;  %v7505_v39 = vld [vmem:[#allocation167_spill] sm:$0xff] }
 0x169   :  { %7496 = vst [vmem:[#allocation40_spill] sm:$0xff] %v5295_v3  ;;  %v5315_v30 = vmul.f32 %v7505_v39, %v7505_v39  ;;  %v7507_v3 = vld [vmem:[#allocation168_spill] sm:$0xff] }
 0x16a   :  { %7498 = vst [vmem:[#allocation41_spill] sm:$0xff] %v5299_v35  ;;  %v5319_v1 = vmul.f32 %v7507_v3, %v7507_v3  ;;  %v7509_v35 = vld [vmem:[#allocation169_spill] sm:$0xff] }
 0x16b   :  { %7500 = vst [vmem:[#allocation42_spill] sm:$0xff] %v5303_v26  ;;  %v5323_v27 = vmul.f32 %v7509_v35, %v7509_v35  ;;  %v7511_v26 = vld [vmem:[#allocation170_spill] sm:$0xff] }
 0x16c   :  { %7502 = vst [vmem:[#allocation43_spill] sm:$0xff] %v5307_v34  ;;  %v5327_v58 = vmul.f32 %v7511_v26, %v7511_v26  ;;  %v7513_v34 = vld [vmem:[#allocation171_spill] sm:$0xff] }
 0x16d   :  { %7504 = vst [vmem:[#allocation44_spill] sm:$0xff] %v5311_v51  ;;  %v5331_v23 = vmul.f32 %v7513_v34, %v7513_v34  ;;  %v7515_v51 = vld [vmem:[#allocation172_spill] sm:$0xff] }
 0x16e   :  { %7506 = vst [vmem:[#allocation45_spill] sm:$0xff] %v5315_v30  ;;  %v5335_v39 = vmul.f32 %v7515_v51, %v7515_v51  ;;  %v7517_v30 = vld [vmem:[#allocation173_spill] sm:$0xff] }
 0x16f   :  { %7508 = vst [vmem:[#allocation46_spill] sm:$0xff] %v5319_v1  ;;  %v5339_v3 = vmul.f32 %v7517_v30, %v7517_v30  ;;  %v7519_v1 = vld [vmem:[#allocation174_spill] sm:$0xff] }
 0x170   :  { %7510 = vst [vmem:[#allocation47_spill] sm:$0xff] %v5323_v27  ;;  %v5343_v35 = vmul.f32 %v7519_v1, %v7519_v1  ;;  %v7521_v27 = vld [vmem:[#allocation175_spill] sm:$0xff] }
 0x171   :  { %7512 = vst [vmem:[#allocation48_spill] sm:$0xff] %v5327_v58  ;;  %v5347_v26 = vmul.f32 %v7521_v27, %v7521_v27  ;;  %v7523_v58 = vld [vmem:[#allocation176_spill] sm:$0xff]  ;;  %v5367_v27 = vmul.f32 %v7531_v13, %v7531_v13 }
 0x172   :  { %7514 = vst [vmem:[#allocation49_spill] sm:$0xff] %v5331_v23  ;;  %v5351_v34 = vmul.f32 %v7523_v58, %v7523_v58  ;;  %v7525_v23 = vld [vmem:[#allocation177_spill] sm:$0xff]  ;;  %v5371_v58 = vmul.f32 %v7533_v54, %v7533_v54 }
 0x173   :  { %7516 = vst [vmem:[#allocation50_spill] sm:$0xff] %v5335_v39  ;;  %v5355_v51 = vmul.f32 %v7525_v23, %v7525_v23  ;;  %v7527_v39 = vld [vmem:[#allocation178_spill] sm:$0xff]  ;;  %v5375_v23 = vmul.f32 %v7535_v11, %v7535_v11 }
 0x174   :  { %7518 = vst [vmem:[#allocation51_spill] sm:$0xff] %v5339_v3  ;;  %v5359_v30 = vmul.f32 %v7527_v39, %v7527_v39  ;;  %v7529_v3 = vld [vmem:[#allocation179_spill] sm:$0xff]  ;;  %v5379_v39 = vmul.f32 %v7537_v15, %v7537_v15 }
 0x175   :  { %7520 = vst [vmem:[#allocation158_spill] sm:$0xff] %v5343_v35  ;;  %v5363_v1 = vmul.f32 %v7529_v3, %v7529_v3 }
 0x176   :  { %7522 = vst [vmem:[#allocation159_spill] sm:$0xff] %v5347_v26  ;;  %v5571_v26 = vmul.f32 %v7631_v63, %v7631_v63  ;;  %v7637_v63 = vld [vmem:[#allocation228_spill] sm:$0xff] }
 0x177   :  { %7524 = vst [vmem:[#allocation160_spill] sm:$0xff] %v5351_v34 }
 0x178   :  { %7526 = vst [vmem:[#allocation161_spill] sm:$0xff] %v5355_v51 }
 0x179   :  { %7528 = vst [vmem:[#allocation162_spill] sm:$0xff] %v5359_v30  ;;  %v7539_v30 = vld [vmem:[#allocation184_spill] sm:$0xff] }
 0x17a   :  { %7530 = vst [vmem:[#allocation163_spill] sm:$0xff] %v5363_v1  ;;  %v5383_v3 = vmul.f32 %v7539_v30, %v7539_v30  ;;  %v7541_v1 = vld [vmem:[#allocation185_spill] sm:$0xff] }
 0x17b   :  { %7532 = vst [vmem:[#allocation164_spill] sm:$0xff] %v5367_v27  ;;  %v5387_v13 = vmul.f32 %v7541_v1, %v7541_v1  ;;  %v7543_v27 = vld [vmem:[#allocation186_spill] sm:$0xff] }
 0x17c   :  { %7534 = vst [vmem:[#allocation165_spill] sm:$0xff] %v5371_v58  ;;  %v5391_v54 = vmul.f32 %v7543_v27, %v7543_v27  ;;  %v7545_v58 = vld [vmem:[#allocation187_spill] sm:$0xff] }
 0x17d   :  { %7536 = vst [vmem:[#allocation166_spill] sm:$0xff] %v5375_v23  ;;  %v5395_v11 = vmul.f32 %v7545_v58, %v7545_v58  ;;  %v7547_v23 = vld [vmem:[#allocation188_spill] sm:$0xff] }
 0x17e   :  { %7538 = vst [vmem:[#allocation167_spill] sm:$0xff] %v5379_v39  ;;  %v5399_v15 = vmul.f32 %v7547_v23, %v7547_v23  ;;  %v7549_v39 = vld [vmem:[#allocation189_spill] sm:$0xff] }
 0x17f   :  { %7540 = vst [vmem:[#allocation168_spill] sm:$0xff] %v5383_v3  ;;  %v5403_v30 = vmul.f32 %v7549_v39, %v7549_v39  ;;  %v7551_v3 = vld [vmem:[#allocation190_spill] sm:$0xff] }
 0x180   :  { %7542 = vst [vmem:[#allocation169_spill] sm:$0xff] %v5387_v13  ;;  %v5407_v1 = vmul.f32 %v7551_v3, %v7551_v3  ;;  %v7553_v13 = vld [vmem:[#allocation191_spill] sm:$0xff] }
 0x181   :  { %7544 = vst [vmem:[#allocation170_spill] sm:$0xff] %v5391_v54  ;;  %v5411_v27 = vmul.f32 %v7553_v13, %v7553_v13  ;;  %v7555_v54 = vld [vmem:[#allocation192_spill] sm:$0xff] }
 0x182   :  { %7546 = vst [vmem:[#allocation171_spill] sm:$0xff] %v5395_v11  ;;  %v5415_v58 = vmul.f32 %v7555_v54, %v7555_v54  ;;  %v7557_v11 = vld [vmem:[#allocation193_spill] sm:$0xff] }
 0x183   :  { %7548 = vst [vmem:[#allocation172_spill] sm:$0xff] %v5399_v15  ;;  %v5419_v23 = vmul.f32 %v7557_v11, %v7557_v11  ;;  %v7559_v15 = vld [vmem:[#allocation194_spill] sm:$0xff] }
 0x184   :  { %7550 = vst [vmem:[#allocation173_spill] sm:$0xff] %v5403_v30  ;;  %v5423_v39 = vmul.f32 %v7559_v15, %v7559_v15  ;;  %v7561_v30 = vld [vmem:[#allocation195_spill] sm:$0xff] }
 0x185   :  { %7552 = vst [vmem:[#allocation174_spill] sm:$0xff] %v5407_v1  ;;  %v5427_v3 = vmul.f32 %v7561_v30, %v7561_v30  ;;  %v7563_v1 = vld [vmem:[#allocation196_spill] sm:$0xff] }
 0x186   :  { %7554 = vst [vmem:[#allocation175_spill] sm:$0xff] %v5411_v27  ;;  %v5431_v13 = vmul.f32 %v7563_v1, %v7563_v1  ;;  %v7565_v27 = vld [vmem:[#allocation197_spill] sm:$0xff] }
 0x187   :  { %7556 = vst [vmem:[#allocation176_spill] sm:$0xff] %v5415_v58  ;;  %v5435_v54 = vmul.f32 %v7565_v27, %v7565_v27  ;;  %v7567_v58 = vld [vmem:[#allocation198_spill] sm:$0xff] }
 0x188   :  { %7558 = vst [vmem:[#allocation177_spill] sm:$0xff] %v5419_v23  ;;  %v5439_v11 = vmul.f32 %v7567_v58, %v7567_v58  ;;  %v7569_v23 = vld [vmem:[#allocation199_spill] sm:$0xff] }
 0x189   :  { %7560 = vst [vmem:[#allocation178_spill] sm:$0xff] %v5423_v39  ;;  %v5443_v15 = vmul.f32 %v7569_v23, %v7569_v23  ;;  %v7571_v39 = vld [vmem:[#allocation200_spill] sm:$0xff] }
 0x18a   :  { %7562 = vst [vmem:[#allocation179_spill] sm:$0xff] %v5427_v3  ;;  %v5447_v30 = vmul.f32 %v7571_v39, %v7571_v39  ;;  %v7573_v3 = vld [vmem:[#allocation201_spill] sm:$0xff] }
 0x18b   :  { %7564 = vst [vmem:[#allocation180_spill] sm:$0xff] %v5431_v13  ;;  %v5451_v1 = vmul.f32 %v7573_v3, %v7573_v3  ;;  %v7575_v13 = vld [vmem:[#allocation202_spill] sm:$0xff] }
 0x18c   :  { %7566 = vst [vmem:[#allocation181_spill] sm:$0xff] %v5435_v54  ;;  %v5455_v27 = vmul.f32 %v7575_v13, %v7575_v13  ;;  %v7577_v54 = vld [vmem:[#allocation203_spill] sm:$0xff] }
 0x18d   :  { %7568 = vst [vmem:[#allocation182_spill] sm:$0xff] %v5439_v11  ;;  %v5459_v58 = vmul.f32 %v7577_v54, %v7577_v54  ;;  %v7579_v11 = vld [vmem:[#allocation204_spill] sm:$0xff] }
 0x18e   :  { %7570 = vst [vmem:[#allocation183_spill] sm:$0xff] %v5443_v15  ;;  %v5463_v23 = vmul.f32 %v7579_v11, %v7579_v11  ;;  %v7581_v15 = vld [vmem:[#allocation205_spill] sm:$0xff] }
 0x18f   :  { %7572 = vst [vmem:[#allocation184_spill] sm:$0xff] %v5447_v30  ;;  %v5467_v39 = vmul.f32 %v7581_v15, %v7581_v15  ;;  %v7583_v30 = vld [vmem:[#allocation206_spill] sm:$0xff] }
 0x190   :  { %7574 = vst [vmem:[#allocation185_spill] sm:$0xff] %v5451_v1  ;;  %v5471_v3 = vmul.f32 %v7583_v30, %v7583_v30  ;;  %v7585_v1 = vld [vmem:[#allocation207_spill] sm:$0xff] }
 0x191   :  { %7576 = vst [vmem:[#allocation186_spill] sm:$0xff] %v5455_v27  ;;  %v5475_v13 = vmul.f32 %v7585_v1, %v7585_v1  ;;  %v7587_v27 = vld [vmem:[#allocation208_spill] sm:$0xff] }
 0x192   :  { %7578 = vst [vmem:[#allocation187_spill] sm:$0xff] %v5459_v58  ;;  %v5479_v54 = vmul.f32 %v7587_v27, %v7587_v27  ;;  %v7589_v58 = vld [vmem:[#allocation209_spill] sm:$0xff] }
 0x193   :  { %7580 = vst [vmem:[#allocation188_spill] sm:$0xff] %v5463_v23  ;;  %v5483_v11 = vmul.f32 %v7589_v58, %v7589_v58  ;;  %v7591_v23 = vld [vmem:[#allocation210_spill] sm:$0xff] }
 0x194   :  { %7582 = vst [vmem:[#allocation189_spill] sm:$0xff] %v5467_v39  ;;  %v5487_v15 = vmul.f32 %v7591_v23, %v7591_v23  ;;  %v7593_v39 = vld [vmem:[#allocation211_spill] sm:$0xff] }
 0x195   :  { %7584 = vst [vmem:[#allocation190_spill] sm:$0xff] %v5471_v3  ;;  %v5491_v30 = vmul.f32 %v7593_v39, %v7593_v39  ;;  %v7595_v3 = vld [vmem:[#allocation212_spill] sm:$0xff]  ;;  %v7603_v39 = vld [vmem:[#allocation13_spill] sm:$0xff] }
 0x196   :  { %7586 = vst [vmem:[#allocation191_spill] sm:$0xff] %v5475_v13  ;;  %v5495_v1 = vmul.f32 %v7595_v3, %v7595_v3  ;;  %v7597_v13 = vld [vmem:[#allocation213_spill] sm:$0xff]  ;;  %v1139_v3 = vadd.f32 %v5195_v42, %v7604_v24 }
 0x197   :  { %7588 = vst [vmem:[#allocation192_spill] sm:$0xff] %v5479_v54  ;;  %v5499_v27 = vmul.f32 %v7597_v13, %v7597_v13  ;;  %v7599_v54 = vld [vmem:[#allocation214_spill] sm:$0xff]  ;;  %v7613_v42 = vld [vmem:[#allocation217_spill] sm:$0xff] }
 0x198   :  { %7590 = vst [vmem:[#allocation193_spill] sm:$0xff] %v5483_v11  ;;  %v5503_v58 = vmul.f32 %v7599_v54, %v7599_v54  ;;  %v7601_v11 = vld [vmem:[#allocation19_spill] sm:$0xff] }
 0x199   :  { %7592 = vst [vmem:[#allocation194_spill] sm:$0xff] %v5487_v15  ;;  %v1118_v23 = vadd.f32 %v5183_v28, %v7601_v11  ;;  %v7602_v15 = vld [vmem:[#allocation12_spill] sm:$0xff]  ;;  %v7607_v54 = vld [vmem:[#allocation215_spill] sm:$0xff] }
 0x19a   :  { %7594 = vst [vmem:[#allocation195_spill] sm:$0xff] %v5491_v30  ;;  %v1125_v51 = vadd.f32 %v5187_v60, %v7602_v15  ;;  %v1132_v30 = vadd.f32 %v5191_v17, %v7603_v39  ;;  %v7609_v28 = vld [vmem:[#allocation216_spill] sm:$0xff]  ;;  %v7611_v60 = vld [vmem:[#allocation17_spill] sm:$0xff]  ;;  %v7612_v15 = vld [vmem:[#allocation18_spill] sm:$0xff] }
 0x19b   :  { %7596 = vst [vmem:[#allocation196_spill] sm:$0xff] %v5495_v1  ;;  %v7605_v1 = vld [vmem:[#allocation15_spill] sm:$0xff]  ;;  %v5523_v11 = vmul.f32 %v7609_v28, %v7609_v28  ;;  %v1160_v17 = vadd.f32 %v5207_v44, %v7611_v60  ;;  %v1167_v24 = vadd.f32 %v5211_v43, %v7612_v15  ;;  %v5547_v44 = vmul.f32 %v4652_v25, %v4652_v25  ;;  %v7622_v43 = vld [vmem:[#allocation221_spill] sm:$0xff] }
 0x19c   :  { %7598 = vst [vmem:[#allocation197_spill] sm:$0xff] %v5499_v27  ;;  %v1146_v13 = vadd.f32 %v5199_v46, %v7605_v1  ;;  %v7606_v27 = vld [vmem:[#allocation16_spill] sm:$0xff]  ;;  %v5531_v46 = vmul.f32 %v7613_v42, %v7613_v42  ;;  %v7615_v1 = vld [vmem:[#allocation218_spill] sm:$0xff]  ;;  %v5551_v60 = vmul.f32 %v7622_v43, %v7622_v43  ;;  %v1119_v15 = vrot.slane %v1118_v23, 4 }
 0x19d   :  { %7600 = vst [vmem:[#allocation198_spill] sm:$0xff] %v5503_v58  ;;  %v1153_v34 = vadd.f32 %v5203_v45, %v7606_v27  ;;  %v5519_v58 = vmul.f32 %v7607_v54, %v7607_v54  ;;  %v5535_v45 = vmul.f32 %v7615_v1, %v7615_v1  ;;  %v7617_v27 = vld [vmem:[#allocation219_spill] sm:$0xff]  ;;  %v7619_v54 = vld [vmem:[#allocation220_spill] sm:$0xff]  ;;  %v1126_v42 = vrot.slane %v1125_v51, 4 }
 0x19e   :  { %7610 = vst [vmem:[#allocation200_spill] sm:$0xff] %v5523_v11  ;;  %v5539_v39 = vmul.f32 %v7617_v27, %v7617_v27  ;;  %v5543_v28 = vmul.f32 %v7619_v54, %v7619_v54  ;;  %v1133_v1 = vrot.slane %v1132_v30, 4  ;;  %v7624_v27 = vld [vmem:[#allocation222_spill] sm:$0xff]  ;;  %v7626_v54 = vld [vmem:[#allocation223_spill] sm:$0xff]  ;;  %v1161_v25 = vrot.slane %v1160_v17, 4 }
 0x19f   :  { %7608 = vst [vmem:[#allocation199_spill] sm:$0xff] %v5519_v58  ;;  %v1154_v11 = vrot.slane %v1153_v34, 4  ;;  %v5563_v43 = vmul.f32 %v4664_v29, %v4664_v29  ;;  %v1127_v31 = vadd.f32 %v1126_v42, %v1125_v51  ;;  %v5619_v42 = vmul.f32 %v4703_v37, %v4703_v37 }
 0x1a0   :  { %7614 = vst [vmem:[#allocation201_spill] sm:$0xff] %v5531_v46  ;;  %v1147_v46 = vrot.slane %v1146_v13, 4  ;;  %v5639_v37 = vmul.f32 %v4713_v36, %v4713_v36  ;;  %v5655_v36 = vmul.f32 %v4721_v33, %v4721_v33  ;;  %v5675_v33 = vmul.f32 %v4731_v2, %v4731_v2 }
 0x1a1   :  { %7616 = vst [vmem:[#allocation202_spill] sm:$0xff] %v5535_v45  ;;  %v1140_v45 = vrot.slane %v1139_v3, 4  ;;  %v1155_v55 = vadd.f32 %v1154_v11, %v1153_v34  ;;  %v5611_v11 = vmul.f32 %v4699_v56, %v4699_v56 }
 0x1a2   :  { %7618 = vst [vmem:[#allocation203_spill] sm:$0xff] %v5539_v39  ;;  %v5555_v39 = vmul.f32 %v7624_v27, %v7624_v27  ;;  %v7633_v27 = vld [vmem:[#allocation226_spill] sm:$0xff]  ;;  %v1148_v35 = vadd.f32 %v1147_v46, %v1146_v13 }
 0x1a3   :  { %7620 = vst [vmem:[#allocation204_spill] sm:$0xff] %v5543_v28  ;;  %v5559_v28 = vmul.f32 %v7626_v54, %v7626_v54  ;;  %v5579_v54 = vmul.f32 %v4676_v8, %v4676_v8  ;;  %v1162_v8 = vadd.f32 %v1161_v25, %v1160_v17 }
 0x1a4   :  { %7621 = vst [vmem:[#allocation205_spill] sm:$0xff] %v5547_v44  ;;  %v1168_v44 = vrot.slane %v1167_v24, 4 }
 0x1a5   :  { %7623 = vst [vmem:[#allocation206_spill] sm:$0xff] %v5551_v60  ;;  %v7629_v60 = vld [vmem:[#allocation224_spill] sm:$0xff]  ;;  %v1163_v56 = vrot.slane %v1162_v8, 2 }
 0x1a6   :  { %7625 = vst [vmem:[#allocation207_spill] sm:$0xff] %v5555_v39  ;;  %v5567_v58 = vmul.f32 %v7629_v60, %v7629_v60  ;;  %v5575_v39 = vmul.f32 %v7633_v27, %v7633_v27  ;;  %v1134_v60 = vadd.f32 %v1133_v1, %v1132_v30  ;;  %v7638_v27 = vld [vmem:[#allocation229_spill] sm:$0xff]  ;;  %v7640_v30 = vld [vmem:[#allocation231_spill] sm:$0xff]  ;;  %v5623_v1 = vmul.f32 %v4705_v57, %v4705_v57 }
 0x1a7   :  { %7627 = vst [vmem:[#allocation208_spill] sm:$0xff] %v5559_v28  ;;  %v7636_v28 = vld [vmem:[#allocation227_spill] sm:$0xff]  ;;  %v5603_v34 = vmul.f32 %v7640_v30, %v7640_v30  ;;  %v5643_v57 = vmul.f32 %v4715_v12, %v4715_v12  ;;  %v1164_v12 = vadd.f32 %v1163_v56, %v1162_v8 }
 0x1a8   :  { %7628 = vst [vmem:[#allocation209_spill] sm:$0xff] %v5563_v43  ;;  %v5583_v29 = vmul.f32 %v7636_v28, %v7636_v28  ;;  %v1120_v43 = vadd.f32 %v1119_v15, %v1118_v23  ;;  %v5595_v28 = vmul.f32 %v4688_v6, %v4688_v6  ;;  %v7639_v23 = vld [vmem:[#allocation230_spill] sm:$0xff]  ;;  %v5615_v6 = vmul.f32 %v4701_v38, %v4701_v38 }
 0x1a9   :  { %7630 = vst [vmem:[#allocation210_spill] sm:$0xff] %v5567_v58  ;;  %v1141_v58 = vadd.f32 %v1140_v45, %v1139_v3  ;;  %v5599_v51 = vmul.f32 %v7639_v23, %v7639_v23  ;;  %v7641_v3 = vld [vmem:[#allocation232_spill] sm:$0xff]  ;;  %v1135_v46 = vrot.slane %v1134_v60, 2  ;;  %v1156_v15 = vrot.slane %v1155_v55, 2 }
 0x1aa   :  { %7632 = vst [vmem:[#allocation211_spill] sm:$0xff] %v5571_v26  ;;  %v5587_v26 = vmul.f32 %v7637_v63, %v7637_v63  ;;  %v5607_v13 = vmul.f32 %v7641_v3, %v7641_v3  ;;  %v1121_v17 = vrot.slane %v1120_v43, 2  ;;  %v5627_v38 = vmul.f32 %v4707_v53, %v4707_v53 }
 0x1ab   :  { %7634 = vst [vmem:[#allocation212_spill] sm:$0xff] %v5575_v39  ;;  %v5591_v39 = vmul.f32 %v7638_v27, %v7638_v27  ;;  %v1142_v45 = vrot.slane %v1141_v58, 2  ;;  %v5631_v63 = vmul.f32 %v4709_v59, %v4709_v59  ;;  %v5635_v27 = vmul.f32 %v4711_v18, %v4711_v18 }
 0x1ac   :  { %7635 = vst [vmem:[#allocation213_spill] sm:$0xff] %v5579_v54  ;;  %v1169_v54 = vadd.f32 %v1168_v44, %v1167_v24  ;;  %v1128_v24 = vrot.slane %v1127_v31, 2  ;;  %v1149_v44 = vrot.slane %v1148_v35, 2  ;;  %v5647_v53 = vmul.f32 %v4717_v22, %v4717_v22 }
 0x1ad   :  { %7642 = vst [vmem:[#allocation214_spill] sm:$0xff] %v5627_v38  ;;  %v1122_v23 = vadd.f32 %v1121_v17, %v1120_v43  ;;  %v1136_v59 = vadd.f32 %v1135_v46, %v1134_v60  ;;  %v1143_v3 = vadd.f32 %v1142_v45, %v1141_v58  ;;  %v1157_v38 = vadd.f32 %v1156_v15, %v1155_v55  ;;  %v7662_v45 = vld [vmem:[#allocation27_spill] sm:$0xff] }
 0x1ae   :  { %v1170_v25 = vrot.slane %v1169_v54, 2  ;;  %7643 = vst [vmem:[#allocation19_spill] sm:$0xff] %v5631_v63  ;;  %v1129_v30 = vadd.f32 %v1128_v24, %v1127_v31  ;;  %v1150_v63 = vadd.f32 %v1149_v44, %v1148_v35  ;;  %v5651_v18 = vmul.f32 %v4719_v16, %v4719_v16 }
 0x1af   :  { %7644 = vst [vmem:[#allocation12_spill] sm:$0xff] %v5643_v57  ;;  %v5659_v22 = vmul.f32 %v4723_v48, %v4723_v48  ;;  %v5663_v31 = vmul.f32 %v4725_v7, %v4725_v7  ;;  %v5667_v55 = vmul.f32 %v4727_v20, %v4727_v20  ;;  %v5671_v16 = vmul.f32 %v4729_v50, %v4729_v50 }
 0x1b0   :  { %7645 = vst [vmem:[#allocation13_spill] sm:$0xff] %v5651_v18  ;;  %v1171_v57 = vadd.f32 %v1170_v25, %v1169_v54  ;;  %v5679_v48 = vmul.f32 %v4733_v5, %v4733_v5  ;;  %v1123_v35 = vrot.slane %v1122_v23, 1  ;;  %v1130_v58 = vrot.slane %v1129_v30, 1 }
 0x1b1   :  { %7646 = vst [vmem:[#allocation14_spill] sm:$0xff] %v5655_v36  ;;  %v1137_v7 = vrot.slane %v1136_v59, 1  ;;  %v1144_v43 = vrot.slane %v1143_v3, 1  ;;  %v1151_v54 = vrot.slane %v1150_v63, 1  ;;  %v1158_v60 = vrot.slane %v1157_v38, 1 }
 0x1b2   :  { %7647 = vst [vmem:[#allocation15_spill] sm:$0xff] %v5659_v22  ;;  %v5683_v20 = vmul.f32 %v4735_v0, %v4735_v0  ;;  %v5687_v50 = vmul.f32 %v4737_v4, %v4737_v4  ;;  %v1165_v2 = vrot.slane %v1164_v12, 1  ;;  %v1172_v8 = vrot.slane %v1171_v57, 1 }
 0x1b3   :  { %7648 = vst [vmem:[#allocation16_spill] sm:$0xff] %v5663_v31  ;;  %v5691_v5 = vmul.f32 %v4739_v32, %v4739_v32  ;;  %v5695_v17 = vmul.f32 %v4741_v41, %v4741_v41  ;;  %v5699_v24 = vmul.f32 %v4743_v21, %v4743_v21  ;;  %v5703_v0 = vmul.f32 %v4745_v19, %v4745_v19 }
 0x1b4   :  { %7649 = vst [vmem:[#allocation215_spill] sm:$0xff] %v5667_v55  ;;  %v5707_v4 = vmul.f32 %v4747_v9, %v4747_v9  ;;  %v5709_v46 = vadd.f32 %v1123_v35, %v1122_v23  ;;  %v5711_v32 = vadd.f32 %v1130_v58, %v1129_v30  ;;  %v1174_v41 = vadd.f32 %v5215_v61, %v7662_v45  ;;  %v7669_v9 = vld [vmem:[#allocation20_spill] sm:$0xff]  ;;  %v7670_v30 = vld [vmem:[#allocation21_spill] sm:$0xff]  ;;  %v7671_v58 = vld [vmem:[#allocation22_spill] sm:$0xff] }
 0x1b5   :  { %7650 = vst [vmem:[#allocation216_spill] sm:$0xff] %v5671_v16  ;;  %v5715_v44 = vadd.f32 %v1137_v7, %v1136_v59  ;;  %v5717_v15 = vadd.f32 %v1144_v43, %v1143_v3  ;;  %v5719_v21 = vadd.f32 %v1151_v54, %v1150_v63  ;;  %v5721_v56 = vadd.f32 %v1158_v60, %v1157_v38  ;;  %v7672_v59 = vld [vmem:[#allocation23_spill] sm:$0xff]  ;;  %v7673_v63 = vld [vmem:[#allocation24_spill] sm:$0xff]  ;;  %v7674_v7 = vld [vmem:[#allocation25_spill] sm:$0xff] }
 0x1b6   :  { %7651 = vst [vmem:[#allocation17_spill] sm:$0xff] %v5675_v33  ;;  %v5723_v19 = vadd.f32 %v1165_v2, %v1164_v12  ;;  %v5725_v25 = vadd.f32 %v1172_v8, %v1171_v57  ;;  %v1181_v23 = vadd.f32 %v5219_v62, %v7669_v9  ;;  %v1188_v35 = vadd.f32 %v5223_v52, %v7670_v30  ;;  %v7675_v43 = vld [vmem:[#allocation26_spill] sm:$0xff]  ;;  %v7678_v52 = vld [vmem:[#allocation71_spill] sm:$0xff]  ;;  %v7681_v9 = vld [vmem:[#allocation160_spill] sm:$0xff] }
 0x1b7   :  { %7652 = vst [vmem:[#allocation18_spill] sm:$0xff] %v5679_v48  ;;  %v1195_v61 = vadd.f32 %v5227_v40, %v7671_v58  ;;  %v1202_v3 = vadd.f32 %v5231_v47, %v7672_v59  ;;  %v1209_v38 = vadd.f32 %v5235_v14, %v7673_v63  ;;  %v1216_v12 = vadd.f32 %v5239_v49, %v7674_v7  ;;  %v7676_v62 = vld [vmem:[#allocation70_spill] sm:$0xff]  ;;  %v7679_v8 = vld [vmem:[#allocation159_spill] sm:$0xff]  ;;  %v7680_v40 = vld [vmem:[#allocation72_spill] sm:$0xff] }
 0x1b8   :  { %7653 = vst [vmem:[#allocation217_spill] sm:$0xff] %v5683_v20  ;;  %v1175_v57 = vrot.slane %v1174_v41, 4  ;;  %v1223_v54 = vadd.f32 %v5243_v10, %v7675_v43  ;;  %v7677_v60 = vld [vmem:[#allocation158_spill] sm:$0xff]  ;;  %v1405_v45 = vadd.f32 %v7679_v8, %v7678_v52  ;;  %v1412_v30 = vadd.f32 %v7681_v9, %v7680_v40  ;;  %v7682_v47 = vld [vmem:[#allocation73_spill] sm:$0xff]  ;;  %v7686_v49 = vld [vmem:[#allocation75_spill] sm:$0xff] }
 0x1b9   :  { %7654 = vst [vmem:[#allocation218_spill] sm:$0xff] %v5687_v50  ;;  %v1398_v2 = vadd.f32 %v7677_v60, %v7676_v62  ;;  %v7683_v58 = vld [vmem:[#allocation161_spill] sm:$0xff]  ;;  %v7684_v14 = vld [vmem:[#allocation74_spill] sm:$0xff]  ;;  %v7687_v7 = vld [vmem:[#allocation163_spill] sm:$0xff]  ;;  %v1189_v10 = vrot.slane %v1188_v35, 4  ;;  %v1196_v8 = vrot.slane %v1195_v61, 4 }
 0x1ba   :  { %7655 = vst [vmem:[#allocation219_spill] sm:$0xff] %v5691_v5  ;;  %v1419_v59 = vadd.f32 %v7683_v58, %v7682_v47  ;;  %v7685_v63 = vld [vmem:[#allocation162_spill] sm:$0xff]  ;;  %v7688_v43 = vld [vmem:[#allocation76_spill] sm:$0xff]  ;;  %v7690_v60 = vld [vmem:[#allocation77_spill] sm:$0xff]  ;;  %v1210_v40 = vrot.slane %v1209_v38, 4  ;;  %v1217_v9 = vrot.slane %v1216_v12, 4 }
 0x1bb   :  { %7656 = vst [vmem:[#allocation220_spill] sm:$0xff] %v5695_v17  ;;  %v1224_v47 = vrot.slane %v1223_v54, 4  ;;  %v1399_v58 = vrot.slane %v1398_v2, 4 }
 0x1bc   :  { %7657 = vst [vmem:[#allocation221_spill] sm:$0xff] %v5699_v24  ;;  %v1211_v5 = vadd.f32 %v1210_v40, %v1209_v38  ;;  %v7702_v40 = vld [vmem:[#allocation53_spill] sm:$0xff] }
 0x1bd   :  { %7658 = vst [vmem:[#allocation222_spill] sm:$0xff] %v5703_v0  ;;  %v1190_v0 = vadd.f32 %v1189_v10, %v1188_v35  ;;  %v5757_v50 = vadd.f32 %v1224_v47, %v1223_v54  ;;  %v1400_v20 = vadd.f32 %v1399_v58, %v1398_v2 }
 0x1be   :  { %7659 = vst [vmem:[#allocation223_spill] sm:$0xff] %v5707_v4  ;;  %v1212_v10 = vrot.slane %v1211_v5, 2 }
 0x1bf   :  { %7660 = vst [vmem:[#allocation224_spill] sm:$0xff] %v5709_v46  ;;  %v1426_v46 = vadd.f32 %v7685_v63, %v7684_v14  ;;  %v1413_v14 = vrot.slane %v1412_v30, 4  ;;  %v1420_v63 = vrot.slane %v1419_v59, 4  ;;  %v1191_v31 = vrot.slane %v1190_v0, 2 }
 0x1c0   :  { %7661 = vst [vmem:[#allocation225_spill] sm:$0xff] %v5711_v32  ;;  %v1406_v32 = vrot.slane %v1405_v45, 4  ;;  %v1401_v38 = vrot.slane %v1400_v20, 2 }
 0x1c1   :  { %7663 = vst [vmem:[#allocation226_spill] sm:$0xff] %v5715_v44  ;;  %v1176_v44 = vadd.f32 %v1175_v57, %v1174_v41  ;;  %v1427_v4 = vrot.slane %v1426_v46, 4  ;;  %v1414_v57 = vadd.f32 %v1413_v14, %v1412_v30  ;;  %v1421_v48 = vadd.f32 %v1420_v63, %v1419_v59 }
 0x1c2   :  { %7664 = vst [vmem:[#allocation227_spill] sm:$0xff] %v5717_v15  ;;  %v1203_v15 = vrot.slane %v1202_v3, 4  ;;  %v1407_v41 = vadd.f32 %v1406_v32, %v1405_v45 }
 0x1c3   :  { %7665 = vst [vmem:[#allocation228_spill] sm:$0xff] %v5719_v21  ;;  %v7691_v21 = vld [vmem:[#allocation165_spill] sm:$0xff]  ;;  %v1428_v33 = vadd.f32 %v1427_v4, %v1426_v46  ;;  %v1415_v54 = vrot.slane %v1414_v57, 2  ;;  %v1422_v32 = vrot.slane %v1421_v48, 2  ;;  %v5764_v46 = vadd.f32 %v1191_v31, %v1190_v0 }
 0x1c4   :  { %7666 = vst [vmem:[#allocation229_spill] sm:$0xff] %v5721_v56  ;;  %v7689_v56 = vld [vmem:[#allocation164_spill] sm:$0xff]  ;;  %v1447_v52 = vadd.f32 %v7691_v21, %v7690_v60  ;;  %v1218_v21 = vadd.f32 %v1217_v9, %v1216_v12  ;;  %v1177_v60 = vrot.slane %v1176_v44, 2  ;;  %v1408_v12 = vrot.slane %v1407_v41, 2  ;;  %v7703_v9 = vld [vmem:[#allocation29_spill] sm:$0xff] }
 0x1c5   :  { %7667 = vst [vmem:[#allocation230_spill] sm:$0xff] %v5723_v19  ;;  %v1182_v19 = vrot.slane %v1181_v23, 4  ;;  %v1440_v62 = vadd.f32 %v7689_v56, %v7688_v43  ;;  %v1197_v56 = vadd.f32 %v1196_v8, %v1195_v61  ;;  %v1204_v43 = vadd.f32 %v1203_v15, %v1202_v3  ;;  %v7750_v3 = vld [vmem:[#allocation87_spill] sm:$0xff] }
 0x1c6   :  { %7668 = vst [vmem:[#allocation231_spill] sm:$0xff] %v5725_v25  ;;  %v1433_v25 = vadd.f32 %v7687_v7, %v7686_v49  ;;  %v1448_v17 = vrot.slane %v1447_v52, 4  ;;  %v1219_v61 = vrot.slane %v1218_v21, 2  ;;  %v5759_v15 = vadd.f32 %v1177_v60, %v1176_v44 }
 0x1c7   :  { %v1183_v7 = vadd.f32 %v1182_v19, %v1181_v23  ;;  %v1441_v24 = vrot.slane %v1440_v62, 4  ;;  %7692 = vst [vmem:[#allocation232_spill] sm:$0xff] %v5757_v50  ;;  %v1198_v23 = vrot.slane %v1197_v56, 2  ;;  %v1205_v35 = vrot.slane %v1204_v43, 2 }
 0x1c8   :  { %v1434_v49 = vrot.slane %v1433_v25, 4  ;;  %v1449_v19 = vadd.f32 %v1448_v17, %v1447_v52  ;;  %7693 = vst [vmem:[#allocation27_spill] sm:$0xff] %v5759_v15  ;;  %v1429_v2 = vrot.slane %v1428_v33, 2  ;;  %v5770_v44 = vadd.f32 %v1212_v10, %v1211_v5  ;;  %v7701_v52 = vld [vmem:[#allocation28_spill] sm:$0xff] }
 0x1c9   :  { %v1184_v55 = vrot.slane %v1183_v7, 2  ;;  %v1442_v22 = vadd.f32 %v1441_v24, %v1440_v62  ;;  %7695 = vst [vmem:[#allocation21_spill] sm:$0xff] %v5764_v46  ;;  %v5768_v30 = vadd.f32 %v1205_v35, %v1204_v43  ;;  %v5772_v59 = vadd.f32 %v1219_v61, %v1218_v21  ;;  %v7700_v62 = vld [vmem:[#allocation52_spill] sm:$0xff]  ;;  %v7708_v43 = vld [vmem:[#allocation31_spill] sm:$0xff]  ;;  %v7710_v35 = vld [vmem:[#allocation233_spill] sm:$0xff] }
 0x1ca   :  { %v1435_v16 = vadd.f32 %v1434_v49, %v1433_v25  ;;  %v1450_v17 = vrot.slane %v1449_v19, 2  ;;  %v5766_v25 = vadd.f32 %v1198_v23, %v1197_v56  ;;  %7698 = vst [vmem:[#allocation24_spill] sm:$0xff] %v5770_v44  ;;  %v1230_v8 = vadd.f32 %v7701_v52, %v7700_v62  ;;  %v7704_v49 = vld [vmem:[#allocation54_spill] sm:$0xff]  ;;  %v7707_v5 = vld [vmem:[#allocation56_spill] sm:$0xff]  ;;  %v7754_v44 = vld [vmem:[#allocation89_spill] sm:$0xff] }
 0x1cb   :  { %v5762_v4 = vadd.f32 %v1184_v55, %v1183_v7  ;;  %v1443_v24 = vrot.slane %v1442_v22, 2  ;;  %7697 = vst [vmem:[#allocation23_spill] sm:$0xff] %v5768_v30  ;;  %v1237_v47 = vadd.f32 %v7703_v9, %v7702_v40  ;;  %v1402_v55 = vadd.f32 %v1401_v38, %v1400_v20  ;;  %v7705_v7 = vld [vmem:[#allocation30_spill] sm:$0xff]  ;;  %v7711_v10 = vld [vmem:[#allocation32_spill] sm:$0xff]  ;;  %v7746_v40 = vld [vmem:[#allocation85_spill] sm:$0xff] }
 0x1cc   :  { %v1436_v45 = vrot.slane %v1435_v16, 2  ;;  %7696 = vst [vmem:[#allocation22_spill] sm:$0xff] %v5766_v25  ;;  %v1409_v58 = vadd.f32 %v1408_v12, %v1407_v41  ;;  %v1416_v31 = vadd.f32 %v1415_v54, %v1414_v57  ;;  %v1423_v0 = vadd.f32 %v1422_v32, %v1421_v48  ;;  %v7713_v20 = vld [vmem:[#allocation234_spill] sm:$0xff]  ;;  %v7714_v41 = vld [vmem:[#allocation33_spill] sm:$0xff]  ;;  %v7719_v38 = vld [vmem:[#allocation236_spill] sm:$0xff] }
 0x1cd   :  { %7694 = vst [vmem:[#allocation20_spill] sm:$0xff] %v5762_v4  ;;  %v1430_v14 = vadd.f32 %v1429_v2, %v1428_v33  ;;  %v5780_v56 = vadd.f32 %v7705_v7, %v7704_v49  ;;  %v5784_v21 = vadd.f32 %v7708_v43, %v7707_v5  ;;  %v1444_v60 = vadd.f32 %v1443_v24, %v1442_v22  ;;  %v7716_v33 = vld [vmem:[#allocation235_spill] sm:$0xff]  ;;  %v7748_v52 = vld [vmem:[#allocation86_spill] sm:$0xff] }
 0x1ce   :  { %7699 = vst [vmem:[#allocation25_spill] sm:$0xff] %v5772_v59  ;;  %v1437_v63 = vadd.f32 %v1436_v45, %v1435_v16  ;;  %v1451_v23 = vadd.f32 %v1450_v17, %v1449_v19  ;;  %v5788_v61 = vadd.f32 %v7711_v10, %v7710_v35  ;;  %v5792_v57 = vadd.f32 %v7714_v41, %v7713_v20  ;;  %v7717_v16 = vld [vmem:[#allocation34_spill] sm:$0xff]  ;;  %v7720_v12 = vld [vmem:[#allocation35_spill] sm:$0xff]  ;;  %v7752_v59 = vld [vmem:[#allocation88_spill] sm:$0xff] }
 0x1cf   :  { %7706 = vst [vmem:[#allocation26_spill] sm:$0xff] %v5780_v56  ;;  %v5796_v48 = vadd.f32 %v7717_v16, %v7716_v33  ;;  %v5800_v54 = vadd.f32 %v7720_v12, %v7719_v38  ;;  %v1231_v32 = vrot.slane %v1230_v8, 4  ;;  %v1238_v2 = vrot.slane %v1237_v47, 4  ;;  %v7756_v30 = vld [vmem:[#allocation90_spill] sm:$0xff] }
 0x1d0   :  { %7709 = vst [vmem:[#allocation70_spill] sm:$0xff] %v5784_v21  ;;  %v1403_v22 = vrot.slane %v1402_v55, 1  ;;  %v1410_v19 = vrot.slane %v1409_v58, 1  ;;  %v1417_v45 = vrot.slane %v1416_v31, 1  ;;  %v1424_v24 = vrot.slane %v1423_v0, 1 }
 0x1d1   :  { %7712 = vst [vmem:[#allocation158_spill] sm:$0xff] %v5788_v61  ;;  %v1431_v17 = vrot.slane %v1430_v14, 1  ;;  %v1438_v62 = vrot.slane %v1437_v63, 1  ;;  %v1445_v9 = vrot.slane %v1444_v60, 1  ;;  %v1452_v49 = vrot.slane %v1451_v23, 1 }
 0x1d2   :  { %7715 = vst [vmem:[#allocation71_spill] sm:$0xff] %v5792_v57  ;;  %v5808_v10 = vadd.f32 %v1231_v32, %v1230_v8  ;;  %v5810_v20 = vadd.f32 %v1238_v2, %v1237_v47  ;;  %v5812_v41 = vadd.f32 %v1403_v22, %v1402_v55  ;;  %v5814_v33 = vadd.f32 %v1410_v19, %v1409_v58  ;;  %v7732_v8 = vld [vmem:[#allocation78_spill] sm:$0xff]  ;;  %v7734_v2 = vld [vmem:[#allocation79_spill] sm:$0xff]  ;;  %v7736_v58 = vld [vmem:[#allocation80_spill] sm:$0xff] }
 0x1d3   :  { %7718 = vst [vmem:[#allocation159_spill] sm:$0xff] %v5796_v48  ;;  %v5816_v16 = vadd.f32 %v1417_v45, %v1416_v31  ;;  %v5818_v38 = vadd.f32 %v1424_v24, %v1423_v0  ;;  %v5820_v12 = vadd.f32 %v1431_v17, %v1430_v14  ;;  %v5822_v7 = vadd.f32 %v1438_v62, %v1437_v63  ;;  %v7733_v32 = vld [vmem:[#allocation166_spill] sm:$0xff]  ;;  %v7735_v55 = vld [vmem:[#allocation167_spill] sm:$0xff]  ;;  %v7737_v19 = vld [vmem:[#allocation168_spill] sm:$0xff] }
 0x1d4   :  { %7721 = vst [vmem:[#allocation72_spill] sm:$0xff] %v5800_v54  ;;  %v5824_v5 = vadd.f32 %v1445_v9, %v1444_v60  ;;  %v5826_v43 = vadd.f32 %v1452_v49, %v1451_v23  ;;  %v1454_v47 = vadd.f32 %v7733_v32, %v7732_v8  ;;  %v1461_v22 = vadd.f32 %v7735_v55, %v7734_v2  ;;  %v7738_v45 = vld [vmem:[#allocation81_spill] sm:$0xff]  ;;  %v7740_v14 = vld [vmem:[#allocation82_spill] sm:$0xff]  ;;  %v7742_v62 = vld [vmem:[#allocation83_spill] sm:$0xff] }
 0x1d5   :  { %7722 = vst [vmem:[#allocation160_spill] sm:$0xff] %v5808_v10  ;;  %v1468_v31 = vadd.f32 %v7737_v19, %v7736_v58  ;;  %v7739_v0 = vld [vmem:[#allocation169_spill] sm:$0xff]  ;;  %v7741_v17 = vld [vmem:[#allocation170_spill] sm:$0xff]  ;;  %v7743_v60 = vld [vmem:[#allocation171_spill] sm:$0xff] }
 0x1d6   :  { %7723 = vst [vmem:[#allocation73_spill] sm:$0xff] %v5810_v20  ;;  %v1475_v24 = vadd.f32 %v7739_v0, %v7738_v45  ;;  %v1482_v63 = vadd.f32 %v7741_v17, %v7740_v14  ;;  %v1489_v9 = vadd.f32 %v7743_v60, %v7742_v62  ;;  %v7744_v23 = vld [vmem:[#allocation84_spill] sm:$0xff]  ;;  %v7747_v8 = vld [vmem:[#allocation173_spill] sm:$0xff]  ;;  %v7749_v2 = vld [vmem:[#allocation174_spill] sm:$0xff]  ;;  %v1455_v48 = vrot.slane %v1454_v47, 4 }
 0x1d7   :  { %7724 = vst [vmem:[#allocation161_spill] sm:$0xff] %v5812_v41  ;;  %v7745_v49 = vld [vmem:[#allocation172_spill] sm:$0xff]  ;;  %v1503_v32 = vadd.f32 %v7747_v8, %v7746_v40  ;;  %v1510_v55 = vadd.f32 %v7749_v2, %v7748_v52  ;;  %v7751_v58 = vld [vmem:[#allocation175_spill] sm:$0xff]  ;;  %v7755_v14 = vld [vmem:[#allocation177_spill] sm:$0xff]  ;;  %v1462_v40 = vrot.slane %v1461_v22, 4 }
 0x1d8   :  { %7725 = vst [vmem:[#allocation74_spill] sm:$0xff] %v5814_v33  ;;  %v1496_v35 = vadd.f32 %v7745_v49, %v7744_v23  ;;  %v1517_v19 = vadd.f32 %v7751_v58, %v7750_v3  ;;  %v7753_v45 = vld [vmem:[#allocation176_spill] sm:$0xff]  ;;  %v1531_v17 = vadd.f32 %v7755_v14, %v7754_v44  ;;  %v7757_v62 = vld [vmem:[#allocation178_spill] sm:$0xff]  ;;  %v7758_v54 = vld [vmem:[#allocation91_spill] sm:$0xff]  ;;  %v1469_v58 = vrot.slane %v1468_v31, 4 }
 0x1d9   :  { %7726 = vst [vmem:[#allocation162_spill] sm:$0xff] %v5816_v16  ;;  %v1524_v0 = vadd.f32 %v7753_v45, %v7752_v59  ;;  %v1538_v60 = vadd.f32 %v7757_v62, %v7756_v30  ;;  %v7759_v23 = vld [vmem:[#allocation179_spill] sm:$0xff]  ;;  %v7760_v8 = vld [vmem:[#allocation92_spill] sm:$0xff]  ;;  %v7762_v2 = vld [vmem:[#allocation93_spill] sm:$0xff]  ;;  %v1476_v57 = vrot.slane %v1475_v24, 4  ;;  %v1483_v59 = vrot.slane %v1482_v63, 4 }
 0x1da   :  { %7727 = vst [vmem:[#allocation75_spill] sm:$0xff] %v5818_v38  ;;  %v1545_v49 = vadd.f32 %v7759_v23, %v7758_v54  ;;  %v7761_v20 = vld [vmem:[#allocation180_spill] sm:$0xff]  ;;  %v7763_v10 = vld [vmem:[#allocation181_spill] sm:$0xff]  ;;  %v1490_v45 = vrot.slane %v1489_v9, 4  ;;  %v1497_v61 = vrot.slane %v1496_v35, 4  ;;  %v1504_v44 = vrot.slane %v1503_v32, 4 }
 0x1db   :  { %7728 = vst [vmem:[#allocation163_spill] sm:$0xff] %v5820_v12  ;;  %v1552_v52 = vadd.f32 %v7761_v20, %v7760_v8  ;;  %v1559_v3 = vadd.f32 %v7763_v10, %v7762_v2  ;;  %v1511_v14 = vrot.slane %v1510_v55, 4  ;;  %v1518_v21 = vrot.slane %v1517_v19, 4 }
 0x1dc   :  { %7729 = vst [vmem:[#allocation76_spill] sm:$0xff] %v5822_v7  ;;  %v1525_v30 = vrot.slane %v1524_v0, 4  ;;  %v1532_v62 = vrot.slane %v1531_v17, 4  ;;  %v1539_v25 = vrot.slane %v1538_v60, 4  ;;  %v1546_v54 = vrot.slane %v1545_v49, 4 }
 0x1dd   :  { %7730 = vst [vmem:[#allocation164_spill] sm:$0xff] %v5824_v5  ;;  %v1456_v23 = vadd.f32 %v1455_v48, %v1454_v47  ;;  %v1463_v46 = vadd.f32 %v1462_v40, %v1461_v22  ;;  %v1553_v4 = vrot.slane %v1552_v52, 4  ;;  %v1560_v15 = vrot.slane %v1559_v3, 4 }
 0x1de   :  { %7731 = vst [vmem:[#allocation77_spill] sm:$0xff] %v5826_v43  ;;  %v1470_v20 = vadd.f32 %v1469_v58, %v1468_v31  ;;  %v1477_v8 = vadd.f32 %v1476_v57, %v1475_v24  ;;  %v1484_v56 = vadd.f32 %v1483_v59, %v1482_v63  ;;  %v1491_v10 = vadd.f32 %v1490_v45, %v1489_v9 }
 0x1df   :  { %v1498_v2 = vadd.f32 %v1497_v61, %v1496_v35  ;;  %v1505_v50 = vadd.f32 %v1504_v44, %v1503_v32  ;;  %v1512_v41 = vadd.f32 %v1511_v14, %v1510_v55  ;;  %v1519_v43 = vadd.f32 %v1518_v21, %v1517_v19 }
 0x1e0   :  { %v1526_v5 = vadd.f32 %v1525_v30, %v1524_v0  ;;  %v1533_v7 = vadd.f32 %v1532_v62, %v1531_v17  ;;  %v1540_v12 = vadd.f32 %v1539_v25, %v1538_v60  ;;  %v1547_v38 = vadd.f32 %v1546_v54, %v1545_v49 }
 0x1e1   :  { %v1457_v16 = vrot.slane %v1456_v23, 2  ;;  %v1464_v33 = vrot.slane %v1463_v46, 2  ;;  %v1554_v36 = vadd.f32 %v1553_v4, %v1552_v52  ;;  %v1561_v18 = vadd.f32 %v1560_v15, %v1559_v3 }
 0x1e2   :  { %v1471_v48 = vrot.slane %v1470_v20, 2  ;;  %v1478_v47 = vrot.slane %v1477_v8, 2  ;;  %v1485_v22 = vrot.slane %v1484_v56, 2  ;;  %v1492_v40 = vrot.slane %v1491_v10, 2 }
 0x1e3   :  { %v1499_v31 = vrot.slane %v1498_v2, 2  ;;  %v1506_v57 = vrot.slane %v1505_v50, 2  ;;  %v1513_v24 = vrot.slane %v1512_v41, 2  ;;  %v1520_v63 = vrot.slane %v1519_v43, 2 }
 0x1e4   :  { %v1527_v61 = vrot.slane %v1526_v5, 2  ;;  %v1534_v35 = vrot.slane %v1533_v7, 2  ;;  %v1541_v9 = vrot.slane %v1540_v12, 2  ;;  %v1548_v21 = vrot.slane %v1547_v38, 2 }
 0x1e5   :  { %v1458_v32 = vadd.f32 %v1457_v16, %v1456_v23  ;;  %v1465_v55 = vadd.f32 %v1464_v33, %v1463_v46  ;;  %v1555_v25 = vrot.slane %v1554_v36, 2  ;;  %v1562_v19 = vrot.slane %v1561_v18, 2 }
 0x1e6   :  { %v1472_v0 = vadd.f32 %v1471_v48, %v1470_v20  ;;  %v1479_v17 = vadd.f32 %v1478_v47, %v1477_v8  ;;  %v1486_v4 = vadd.f32 %v1485_v22, %v1484_v56  ;;  %v1493_v15 = vadd.f32 %v1492_v40, %v1491_v10 }
 0x1e7   :  { %v1500_v60 = vadd.f32 %v1499_v31, %v1498_v2  ;;  %v1507_v49 = vadd.f32 %v1506_v57, %v1505_v50  ;;  %v1514_v52 = vadd.f32 %v1513_v24, %v1512_v41  ;;  %v1521_v3 = vadd.f32 %v1520_v63, %v1519_v43 }
 0x1e8   :  { %v1528_v58 = vadd.f32 %v1527_v61, %v1526_v5  ;;  %v1535_v59 = vadd.f32 %v1534_v35, %v1533_v7  ;;  %v1542_v45 = vadd.f32 %v1541_v9, %v1540_v12  ;;  %v1549_v44 = vadd.f32 %v1548_v21, %v1547_v38 }
 0x1e9   :  { %v1459_v14 = vrot.slane %v1458_v32, 1  ;;  %v1466_v30 = vrot.slane %v1465_v55, 1  ;;  %v1556_v62 = vadd.f32 %v1555_v25, %v1554_v36  ;;  %v1563_v54 = vadd.f32 %v1562_v19, %v1561_v18  ;;  %v7782_v19 = vld [vmem:[#allocation95_spill] sm:$0xff] }
 0x1ea   :  { %v1473_v16 = vrot.slane %v1472_v0, 1  ;;  %v1480_v46 = vrot.slane %v1479_v17, 1  ;;  %v1487_v33 = vrot.slane %v1486_v4, 1  ;;  %v1494_v23 = vrot.slane %v1493_v15, 1 }
 0x1eb   :  { %v1501_v20 = vrot.slane %v1500_v60, 1  ;;  %v1508_v8 = vrot.slane %v1507_v49, 1  ;;  %v1515_v56 = vrot.slane %v1514_v52, 1  ;;  %v1522_v10 = vrot.slane %v1521_v3, 1 }
 0x1ec   :  { %v1529_v2 = vrot.slane %v1528_v58, 1  ;;  %v1536_v50 = vrot.slane %v1535_v59, 1  ;;  %v1543_v41 = vrot.slane %v1542_v45, 1  ;;  %v1550_v43 = vrot.slane %v1549_v44, 1 }
 0x1ed   :  { %v5860_v5 = vadd.f32 %v1459_v14, %v1458_v32  ;;  %v5862_v7 = vadd.f32 %v1466_v30, %v1465_v55  ;;  %v1557_v38 = vrot.slane %v1556_v62, 1  ;;  %v1564_v12 = vrot.slane %v1563_v54, 1  ;;  %v7780_v32 = vld [vmem:[#allocation94_spill] sm:$0xff]  ;;  %v7791_v14 = vld [vmem:[#allocation187_spill] sm:$0xff] }
 0x1ee   :  { %v5864_v36 = vadd.f32 %v1473_v16, %v1472_v0  ;;  %v5866_v18 = vadd.f32 %v1480_v46, %v1479_v17  ;;  %v5868_v48 = vadd.f32 %v1487_v33, %v1486_v4  ;;  %v5870_v47 = vadd.f32 %v1494_v23, %v1493_v15  ;;  %v7781_v55 = vld [vmem:[#allocation182_spill] sm:$0xff]  ;;  %v7783_v0 = vld [vmem:[#allocation183_spill] sm:$0xff]  ;;  %v7784_v4 = vld [vmem:[#allocation96_spill] sm:$0xff] }
 0x1ef   :  { %7764 = vst [vmem:[#allocation165_spill] sm:$0xff] %v5860_v5  ;;  %v5872_v22 = vadd.f32 %v1501_v20, %v1500_v60  ;;  %v5874_v40 = vadd.f32 %v1508_v8, %v1507_v49  ;;  %v5876_v31 = vadd.f32 %v1515_v56, %v1514_v52  ;;  %v5878_v57 = vadd.f32 %v1522_v10, %v1521_v3  ;;  %v7785_v15 = vld [vmem:[#allocation184_spill] sm:$0xff]  ;;  %v7786_v49 = vld [vmem:[#allocation97_spill] sm:$0xff]  ;;  %v7796_v20 = vld [vmem:[#allocation102_spill] sm:$0xff] }
 0x1f0   :  { %7765 = vst [vmem:[#allocation52_spill] sm:$0xff] %v5862_v7  ;;  %v5880_v24 = vadd.f32 %v1529_v2, %v1528_v58  ;;  %v5882_v63 = vadd.f32 %v1536_v50, %v1535_v59  ;;  %v5884_v61 = vadd.f32 %v1543_v41, %v1542_v45  ;;  %v5886_v35 = vadd.f32 %v1550_v43, %v1549_v44  ;;  %v7787_v52 = vld [vmem:[#allocation185_spill] sm:$0xff]  ;;  %v7788_v58 = vld [vmem:[#allocation98_spill] sm:$0xff]  ;;  %v7790_v44 = vld [vmem:[#allocation99_spill] sm:$0xff] }
 0x1f1   :  { %7766 = vst [vmem:[#allocation28_spill] sm:$0xff] %v5864_v36  ;;  %v5888_v9 = vadd.f32 %v1557_v38, %v1556_v62  ;;  %v5890_v21 = vadd.f32 %v1564_v12, %v1563_v54  ;;  %v1566_v25 = vadd.f32 %v7781_v55, %v7780_v32  ;;  %v1573_v17 = vadd.f32 %v7783_v0, %v7782_v19  ;;  %v7789_v59 = vld [vmem:[#allocation186_spill] sm:$0xff]  ;;  %v7792_v62 = vld [vmem:[#allocation100_spill] sm:$0xff]  ;;  %v7794_v46 = vld [vmem:[#allocation101_spill] sm:$0xff] }
 0x1f2   :  { %7767 = vst [vmem:[#allocation53_spill] sm:$0xff] %v5866_v18  ;;  %v1580_v60 = vadd.f32 %v7785_v15, %v7784_v4  ;;  %v1587_v3 = vadd.f32 %v7787_v52, %v7786_v49  ;;  %v1594_v45 = vadd.f32 %v7789_v59, %v7788_v58  ;;  %v1601_v30 = vadd.f32 %v7791_v14, %v7790_v44  ;;  %v7793_v54 = vld [vmem:[#allocation188_spill] sm:$0xff]  ;;  %v7795_v33 = vld [vmem:[#allocation189_spill] sm:$0xff]  ;;  %v7797_v8 = vld [vmem:[#allocation190_spill] sm:$0xff] }
 0x1f3   :  { %7768 = vst [vmem:[#allocation29_spill] sm:$0xff] %v5868_v48  ;;  %v1608_v16 = vadd.f32 %v7793_v54, %v7792_v62  ;;  %v1615_v23 = vadd.f32 %v7795_v33, %v7794_v46  ;;  %v1622_v56 = vadd.f32 %v7797_v8, %v7796_v20  ;;  %v7798_v10 = vld [vmem:[#allocation103_spill] sm:$0xff]  ;;  %v7800_v41 = vld [vmem:[#allocation104_spill] sm:$0xff]  ;;  %v7802_v12 = vld [vmem:[#allocation105_spill] sm:$0xff]  ;;  %v1567_v58 = vrot.slane %v1566_v25, 4 }
 0x1f4   :  { %7769 = vst [vmem:[#allocation54_spill] sm:$0xff] %v5870_v47  ;;  %v7799_v2 = vld [vmem:[#allocation191_spill] sm:$0xff]  ;;  %v7801_v43 = vld [vmem:[#allocation192_spill] sm:$0xff]  ;;  %v7803_v32 = vld [vmem:[#allocation193_spill] sm:$0xff]  ;;  %v1574_v59 = vrot.slane %v1573_v17, 4  ;;  %v1581_v20 = vrot.slane %v1580_v60, 4 }
 0x1f5   :  { %7770 = vst [vmem:[#allocation30_spill] sm:$0xff] %v5872_v22  ;;  %v1629_v50 = vadd.f32 %v7799_v2, %v7798_v10  ;;  %v1636_v38 = vadd.f32 %v7801_v43, %v7800_v41  ;;  %v1643_v55 = vadd.f32 %v7803_v32, %v7802_v12  ;;  %v7804_v19 = vld [vmem:[#allocation106_spill] sm:$0xff]  ;;  %v7806_v15 = vld [vmem:[#allocation107_spill] sm:$0xff]  ;;  %v7808_v44 = vld [vmem:[#allocation108_spill] sm:$0xff]  ;;  %v1588_v8 = vrot.slane %v1587_v3, 4 }
 0x1f6   :  { %7771 = vst [vmem:[#allocation56_spill] sm:$0xff] %v5874_v40  ;;  %v7805_v0 = vld [vmem:[#allocation194_spill] sm:$0xff]  ;;  %v7807_v49 = vld [vmem:[#allocation195_spill] sm:$0xff]  ;;  %v7809_v14 = vld [vmem:[#allocation196_spill] sm:$0xff]  ;;  %v1595_v10 = vrot.slane %v1594_v45, 4  ;;  %v1602_v2 = vrot.slane %v1601_v30, 4  ;;  %v1575_v5 = vadd.f32 %v1574_v59, %v1573_v17 }
 0x1f7   :  { %7772 = vst [vmem:[#allocation31_spill] sm:$0xff] %v5876_v31  ;;  %v1650_v4 = vadd.f32 %v7805_v0, %v7804_v19  ;;  %v1657_v52 = vadd.f32 %v7807_v49, %v7806_v15  ;;  %v1664_v62 = vadd.f32 %v7809_v14, %v7808_v44  ;;  %v7810_v54 = vld [vmem:[#allocation109_spill] sm:$0xff]  ;;  %v1609_v41 = vrot.slane %v1608_v16, 4 }
 0x1f8   :  { %7773 = vst [vmem:[#allocation233_spill] sm:$0xff] %v5878_v57  ;;  %v7811_v46 = vld [vmem:[#allocation197_spill] sm:$0xff]  ;;  %v1616_v43 = vrot.slane %v1615_v23, 4  ;;  %v1623_v12 = vrot.slane %v1622_v56, 4  ;;  %v1630_v32 = vrot.slane %v1629_v50, 4  ;;  %v1637_v19 = vrot.slane %v1636_v38, 4 }
 0x1f9   :  { %7774 = vst [vmem:[#allocation32_spill] sm:$0xff] %v5880_v24  ;;  %v1671_v33 = vadd.f32 %v7811_v46, %v7810_v54  ;;  %v1644_v0 = vrot.slane %v1643_v55, 4  ;;  %v1651_v31 = vrot.slane %v1650_v4, 4  ;;  %v1658_v15 = vrot.slane %v1657_v52, 4 }
 0x1fa   :  { %7775 = vst [vmem:[#allocation234_spill] sm:$0xff] %v5882_v63  ;;  %v1568_v49 = vadd.f32 %v1567_v58, %v1566_v25  ;;  %v1582_v44 = vadd.f32 %v1581_v20, %v1580_v60  ;;  %v1589_v14 = vadd.f32 %v1588_v8, %v1587_v3  ;;  %v1603_v54 = vadd.f32 %v1602_v2, %v1601_v30 }
 0x1fb   :  { %7776 = vst [vmem:[#allocation33_spill] sm:$0xff] %v5884_v61  ;;  %v1610_v46 = vadd.f32 %v1609_v41, %v1608_v16  ;;  %v1617_v61 = vadd.f32 %v1616_v43, %v1615_v23  ;;  %v1624_v63 = vadd.f32 %v1623_v12, %v1622_v56  ;;  %v1631_v24 = vadd.f32 %v1630_v32, %v1629_v50 }
 0x1fc   :  { %7777 = vst [vmem:[#allocation235_spill] sm:$0xff] %v5886_v35  ;;  %v1596_v35 = vadd.f32 %v1595_v10, %v1594_v45  ;;  %v1638_v57 = vadd.f32 %v1637_v19, %v1636_v38  ;;  %v1645_v40 = vadd.f32 %v1644_v0, %v1643_v55  ;;  %v1652_v22 = vadd.f32 %v1651_v31, %v1650_v4 }
 0x1fd   :  { %7778 = vst [vmem:[#allocation34_spill] sm:$0xff] %v5888_v9  ;;  %v1672_v9 = vrot.slane %v1671_v33, 4  ;;  %v1659_v47 = vadd.f32 %v1658_v15, %v1657_v52  ;;  %v1569_v48 = vrot.slane %v1568_v49, 2  ;;  %v1576_v18 = vrot.slane %v1575_v5, 2 }
 0x1fe   :  { %7779 = vst [vmem:[#allocation236_spill] sm:$0xff] %v5890_v21  ;;  %v1665_v21 = vrot.slane %v1664_v62, 4  ;;  %v1583_v25 = vrot.slane %v1582_v44, 2  ;;  %v1590_v17 = vrot.slane %v1589_v14, 2  ;;  %v1597_v58 = vrot.slane %v1596_v35, 2 }
 0x1ff   :  { %v1673_v7 = vadd.f32 %v1672_v9, %v1671_v33  ;;  %v1604_v59 = vrot.slane %v1603_v54, 2  ;;  %v1611_v60 = vrot.slane %v1610_v46, 2  ;;  %v1618_v3 = vrot.slane %v1617_v61, 2 }
 0x200   :  { %v1666_v36 = vadd.f32 %v1665_v21, %v1664_v62  ;;  %v1625_v45 = vrot.slane %v1624_v63, 2  ;;  %v1632_v30 = vrot.slane %v1631_v24, 2  ;;  %v1639_v16 = vrot.slane %v1638_v57, 2 }
 0x201   :  { %v1646_v23 = vrot.slane %v1645_v40, 2  ;;  %v1653_v56 = vrot.slane %v1652_v22, 2  ;;  %v1660_v50 = vrot.slane %v1659_v47, 2  ;;  %v1570_v38 = vadd.f32 %v1569_v48, %v1568_v49 }
 0x202   :  { %v1577_v55 = vadd.f32 %v1576_v18, %v1575_v5  ;;  %v1667_v31 = vrot.slane %v1666_v36, 2  ;;  %v1674_v4 = vrot.slane %v1673_v7, 2  ;;  %v1584_v52 = vadd.f32 %v1583_v25, %v1582_v44 }
 0x203   :  { %v1591_v20 = vadd.f32 %v1590_v17, %v1589_v14  ;;  %v1598_v21 = vadd.f32 %v1597_v58, %v1596_v35  ;;  %v1605_v9 = vadd.f32 %v1604_v59, %v1603_v54  ;;  %v1612_v62 = vadd.f32 %v1611_v60, %v1610_v46 }
 0x204   :  { %v1619_v33 = vadd.f32 %v1618_v3, %v1617_v61  ;;  %v1626_v8 = vadd.f32 %v1625_v45, %v1624_v63  ;;  %v1633_v10 = vadd.f32 %v1632_v30, %v1631_v24  ;;  %v1640_v2 = vadd.f32 %v1639_v16, %v1638_v57 }
 0x205   :  { %v1647_v41 = vadd.f32 %v1646_v23, %v1645_v40  ;;  %v1654_v43 = vadd.f32 %v1653_v56, %v1652_v22  ;;  %v1661_v12 = vadd.f32 %v1660_v50, %v1659_v47  ;;  %v1571_v32 = vrot.slane %v1570_v38, 1 }
 0x206   :  { %v1578_v19 = vrot.slane %v1577_v55, 1  ;;  %v1668_v0 = vadd.f32 %v1667_v31, %v1666_v36  ;;  %v1675_v15 = vadd.f32 %v1674_v4, %v1673_v7  ;;  %v1585_v48 = vrot.slane %v1584_v52, 1  ;;  %v7830_v4 = vld [vmem:[#allocation111_spill] sm:$0xff] }
 0x207   :  { %v1592_v5 = vrot.slane %v1591_v20, 1  ;;  %v1599_v18 = vrot.slane %v1598_v21, 1  ;;  %v1606_v49 = vrot.slane %v1605_v9, 1  ;;  %v1613_v44 = vrot.slane %v1612_v62, 1 }
 0x208   :  { %v1620_v14 = vrot.slane %v1619_v33, 1  ;;  %v1627_v35 = vrot.slane %v1626_v8, 1  ;;  %v1634_v54 = vrot.slane %v1633_v10, 1  ;;  %v1641_v46 = vrot.slane %v1640_v2, 1 }
 0x209   :  { %v1648_v61 = vrot.slane %v1647_v41, 1  ;;  %v1655_v63 = vrot.slane %v1654_v43, 1  ;;  %v1662_v24 = vrot.slane %v1661_v12, 1  ;;  %v5924_v57 = vadd.f32 %v1571_v32, %v1570_v38  ;;  %v7828_v38 = vld [vmem:[#allocation110_spill] sm:$0xff]  ;;  %v7839_v32 = vld [vmem:[#allocation203_spill] sm:$0xff] }
 0x20a   :  { %v5926_v22 = vadd.f32 %v1578_v19, %v1577_v55  ;;  %v1669_v47 = vrot.slane %v1668_v0, 1  ;;  %v1676_v40 = vrot.slane %v1675_v15, 1  ;;  %v5928_v36 = vadd.f32 %v1585_v48, %v1584_v52  ;;  %v7829_v55 = vld [vmem:[#allocation198_spill] sm:$0xff]  ;;  %v7831_v52 = vld [vmem:[#allocation199_spill] sm:$0xff] }
 0x20b   :  { %7812 = vst [vmem:[#allocation35_spill] sm:$0xff] %v5924_v57  ;;  %v5930_v7 = vadd.f32 %v1592_v5, %v1591_v20  ;;  %v5932_v25 = vadd.f32 %v1599_v18, %v1598_v21  ;;  %v5934_v17 = vadd.f32 %v1606_v49, %v1605_v9  ;;  %v5936_v58 = vadd.f32 %v1613_v44, %v1612_v62  ;;  %v7832_v21 = vld [vmem:[#allocation112_spill] sm:$0xff]  ;;  %v7842_v5 = vld [vmem:[#allocation117_spill] sm:$0xff]  ;;  %v7844_v44 = vld [vmem:[#allocation118_spill] sm:$0xff] }
 0x20c   :  { %7813 = vst [vmem:[#allocation78_spill] sm:$0xff] %v5926_v22  ;;  %v5938_v59 = vadd.f32 %v1620_v14, %v1619_v33  ;;  %v5940_v60 = vadd.f32 %v1627_v35, %v1626_v8  ;;  %v5942_v3 = vadd.f32 %v1634_v54, %v1633_v10  ;;  %v5944_v45 = vadd.f32 %v1641_v46, %v1640_v2  ;;  %v7833_v9 = vld [vmem:[#allocation200_spill] sm:$0xff]  ;;  %v7834_v33 = vld [vmem:[#allocation113_spill] sm:$0xff]  ;;  %v7836_v2 = vld [vmem:[#allocation114_spill] sm:$0xff] }
 0x20d   :  { %7814 = vst [vmem:[#allocation166_spill] sm:$0xff] %v5928_v36  ;;  %v5946_v30 = vadd.f32 %v1648_v61, %v1647_v41  ;;  %v5948_v16 = vadd.f32 %v1655_v63, %v1654_v43  ;;  %v5950_v23 = vadd.f32 %v1662_v24, %v1661_v12  ;;  %v5952_v56 = vadd.f32 %v1669_v47, %v1668_v0  ;;  %v7835_v8 = vld [vmem:[#allocation201_spill] sm:$0xff]  ;;  %v7837_v41 = vld [vmem:[#allocation202_spill] sm:$0xff]  ;;  %v7838_v12 = vld [vmem:[#allocation115_spill] sm:$0xff] }
 0x20e   :  { %7815 = vst [vmem:[#allocation79_spill] sm:$0xff] %v5930_v7  ;;  %v5954_v50 = vadd.f32 %v1676_v40, %v1675_v15  ;;  %v1678_v31 = vadd.f32 %v7829_v55, %v7828_v38  ;;  %v1685_v20 = vadd.f32 %v7831_v52, %v7830_v4  ;;  %v1692_v62 = vadd.f32 %v7833_v9, %v7832_v21  ;;  %v7840_v0 = vld [vmem:[#allocation116_spill] sm:$0xff]  ;;  %v7843_v18 = vld [vmem:[#allocation205_spill] sm:$0xff]  ;;  %v7845_v14 = vld [vmem:[#allocation206_spill] sm:$0xff] }
 0x20f   :  { %7816 = vst [vmem:[#allocation167_spill] sm:$0xff] %v5932_v25  ;;  %v1699_v10 = vadd.f32 %v7835_v8, %v7834_v33  ;;  %v1706_v43 = vadd.f32 %v7837_v41, %v7836_v2  ;;  %v1713_v19 = vadd.f32 %v7839_v32, %v7838_v12  ;;  %v7841_v15 = vld [vmem:[#allocation204_spill] sm:$0xff]  ;;  %v1727_v49 = vadd.f32 %v7843_v18, %v7842_v5  ;;  %v7846_v54 = vld [vmem:[#allocation119_spill] sm:$0xff]  ;;  %v7850_v40 = vld [vmem:[#allocation121_spill] sm:$0xff] }
 0x210   :  { %7817 = vst [vmem:[#allocation80_spill] sm:$0xff] %v5934_v17  ;;  %v1720_v48 = vadd.f32 %v7841_v15, %v7840_v0  ;;  %v1734_v35 = vadd.f32 %v7845_v14, %v7844_v44  ;;  %v7847_v46 = vld [vmem:[#allocation207_spill] sm:$0xff]  ;;  %v7848_v63 = vld [vmem:[#allocation120_spill] sm:$0xff]  ;;  %v7851_v38 = vld [vmem:[#allocation209_spill] sm:$0xff]  ;;  %v1679_v2 = vrot.slane %v1678_v31, 4  ;;  %v1686_v41 = vrot.slane %v1685_v20, 4 }
 0x211   :  { %7818 = vst [vmem:[#allocation168_spill] sm:$0xff] %v5936_v58  ;;  %v1741_v61 = vadd.f32 %v7847_v46, %v7846_v54  ;;  %v7849_v24 = vld [vmem:[#allocation208_spill] sm:$0xff]  ;;  %v1755_v55 = vadd.f32 %v7851_v38, %v7850_v40  ;;  %v7852_v4 = vld [vmem:[#allocation122_spill] sm:$0xff]  ;;  %v7854_v9 = vld [vmem:[#allocation123_spill] sm:$0xff]  ;;  %v1693_v44 = vrot.slane %v1692_v62, 4  ;;  %v1700_v14 = vrot.slane %v1699_v10, 4 }
 0x212   :  { %7819 = vst [vmem:[#allocation81_spill] sm:$0xff] %v5938_v59  ;;  %v1748_v47 = vadd.f32 %v7849_v24, %v7848_v63  ;;  %v7853_v52 = vld [vmem:[#allocation210_spill] sm:$0xff]  ;;  %v7855_v33 = vld [vmem:[#allocation211_spill] sm:$0xff]  ;;  %v7856_v12 = vld [vmem:[#allocation124_spill] sm:$0xff]  ;;  %v1707_v54 = vrot.slane %v1706_v43, 4  ;;  %v1714_v46 = vrot.slane %v1713_v19, 4  ;;  %v1687_v57 = vadd.f32 %v1686_v41, %v1685_v20 }
 0x213   :  { %7820 = vst [vmem:[#allocation169_spill] sm:$0xff] %v5940_v60  ;;  %v1762_v21 = vadd.f32 %v7853_v52, %v7852_v4  ;;  %v1769_v8 = vadd.f32 %v7855_v33, %v7854_v9  ;;  %v7857_v32 = vld [vmem:[#allocation212_spill] sm:$0xff]  ;;  %v7858_v15 = vld [vmem:[#allocation125_spill] sm:$0xff]  ;;  %v1721_v63 = vrot.slane %v1720_v48, 4  ;;  %v1728_v24 = vrot.slane %v1727_v49, 4 }
 0x214   :  { %7821 = vst [vmem:[#allocation82_spill] sm:$0xff] %v5942_v3  ;;  %v1776_v0 = vadd.f32 %v7857_v32, %v7856_v12  ;;  %v7859_v5 = vld [vmem:[#allocation213_spill] sm:$0xff]  ;;  %v1735_v40 = vrot.slane %v1734_v35, 4  ;;  %v1742_v38 = vrot.slane %v1741_v61, 4  ;;  %v1749_v4 = vrot.slane %v1748_v47, 4 }
 0x215   :  { %7822 = vst [vmem:[#allocation170_spill] sm:$0xff] %v5944_v45  ;;  %v1783_v18 = vadd.f32 %v7859_v5, %v7858_v15  ;;  %v1756_v52 = vrot.slane %v1755_v55, 4  ;;  %v1763_v60 = vrot.slane %v1762_v21, 4  ;;  %v1770_v9 = vrot.slane %v1769_v8, 4 }
 0x216   :  { %7823 = vst [vmem:[#allocation83_spill] sm:$0xff] %v5946_v30  ;;  %v1680_v33 = vadd.f32 %v1679_v2, %v1678_v31  ;;  %v1694_v12 = vadd.f32 %v1693_v44, %v1692_v62  ;;  %v1701_v32 = vadd.f32 %v1700_v14, %v1699_v10  ;;  %v1715_v15 = vadd.f32 %v1714_v46, %v1713_v19 }
 0x217   :  { %7824 = vst [vmem:[#allocation171_spill] sm:$0xff] %v5948_v16  ;;  %v1722_v5 = vadd.f32 %v1721_v63, %v1720_v48  ;;  %v1729_v16 = vadd.f32 %v1728_v24, %v1727_v49  ;;  %v1736_v30 = vadd.f32 %v1735_v40, %v1734_v35  ;;  %v1743_v45 = vadd.f32 %v1742_v38, %v1741_v61 }
 0x218   :  { %7825 = vst [vmem:[#allocation84_spill] sm:$0xff] %v5950_v23  ;;  %v1708_v23 = vadd.f32 %v1707_v54, %v1706_v43  ;;  %v1750_v3 = vadd.f32 %v1749_v4, %v1748_v47  ;;  %v1757_v59 = vadd.f32 %v1756_v52, %v1755_v55  ;;  %v1764_v58 = vadd.f32 %v1763_v60, %v1762_v21 }
 0x219   :  { %7826 = vst [vmem:[#allocation172_spill] sm:$0xff] %v5952_v56  ;;  %v1784_v56 = vrot.slane %v1783_v18, 4  ;;  %v1771_v17 = vadd.f32 %v1770_v9, %v1769_v8  ;;  %v1681_v25 = vrot.slane %v1680_v33, 2  ;;  %v1688_v7 = vrot.slane %v1687_v57, 2 }
 0x21a   :  { %7827 = vst [vmem:[#allocation85_spill] sm:$0xff] %v5954_v50  ;;  %v1777_v50 = vrot.slane %v1776_v0, 4  ;;  %v1695_v31 = vrot.slane %v1694_v12, 2  ;;  %v1702_v20 = vrot.slane %v1701_v32, 2  ;;  %v1709_v2 = vrot.slane %v1708_v23, 2 }
 0x21b   :  { %v1785_v22 = vadd.f32 %v1784_v56, %v1783_v18  ;;  %v1716_v41 = vrot.slane %v1715_v15, 2  ;;  %v1723_v62 = vrot.slane %v1722_v5, 2  ;;  %v1730_v10 = vrot.slane %v1729_v16, 2 }
 0x21c   :  { %v1778_v36 = vadd.f32 %v1777_v50, %v1776_v0  ;;  %v1737_v43 = vrot.slane %v1736_v30, 2  ;;  %v1744_v19 = vrot.slane %v1743_v45, 2  ;;  %v1751_v48 = vrot.slane %v1750_v3, 2 }
 0x21d   :  { %v1758_v49 = vrot.slane %v1757_v59, 2  ;;  %v1765_v35 = vrot.slane %v1764_v58, 2  ;;  %v1772_v61 = vrot.slane %v1771_v17, 2  ;;  %v1682_v47 = vadd.f32 %v1681_v25, %v1680_v33 }
 0x21e   :  { %v1689_v55 = vadd.f32 %v1688_v7, %v1687_v57  ;;  %v1779_v60 = vrot.slane %v1778_v36, 2  ;;  %v1786_v21 = vrot.slane %v1785_v22, 2  ;;  %v1696_v8 = vadd.f32 %v1695_v31, %v1694_v12 }
 0x21f   :  { %v1703_v44 = vadd.f32 %v1702_v20, %v1701_v32  ;;  %v1710_v50 = vadd.f32 %v1709_v2, %v1708_v23  ;;  %v1717_v56 = vadd.f32 %v1716_v41, %v1715_v15  ;;  %v1724_v0 = vadd.f32 %v1723_v62, %v1722_v5 }
 0x220   :  { %v1731_v18 = vadd.f32 %v1730_v10, %v1729_v16  ;;  %v1738_v14 = vadd.f32 %v1737_v43, %v1736_v30  ;;  %v1745_v54 = vadd.f32 %v1744_v19, %v1743_v45  ;;  %v1752_v46 = vadd.f32 %v1751_v48, %v1750_v3 }
 0x221   :  { %v1759_v63 = vadd.f32 %v1758_v49, %v1757_v59  ;;  %v1766_v24 = vadd.f32 %v1765_v35, %v1764_v58  ;;  %v1773_v40 = vadd.f32 %v1772_v61, %v1771_v17  ;;  %v1683_v38 = vrot.slane %v1682_v47, 1 }
 0x222   :  { %v1690_v4 = vrot.slane %v1689_v55, 1  ;;  %v1780_v52 = vadd.f32 %v1779_v60, %v1778_v36  ;;  %v1787_v9 = vadd.f32 %v1786_v21, %v1785_v22  ;;  %v1697_v25 = vrot.slane %v1696_v8, 1  ;;  %v7874_v60 = vld [vmem:[#allocation127_spill] sm:$0xff] }
 0x223   :  { %v1704_v57 = vrot.slane %v1703_v44, 1  ;;  %v1711_v7 = vrot.slane %v1710_v50, 1  ;;  %v1718_v33 = vrot.slane %v1717_v56, 1  ;;  %v1725_v12 = vrot.slane %v1724_v0, 1 }
 0x224   :  { %v1732_v32 = vrot.slane %v1731_v18, 1  ;;  %v1739_v23 = vrot.slane %v1738_v14, 1  ;;  %v1746_v15 = vrot.slane %v1745_v54, 1  ;;  %v1753_v5 = vrot.slane %v1752_v46, 1 }
 0x225   :  { %v1760_v16 = vrot.slane %v1759_v63, 1  ;;  %v1767_v30 = vrot.slane %v1766_v24, 1  ;;  %v1774_v45 = vrot.slane %v1773_v40, 1  ;;  %v5988_v3 = vadd.f32 %v1683_v38, %v1682_v47  ;;  %v7873_v47 = vld [vmem:[#allocation126_spill] sm:$0xff]  ;;  %v7882_v38 = vld [vmem:[#allocation135_spill] sm:$0xff] }
 0x226   :  { %v5990_v58 = vadd.f32 %v1690_v4, %v1689_v55  ;;  %v1781_v17 = vrot.slane %v1780_v52, 1  ;;  %v1788_v59 = vrot.slane %v1787_v9, 1  ;;  %v5992_v36 = vadd.f32 %v1697_v25, %v1696_v8  ;;  %v7875_v8 = vld [vmem:[#allocation128_spill] sm:$0xff]  ;;  %v7886_v25 = vld [vmem:[#allocation138_spill] sm:$0xff] }
 0x227   :  { %7860 = vst [vmem:[#allocation173_spill] sm:$0xff] %v5988_v3  ;;  %v5994_v22 = vadd.f32 %v1704_v57, %v1703_v44  ;;  %v5996_v31 = vadd.f32 %v1711_v7, %v1710_v50  ;;  %v5998_v20 = vadd.f32 %v1718_v33, %v1717_v56  ;;  %v6000_v2 = vadd.f32 %v1725_v12, %v1724_v0  ;;  %v7876_v50 = vld [vmem:[#allocation129_spill] sm:$0xff]  ;;  %v7877_v0 = vld [vmem:[#allocation130_spill] sm:$0xff]  ;;  %v7883_v4 = vld [vmem:[#allocation136_spill] sm:$0xff] }
 0x228   :  { %7861 = vst [vmem:[#allocation86_spill] sm:$0xff] %v5992_v36  ;;  %v6002_v41 = vadd.f32 %v1732_v32, %v1731_v18  ;;  %v6004_v62 = vadd.f32 %v1739_v23, %v1738_v14  ;;  %v6006_v10 = vadd.f32 %v1746_v15, %v1745_v54  ;;  %v6008_v43 = vadd.f32 %v1753_v5, %v1752_v46  ;;  %v7878_v14 = vld [vmem:[#allocation131_spill] sm:$0xff]  ;;  %v7879_v46 = vld [vmem:[#allocation132_spill] sm:$0xff]  ;;  %v7890_v32 = vld [vmem:[#allocation141_spill] sm:$0xff] }
 0x229   :  { %7862 = vst [vmem:[#allocation174_spill] sm:$0xff] %v5996_v31  ;;  %v6010_v19 = vadd.f32 %v1760_v16, %v1759_v63  ;;  %v6012_v48 = vadd.f32 %v1767_v30, %v1766_v24  ;;  %v6014_v49 = vadd.f32 %v1774_v45, %v1773_v40  ;;  %v6016_v35 = vadd.f32 %v1781_v17, %v1780_v52  ;;  %v7880_v24 = vld [vmem:[#allocation133_spill] sm:$0xff]  ;;  %v7881_v40 = vld [vmem:[#allocation134_spill] sm:$0xff]  ;;  %v7888_v7 = vld [vmem:[#allocation139_spill] sm:$0xff] }
 0x22a   :  { %7863 = vst [vmem:[#allocation87_spill] sm:$0xff] %v6000_v2  ;;  %v6018_v61 = vadd.f32 %v1788_v59, %v1787_v9  ;;  %v1790_v55 = vadd.f32 %v5583_v29, %v7873_v47  ;;  %v1797_v21 = vadd.f32 %v5587_v26, %v7874_v60  ;;  %v1804_v44 = vadd.f32 %v5591_v39, %v7875_v8  ;;  %v7884_v52 = vld [vmem:[#allocation137_spill] sm:$0xff]  ;;  %v7889_v12 = vld [vmem:[#allocation140_spill] sm:$0xff] }
 0x22b   :  { %7864 = vst [vmem:[#allocation175_spill] sm:$0xff] %v6002_v41  ;;  %v1811_v56 = vadd.f32 %v5595_v28, %v7876_v50  ;;  %v1818_v18 = vadd.f32 %v5599_v51, %v7877_v0  ;;  %v1825_v54 = vadd.f32 %v5603_v34, %v7878_v14  ;;  %v1832_v63 = vadd.f32 %v5607_v13, %v7879_v46  ;;  %v7885_v51 = vld [vmem:[#allocation214_spill] sm:$0xff]  ;;  %v7887_v34 = vld [vmem:[#allocation19_spill] sm:$0xff]  ;;  %v7891_v23 = vld [vmem:[#allocation12_spill] sm:$0xff] }
 0x22c   :  { %7865 = vst [vmem:[#allocation88_spill] sm:$0xff] %v6004_v62  ;;  %v1839_v29 = vadd.f32 %v5611_v11, %v7880_v24  ;;  %v1846_v26 = vadd.f32 %v5615_v6, %v7881_v40  ;;  %v1853_v39 = vadd.f32 %v5619_v42, %v7882_v38  ;;  %v1860_v28 = vadd.f32 %v5623_v1, %v7883_v4 }
 0x22d   :  { %7866 = vst [vmem:[#allocation176_spill] sm:$0xff] %v6006_v10  ;;  %v1867_v9 = vadd.f32 %v7885_v51, %v7884_v52  ;;  %v1874_v57 = vadd.f32 %v7887_v34, %v7886_v25  ;;  %v1881_v13 = vadd.f32 %v5635_v27, %v7888_v7  ;;  %v1791_v33 = vrot.slane %v1790_v55, 4 }
 0x22e   :  { %7867 = vst [vmem:[#allocation89_spill] sm:$0xff] %v6008_v43  ;;  %v1798_v11 = vrot.slane %v1797_v21, 4  ;;  %v1888_v6 = vadd.f32 %v5639_v37, %v7889_v12  ;;  %v1895_v42 = vadd.f32 %v7891_v23, %v7890_v32  ;;  %v1805_v15 = vrot.slane %v1804_v44, 4 }
 0x22f   :  { %7868 = vst [vmem:[#allocation177_spill] sm:$0xff] %v6010_v19  ;;  %v1812_v5 = vrot.slane %v1811_v56, 4  ;;  %v1819_v1 = vrot.slane %v1818_v18, 4  ;;  %v1826_v16 = vrot.slane %v1825_v54, 4  ;;  %v1833_v30 = vrot.slane %v1832_v63, 4 }
 0x230   :  { %7869 = vst [vmem:[#allocation90_spill] sm:$0xff] %v6012_v48  ;;  %v1840_v45 = vrot.slane %v1839_v29, 4  ;;  %v1847_v17 = vrot.slane %v1846_v26, 4  ;;  %v1854_v59 = vrot.slane %v1853_v39, 4  ;;  %v1861_v47 = vrot.slane %v1860_v28, 4 }
 0x231   :  { %7870 = vst [vmem:[#allocation178_spill] sm:$0xff] %v6014_v49  ;;  %v1868_v60 = vrot.slane %v1867_v9, 4  ;;  %v1875_v8 = vrot.slane %v1874_v57, 4  ;;  %v1882_v27 = vrot.slane %v1881_v13, 4  ;;  %v1792_v50 = vadd.f32 %v1791_v33, %v1790_v55 }
 0x232   :  { %7871 = vst [vmem:[#allocation91_spill] sm:$0xff] %v6016_v35  ;;  %v1799_v0 = vadd.f32 %v1798_v11, %v1797_v21  ;;  %v1889_v14 = vrot.slane %v1888_v6, 4  ;;  %v1896_v46 = vrot.slane %v1895_v42, 4  ;;  %v1806_v37 = vadd.f32 %v1805_v15, %v1804_v44 }
 0x233   :  { %7872 = vst [vmem:[#allocation179_spill] sm:$0xff] %v6018_v61  ;;  %v1813_v24 = vadd.f32 %v1812_v5, %v1811_v56  ;;  %v1820_v40 = vadd.f32 %v1819_v1, %v1818_v18  ;;  %v1827_v38 = vadd.f32 %v1826_v16, %v1825_v54  ;;  %v1834_v4 = vadd.f32 %v1833_v30, %v1832_v63 }
 0x234   :  { %v1841_v52 = vadd.f32 %v1840_v45, %v1839_v29  ;;  %v1848_v51 = vadd.f32 %v1847_v17, %v1846_v26  ;;  %v1855_v25 = vadd.f32 %v1854_v59, %v1853_v39  ;;  %v1862_v34 = vadd.f32 %v1861_v47, %v1860_v28 }
 0x235   :  { %v1869_v7 = vadd.f32 %v1868_v60, %v1867_v9  ;;  %v1876_v12 = vadd.f32 %v1875_v8, %v1874_v57  ;;  %v1883_v32 = vadd.f32 %v1882_v27, %v1881_v13  ;;  %v1793_v23 = vrot.slane %v1792_v50, 2 }
 0x236   :  { %v1800_v62 = vrot.slane %v1799_v0, 2  ;;  %v1890_v3 = vadd.f32 %v1889_v14, %v1888_v6  ;;  %v1897_v61 = vadd.f32 %v1896_v46, %v1895_v42  ;;  %v1807_v55 = vrot.slane %v1806_v37, 2 }
 0x237   :  { %v1814_v21 = vrot.slane %v1813_v24, 2  ;;  %v1821_v33 = vrot.slane %v1820_v40, 2  ;;  %v1828_v11 = vrot.slane %v1827_v38, 2  ;;  %v1835_v44 = vrot.slane %v1834_v4, 2 }
 0x238   :  { %v1842_v56 = vrot.slane %v1841_v52, 2  ;;  %v1849_v18 = vrot.slane %v1848_v51, 2  ;;  %v1856_v54 = vrot.slane %v1855_v25, 2  ;;  %v1863_v63 = vrot.slane %v1862_v34, 2 }
 0x239   :  { %v1870_v29 = vrot.slane %v1869_v7, 2  ;;  %v1877_v26 = vrot.slane %v1876_v12, 2  ;;  %v1884_v39 = vrot.slane %v1883_v32, 2  ;;  %v1794_v28 = vadd.f32 %v1793_v23, %v1792_v50 }
 0x23a   :  { %v1801_v9 = vadd.f32 %v1800_v62, %v1799_v0  ;;  %v1891_v57 = vrot.slane %v1890_v3, 2  ;;  %v1898_v13 = vrot.slane %v1897_v61, 2  ;;  %v1808_v15 = vadd.f32 %v1807_v55, %v1806_v37 }
 0x23b   :  { %v1815_v5 = vadd.f32 %v1814_v21, %v1813_v24  ;;  %v1822_v6 = vadd.f32 %v1821_v33, %v1820_v40  ;;  %v1829_v42 = vadd.f32 %v1828_v11, %v1827_v38  ;;  %v1836_v1 = vadd.f32 %v1835_v44, %v1834_v4 }
 0x23c   :  { %v1843_v16 = vadd.f32 %v1842_v56, %v1841_v52  ;;  %v1850_v30 = vadd.f32 %v1849_v18, %v1848_v51  ;;  %v1857_v45 = vadd.f32 %v1856_v54, %v1855_v25  ;;  %v1864_v17 = vadd.f32 %v1863_v63, %v1862_v34 }
 0x23d   :  { %v1871_v59 = vadd.f32 %v1870_v29, %v1869_v7  ;;  %v1878_v47 = vadd.f32 %v1877_v26, %v1876_v12  ;;  %v1885_v60 = vadd.f32 %v1884_v39, %v1883_v32  ;;  %v1795_v8 = vrot.slane %v1794_v28, 1 }
 0x23e   :  { %v1802_v27 = vrot.slane %v1801_v9, 1  ;;  %v1892_v14 = vadd.f32 %v1891_v57, %v1890_v3  ;;  %v1899_v46 = vadd.f32 %v1898_v13, %v1897_v61  ;;  %v1809_v50 = vrot.slane %v1808_v15, 1  ;;  %v7909_v57 = vld [vmem:[#allocation143_spill] sm:$0xff]  ;;  %v7910_v13 = vld [vmem:[#allocation13_spill] sm:$0xff] }
 0x23f   :  { %v1816_v62 = vrot.slane %v1815_v5, 1  ;;  %v1823_v0 = vrot.slane %v1822_v6, 1  ;;  %v1830_v23 = vrot.slane %v1829_v42, 1  ;;  %v1837_v37 = vrot.slane %v1836_v1, 1 }
 0x240   :  { %v1844_v24 = vrot.slane %v1843_v16, 1  ;;  %v1851_v40 = vrot.slane %v1850_v30, 1  ;;  %v1858_v38 = vrot.slane %v1857_v45, 1  ;;  %v1865_v4 = vrot.slane %v1864_v17, 1 }
 0x241   :  { %v1872_v52 = vrot.slane %v1871_v59, 1  ;;  %v1879_v51 = vrot.slane %v1878_v47, 1  ;;  %v1886_v25 = vrot.slane %v1885_v60, 1  ;;  %v6052_v34 = vadd.f32 %v1795_v8, %v1794_v28  ;;  %v7908_v28 = vld [vmem:[#allocation142_spill] sm:$0xff] }
 0x242   :  { %v6054_v7 = vadd.f32 %v1802_v27, %v1801_v9  ;;  %v1893_v12 = vrot.slane %v1892_v14, 1  ;;  %v1900_v32 = vrot.slane %v1899_v46, 1  ;;  %v6056_v3 = vadd.f32 %v1809_v50, %v1808_v15  ;;  %v7919_v27 = vld [vmem:[#allocation148_spill] sm:$0xff]  ;;  %v7921_v50 = vld [vmem:[#allocation149_spill] sm:$0xff] }
 0x243   :  { %7892 = vst [vmem:[#allocation92_spill] sm:$0xff] %v6052_v34  ;;  %v6058_v61 = vadd.f32 %v1816_v62, %v1815_v5  ;;  %v6060_v55 = vadd.f32 %v1823_v0, %v1822_v6  ;;  %v6062_v21 = vadd.f32 %v1830_v23, %v1829_v42  ;;  %v6064_v33 = vadd.f32 %v1837_v37, %v1836_v1  ;;  %v7911_v5 = vld [vmem:[#allocation144_spill] sm:$0xff]  ;;  %v7912_v6 = vld [vmem:[#allocation14_spill] sm:$0xff]  ;;  %v7913_v1 = vld [vmem:[#allocation145_spill] sm:$0xff] }
 0x244   :  { %7893 = vst [vmem:[#allocation180_spill] sm:$0xff] %v6054_v7  ;;  %v6066_v11 = vadd.f32 %v1844_v24, %v1843_v16  ;;  %v6068_v44 = vadd.f32 %v1851_v40, %v1850_v30  ;;  %v6070_v56 = vadd.f32 %v1858_v38, %v1857_v45  ;;  %v6072_v18 = vadd.f32 %v1865_v4, %v1864_v17  ;;  %v7914_v16 = vld [vmem:[#allocation15_spill] sm:$0xff]  ;;  %v7915_v45 = vld [vmem:[#allocation146_spill] sm:$0xff]  ;;  %v7916_v17 = vld [vmem:[#allocation16_spill] sm:$0xff] }
 0x245   :  { %7894 = vst [vmem:[#allocation93_spill] sm:$0xff] %v6056_v3  ;;  %v6074_v54 = vadd.f32 %v1872_v52, %v1871_v59  ;;  %v6076_v63 = vadd.f32 %v1879_v51, %v1878_v47  ;;  %v6078_v29 = vadd.f32 %v1886_v25, %v1885_v60  ;;  %v6080_v26 = vadd.f32 %v1893_v12, %v1892_v14  ;;  %v7917_v47 = vld [vmem:[#allocation147_spill] sm:$0xff]  ;;  %v7920_v14 = vld [vmem:[#allocation216_spill] sm:$0xff]  ;;  %v7923_v0 = vld [vmem:[#allocation150_spill] sm:$0xff] }
 0x246   :  { %7895 = vst [vmem:[#allocation181_spill] sm:$0xff] %v6058_v61  ;;  %v6082_v39 = vadd.f32 %v1900_v32, %v1899_v46  ;;  %v1902_v9 = vadd.f32 %v5647_v53, %v7908_v28  ;;  %v1909_v15 = vadd.f32 %v7910_v13, %v7909_v57  ;;  %v1916_v42 = vadd.f32 %v7912_v6, %v7911_v5  ;;  %v7918_v60 = vld [vmem:[#allocation215_spill] sm:$0xff]  ;;  %v7922_v53 = vld [vmem:[#allocation17_spill] sm:$0xff]  ;;  %v7924_v23 = vld [vmem:[#allocation18_spill] sm:$0xff] }
 0x247   :  { %7896 = vst [vmem:[#allocation94_spill] sm:$0xff] %v6060_v55  ;;  %v1923_v30 = vadd.f32 %v7914_v16, %v7913_v1  ;;  %v1930_v59 = vadd.f32 %v7916_v17, %v7915_v45  ;;  %v1937_v8 = vadd.f32 %v7918_v60, %v7917_v47  ;;  %v1944_v46 = vadd.f32 %v7920_v14, %v7919_v27  ;;  %v7925_v24 = vld [vmem:[#allocation151_spill] sm:$0xff]  ;;  %v7926_v40 = vld [vmem:[#allocation217_spill] sm:$0xff]  ;;  %v7927_v4 = vld [vmem:[#allocation152_spill] sm:$0xff] }
 0x248   :  { %7897 = vst [vmem:[#allocation182_spill] sm:$0xff] %v6062_v21  ;;  %v1951_v62 = vadd.f32 %v7922_v53, %v7921_v50  ;;  %v1958_v37 = vadd.f32 %v7924_v23, %v7923_v0  ;;  %v1965_v38 = vadd.f32 %v7926_v40, %v7925_v24  ;;  %v7928_v52 = vld [vmem:[#allocation218_spill] sm:$0xff]  ;;  %v7929_v25 = vld [vmem:[#allocation153_spill] sm:$0xff]  ;;  %v7930_v12 = vld [vmem:[#allocation219_spill] sm:$0xff]  ;;  %v1903_v16 = vrot.slane %v1902_v9, 4 }
 0x249   :  { %7898 = vst [vmem:[#allocation95_spill] sm:$0xff] %v6064_v33  ;;  %v1972_v51 = vadd.f32 %v7928_v52, %v7927_v4  ;;  %v1979_v32 = vadd.f32 %v7930_v12, %v7929_v25  ;;  %v7931_v28 = vld [vmem:[#allocation154_spill] sm:$0xff]  ;;  %v7932_v57 = vld [vmem:[#allocation220_spill] sm:$0xff]  ;;  %v7933_v5 = vld [vmem:[#allocation155_spill] sm:$0xff]  ;;  %v1910_v45 = vrot.slane %v1909_v15, 4  ;;  %v1917_v53 = vrot.slane %v1916_v42, 4 }
 0x24a   :  { %7899 = vst [vmem:[#allocation183_spill] sm:$0xff] %v6066_v11  ;;  %v1986_v13 = vadd.f32 %v7932_v57, %v7931_v28  ;;  %v7934_v6 = vld [vmem:[#allocation221_spill] sm:$0xff]  ;;  %v7935_v17 = vld [vmem:[#allocation156_spill] sm:$0xff]  ;;  %v7936_v47 = vld [vmem:[#allocation222_spill] sm:$0xff]  ;;  %v1924_v0 = vrot.slane %v1923_v30, 4  ;;  %v1931_v23 = vrot.slane %v1930_v59, 4 }
 0x24b   :  { %7900 = vst [vmem:[#allocation96_spill] sm:$0xff] %v6068_v44  ;;  %v1993_v1 = vadd.f32 %v7934_v6, %v7933_v5  ;;  %v2000_v60 = vadd.f32 %v7936_v47, %v7935_v17  ;;  %v7937_v27 = vld [vmem:[#allocation157_spill] sm:$0xff]  ;;  %v7938_v14 = vld [vmem:[#allocation223_spill] sm:$0xff]  ;;  %v1938_v24 = vrot.slane %v1937_v8, 4  ;;  %v1945_v40 = vrot.slane %v1944_v46, 4 }
 0x24c   :  { %7901 = vst [vmem:[#allocation184_spill] sm:$0xff] %v6070_v56  ;;  %v2007_v50 = vadd.f32 %v7938_v14, %v7937_v27  ;;  %v1952_v4 = vrot.slane %v1951_v62, 4  ;;  %v1959_v52 = vrot.slane %v1958_v37, 4  ;;  %v1966_v25 = vrot.slane %v1965_v38, 4 }
 0x24d   :  { %7902 = vst [vmem:[#allocation97_spill] sm:$0xff] %v6072_v18  ;;  %v1973_v12 = vrot.slane %v1972_v51, 4  ;;  %v1980_v28 = vrot.slane %v1979_v32, 4  ;;  %v1987_v57 = vrot.slane %v1986_v13, 4  ;;  %v1994_v5 = vrot.slane %v1993_v1, 4 }
 0x24e   :  { %7903 = vst [vmem:[#allocation185_spill] sm:$0xff] %v6074_v54  ;;  %v1904_v6 = vadd.f32 %v1903_v16, %v1902_v9  ;;  %v1911_v44 = vadd.f32 %v1910_v45, %v1909_v15  ;;  %v2001_v34 = vrot.slane %v2000_v60, 4  ;;  %v1918_v17 = vadd.f32 %v1917_v53, %v1916_v42  ;;  %v7980_v41 = vld [vmem:[#allocation94_spill] sm:$0xff] }
 0x24f   :  { %7904 = vst [vmem:[#allocation98_spill] sm:$0xff] %v6076_v63  ;;  %v1925_v47 = vadd.f32 %v1924_v0, %v1923_v30  ;;  %v1939_v27 = vadd.f32 %v1938_v24, %v1937_v8  ;;  %v1946_v14 = vadd.f32 %v1945_v40, %v1944_v46  ;;  %v1960_v63 = vadd.f32 %v1959_v52, %v1958_v37  ;;  %v7981_v10 = vld [vmem:[#allocation182_spill] sm:$0xff] }
 0x250   :  { %7905 = vst [vmem:[#allocation186_spill] sm:$0xff] %v6078_v29  ;;  %v1953_v29 = vadd.f32 %v1952_v4, %v1951_v62  ;;  %v1967_v54 = vadd.f32 %v1966_v25, %v1965_v38  ;;  %v1974_v18 = vadd.f32 %v1973_v12, %v1972_v51  ;;  %v1981_v56 = vadd.f32 %v1980_v28, %v1979_v32  ;;  %v7982_v43 = vld [vmem:[#allocation95_spill] sm:$0xff] }
 0x251   :  { %7906 = vst [vmem:[#allocation99_spill] sm:$0xff] %v6080_v26  ;;  %v1932_v26 = vadd.f32 %v1931_v23, %v1930_v59  ;;  %v1988_v11 = vadd.f32 %v1987_v57, %v1986_v13  ;;  %v1995_v33 = vadd.f32 %v1994_v5, %v1993_v1  ;;  %v1905_v21 = vrot.slane %v1904_v6, 2  ;;  %v7983_v19 = vld [vmem:[#allocation183_spill] sm:$0xff] }
 0x252   :  { %7907 = vst [vmem:[#allocation187_spill] sm:$0xff] %v6082_v39  ;;  %v2008_v39 = vrot.slane %v2007_v50, 4  ;;  %v1912_v55 = vrot.slane %v1911_v44, 2  ;;  %v2002_v61 = vadd.f32 %v2001_v34, %v2000_v60  ;;  %v1919_v9 = vrot.slane %v1918_v17, 2 }
 0x253   :  { %v1926_v15 = vrot.slane %v1925_v47, 2  ;;  %v1933_v16 = vrot.slane %v1932_v26, 2  ;;  %v1940_v45 = vrot.slane %v1939_v27, 2  ;;  %v1947_v42 = vrot.slane %v1946_v14, 2  ;;  %v7984_v48 = vld [vmem:[#allocation184_spill] sm:$0xff] }
 0x254   :  { %v2009_v3 = vadd.f32 %v2008_v39, %v2007_v50  ;;  %v1954_v30 = vrot.slane %v1953_v29, 2  ;;  %v1961_v59 = vrot.slane %v1960_v63, 2  ;;  %v1968_v8 = vrot.slane %v1967_v54, 2  ;;  %v7985_v49 = vld [vmem:[#allocation97_spill] sm:$0xff] }
 0x255   :  { %v1975_v46 = vrot.slane %v1974_v18, 2  ;;  %v1982_v62 = vrot.slane %v1981_v56, 2  ;;  %v1989_v37 = vrot.slane %v1988_v11, 2  ;;  %v1996_v38 = vrot.slane %v1995_v33, 2  ;;  %v7986_v35 = vld [vmem:[#allocation185_spill] sm:$0xff] }
 0x256   :  { %v1906_v51 = vadd.f32 %v1905_v21, %v1904_v6  ;;  %v1913_v32 = vadd.f32 %v1912_v55, %v1911_v44  ;;  %v2003_v13 = vrot.slane %v2002_v61, 2  ;;  %v2010_v1 = vrot.slane %v2009_v3, 2  ;;  %v7987_v36 = vld [vmem:[#allocation98_spill] sm:$0xff] }
 0x257   :  { %v1920_v53 = vadd.f32 %v1919_v9, %v1918_v17  ;;  %v1927_v0 = vadd.f32 %v1926_v15, %v1925_v47  ;;  %v1934_v34 = vadd.f32 %v1933_v16, %v1932_v26  ;;  %v1941_v39 = vadd.f32 %v1940_v45, %v1939_v27  ;;  %v7988_v7 = vld [vmem:[#allocation186_spill] sm:$0xff] }
 0x258   :  { %v1948_v60 = vadd.f32 %v1947_v42, %v1946_v14  ;;  %v1955_v50 = vadd.f32 %v1954_v30, %v1953_v29  ;;  %v1962_v23 = vadd.f32 %v1961_v59, %v1960_v63  ;;  %v1969_v24 = vadd.f32 %v1968_v8, %v1967_v54  ;;  %v7989_v31 = vld [vmem:[#allocation99_spill] sm:$0xff] }
 0x259   :  { %v1976_v40 = vadd.f32 %v1975_v46, %v1974_v18  ;;  %v1983_v4 = vadd.f32 %v1982_v62, %v1981_v56  ;;  %v1990_v52 = vadd.f32 %v1989_v37, %v1988_v11  ;;  %v1997_v25 = vadd.f32 %v1996_v38, %v1995_v33  ;;  %v7990_v2 = vld [vmem:[#allocation187_spill] sm:$0xff] }
 0x25a   :  { %v1907_v12 = vrot.slane %v1906_v51, 1  ;;  %v1914_v28 = vrot.slane %v1913_v32, 1  ;;  %v2004_v57 = vadd.f32 %v2003_v13, %v2002_v61  ;;  %v2011_v5 = vadd.f32 %v2010_v1, %v2009_v3  ;;  %v7943_v13 = vld [vmem:[#allocation162_spill] sm:$0xff]  ;;  %v7974_v1 = vld [vmem:[#allocation84_spill] sm:$0xff] }
 0x25b   :  { %v1921_v21 = vrot.slane %v1920_v53, 1  ;;  %v1928_v55 = vrot.slane %v1927_v0, 1  ;;  %v1935_v44 = vrot.slane %v1934_v34, 1  ;;  %v1942_v6 = vrot.slane %v1941_v39, 1 }
 0x25c   :  { %v1949_v17 = vrot.slane %v1948_v60, 1  ;;  %v1956_v47 = vrot.slane %v1955_v50, 1  ;;  %v1963_v26 = vrot.slane %v1962_v23, 1  ;;  %v1970_v27 = vrot.slane %v1969_v24, 1 }
 0x25d   :  { %v1977_v14 = vrot.slane %v1976_v40, 1  ;;  %v1984_v29 = vrot.slane %v1983_v4, 1  ;;  %v1991_v63 = vrot.slane %v1990_v52, 1  ;;  %v1998_v54 = vrot.slane %v1997_v25, 1 }
 0x25e   :  { %v6116_v18 = vadd.f32 %v1907_v12, %v1906_v51  ;;  %v6118_v11 = vadd.f32 %v1914_v28, %v1913_v32  ;;  %v2005_v33 = vrot.slane %v2004_v57, 1  ;;  %v2012_v56 = vrot.slane %v2011_v5, 1  ;;  %v7942_v51 = vld [vmem:[#allocation74_spill] sm:$0xff]  ;;  %v7950_v12 = vld [vmem:[#allocation28_spill] sm:$0xff]  ;;  %v7976_v32 = vld [vmem:[#allocation85_spill] sm:$0xff] }
 0x25f   :  { %v6120_v61 = vadd.f32 %v1921_v21, %v1920_v53  ;;  %v6122_v3 = vadd.f32 %v1928_v55, %v1927_v0  ;;  %v6124_v9 = vadd.f32 %v1935_v44, %v1934_v34  ;;  %v6126_v15 = vadd.f32 %v1942_v6, %v1941_v39  ;;  %v7944_v53 = vld [vmem:[#allocation75_spill] sm:$0xff]  ;;  %v7952_v21 = vld [vmem:[#allocation29_spill] sm:$0xff]  ;;  %v7953_v44 = vld [vmem:[#allocation54_spill] sm:$0xff] }
 0x260   :  { %7939 = vst [vmem:[#allocation100_spill] sm:$0xff] %v6116_v18  ;;  %v6128_v16 = vadd.f32 %v1949_v17, %v1948_v60  ;;  %v6130_v45 = vadd.f32 %v1956_v47, %v1955_v50  ;;  %v6132_v42 = vadd.f32 %v1963_v26, %v1962_v23  ;;  %v6134_v30 = vadd.f32 %v1970_v27, %v1969_v24  ;;  %v7945_v34 = vld [vmem:[#allocation163_spill] sm:$0xff]  ;;  %v7946_v60 = vld [vmem:[#allocation76_spill] sm:$0xff]  ;;  %v7954_v17 = vld [vmem:[#allocation30_spill] sm:$0xff] }
 0x261   :  { %v6136_v59 = vadd.f32 %v1977_v14, %v1976_v40  ;;  %v6138_v8 = vadd.f32 %v1984_v29, %v1983_v4  ;;  %v6140_v46 = vadd.f32 %v1991_v63, %v1990_v52  ;;  %v6142_v62 = vadd.f32 %v1998_v54, %v1997_v25  ;;  %v7947_v23 = vld [vmem:[#allocation164_spill] sm:$0xff]  ;;  %v7948_v40 = vld [vmem:[#allocation77_spill] sm:$0xff]  ;;  %v7970_v24 = vld [vmem:[#allocation82_spill] sm:$0xff] }
 0x262   :  { %7940 = vst [vmem:[#allocation188_spill] sm:$0xff] %v6132_v42  ;;  %v6144_v37 = vadd.f32 %v2005_v33, %v2004_v57  ;;  %v6146_v38 = vadd.f32 %v2012_v56, %v2011_v5  ;;  %v7949_v52 = vld [vmem:[#allocation52_spill] sm:$0xff]  ;;  %v7951_v57 = vld [vmem:[#allocation53_spill] sm:$0xff]  ;;  %v7966_v42 = vld [vmem:[#allocation167_spill] sm:$0xff]  ;;  %v7991_v55 = vrot.slane %v7942_v51, 7  ;;  %v7993_v47 = vrot.slane %v7944_v53, 5 }
 0x263   :  { %v7955_v26 = vld [vmem:[#allocation56_spill] sm:$0xff]  ;;  %v7956_v14 = vld [vmem:[#allocation233_spill] sm:$0xff]  ;;  %v7971_v4 = vld [vmem:[#allocation170_spill] sm:$0xff]  ;;  %v7994_v27 = vrot.slane %v7943_v13, 6  ;;  %v7995_v54 = vrot.slane %v7946_v60, 3  ;;  %v7996_v56 = vrot.slane %v7945_v34, 4 }
 0x264   :  { %7941 = vst [vmem:[#allocation101_spill] sm:$0xff] %v6144_v37  ;;  %v7967_v18 = vld [vmem:[#allocation80_spill] sm:$0xff]  ;;  %v7969_v33 = vld [vmem:[#allocation81_spill] sm:$0xff]  ;;  %v7972_v39 = vld [vmem:[#allocation83_spill] sm:$0xff]  ;;  %v7997_v51 = vrot.slane %v7948_v40, 1  ;;  %v7998_v37 = vrot.slane %v7947_v23, 2 }
 0x265   :  { %v7968_v63 = vld [vmem:[#allocation168_spill] sm:$0xff]  ;;  %v7973_v50 = vld [vmem:[#allocation171_spill] sm:$0xff]  ;;  %v7992_v28 = vld [vmem:[#allocation161_spill] sm:$0xff]  ;;  %v2297_v29 = vsel %vm2256_vm1, %v7994_v27, %v7993_v47  ;;  %v2299_v5 = vsel %vm2260_vm3, %v7996_v56, %v7995_v54  ;;  %v7999_v53 = vrot.slane %v7949_v52, 7  ;;  %v8001_v34 = vrot.slane %v7951_v57, 5 }
 0x266   :  { %v7975_v0 = vld [vmem:[#allocation172_spill] sm:$0xff]  ;;  %v2296_v6 = vsel %vm2254_vm0, %v7992_v28, %v7991_v55  ;;  %v2300_v28 = vsel %vm2262_vm4, %v7998_v37, %v7997_v51  ;;  %v8000_v13 = vld [vmem:[#allocation165_spill] sm:$0xff]  ;;  %v8002_v47 = vrot.slane %v7950_v12, 6  ;;  %v8004_v40 = vrot.slane %v7952_v21, 4 }
 0x267   :  { %v2298_v25 = vsel %vm2258_vm2, %v2296_v6, %v2297_v29  ;;  %v2303_v55 = vsel %vm2254_vm0, %v8000_v13, %v7999_v53  ;;  %v2301_v60 = vsel %vm2264_vm5, %v2299_v5, %v2300_v28  ;;  %v8003_v6 = vrot.slane %v7953_v44, 3  ;;  %v8008_v44 = vld [vmem:[#allocation31_spill] sm:$0xff] }
 0x268   :  { %v2304_v27 = vsel %vm2256_vm1, %v8002_v47, %v8001_v34  ;;  %v8005_v37 = vrot.slane %v7955_v26, 1  ;;  %v8006_v52 = vrot.slane %v7954_v17, 2  ;;  %v6266_v5 = vsel %vm2266_vm6, %v2298_v25, %v2301_v60  ;;  %v8009_v26 = vld [vmem:[#allocation234_spill] sm:$0xff]  ;;  %v8011_v17 = vld [vmem:[#allocation32_spill] sm:$0xff]  ;;  %v8013_v25 = vld [vmem:[#allocation235_spill] sm:$0xff] }
 0x269   :  { %v2306_v23 = vsel %vm2260_vm3, %v8004_v40, %v8003_v6  ;;  %v2305_v57 = vsel %vm2258_vm2, %v2303_v55, %v2304_v27  ;;  %v8007_v54 = vrot.slane %v7956_v14, 7  ;;  %v8010_v51 = vrot.slane %v8009_v26, 5  ;;  %v8015_v60 = vld [vmem:[#allocation33_spill] sm:$0xff]  ;;  %v8017_v47 = vld [vmem:[#allocation236_spill] sm:$0xff]  ;;  %v8019_v27 = vld [vmem:[#allocation34_spill] sm:$0xff] }
 0x26a   :  { %v2307_v29 = vsel %vm2262_vm4, %v8006_v52, %v8005_v37  ;;  %v8012_v28 = vrot.slane %v8011_v17, 6  ;;  %v8014_v13 = vrot.slane %v8013_v25, 3  ;;  %v8016_v55 = vrot.slane %v8015_v60, 4  ;;  %v8021_v52 = vld [vmem:[#allocation78_spill] sm:$0xff] }
 0x26b   :  { %v2308_v12 = vsel %vm2264_vm5, %v2306_v23, %v2307_v29  ;;  %v2310_v21 = vsel %vm2254_vm0, %v8008_v44, %v8007_v54  ;;  %v8018_v14 = vrot.slane %v8017_v47, 1  ;;  %v8020_v6 = vrot.slane %v8019_v27, 2  ;;  %v8024_v54 = vld [vmem:[#allocation79_spill] sm:$0xff]  ;;  %v8026_v26 = vld [vmem:[#allocation166_spill] sm:$0xff]  ;;  %v8033_v27 = vld [vmem:[#allocation169_spill] sm:$0xff] }
 0x26c   :  { %v6275_v56 = vsel %vm2266_vm6, %v2305_v57, %v2308_v12  ;;  %v2311_v53 = vsel %vm2256_vm1, %v8012_v28, %v8010_v51  ;;  %v2313_v34 = vsel %vm2260_vm3, %v8016_v55, %v8014_v13  ;;  %v8022_v29 = vrot.slane %v8021_v52, 7  ;;  %v8023_v57 = vld [vmem:[#allocation35_spill] sm:$0xff] }
 0x26d   :  { %v2314_v40 = vsel %vm2262_vm4, %v8020_v6, %v8018_v14  ;;  %v2312_v23 = vsel %vm2258_vm2, %v2310_v21, %v2311_v53  ;;  %v8025_v44 = vrot.slane %v8024_v54, 5  ;;  %v8027_v51 = vrot.slane %v8026_v26, 6  ;;  %v8043_v54 = vld [vmem:[#allocation86_spill] sm:$0xff] }
 0x26e   :  { %v2315_v37 = vsel %vm2264_vm5, %v2313_v34, %v2314_v40  ;;  %v2317_v12 = vsel %vm2254_vm0, %v8023_v57, %v8022_v29  ;;  %v8028_v21 = vrot.slane %v7967_v18, 3  ;;  %v8029_v53 = vrot.slane %v7966_v42, 4  ;;  %v8041_v57 = vld [vmem:[#allocation173_spill] sm:$0xff] }
 0x26f   :  { %v2318_v17 = vsel %vm2256_vm1, %v8027_v51, %v8025_v44  ;;  %v6304_v28 = vsel %vm2266_vm6, %v2312_v23, %v2315_v37  ;;  %v8030_v60 = vrot.slane %v7969_v33, 1  ;;  %v8031_v55 = vrot.slane %v7968_v63, 2 }
 0x270   :  { %v2319_v25 = vsel %vm2258_vm2, %v2317_v12, %v2318_v17  ;;  %v2320_v13 = vsel %vm2260_vm3, %v8029_v53, %v8028_v21  ;;  %v8032_v14 = vrot.slane %v7970_v24, 7  ;;  %v8034_v40 = vrot.slane %v7972_v39, 5 }
 0x271   :  { %v2321_v34 = vsel %vm2262_vm4, %v8031_v55, %v8030_v60  ;;  %v8035_v18 = vrot.slane %v7971_v4, 6  ;;  %v8036_v23 = vrot.slane %v7974_v1, 3  ;;  %v8037_v33 = vrot.slane %v7973_v50, 4 }
 0x272   :  { %v2322_v47 = vsel %vm2264_vm5, %v2320_v13, %v2321_v34  ;;  %v2324_v6 = vsel %vm2254_vm0, %v8033_v27, %v8032_v14  ;;  %v8038_v52 = vrot.slane %v7976_v32, 1  ;;  %v8039_v29 = vrot.slane %v7975_v0, 2  ;;  %v8046_v32 = vld [vmem:[#allocation174_spill] sm:$0xff]  ;;  %v8052_v34 = vld [vmem:[#allocation176_spill] sm:$0xff] }
 0x273   :  { %v2325_v42 = vsel %vm2256_vm1, %v8035_v18, %v8034_v40  ;;  %v2327_v63 = vsel %vm2260_vm3, %v8037_v33, %v8036_v23  ;;  %v6333_v37 = vsel %vm2266_vm6, %v2319_v25, %v2322_v47  ;;  %v8040_v4 = vrot.slane %v5990_v58, 7  ;;  %v8048_v25 = vld [vmem:[#allocation175_spill] sm:$0xff]  ;;  %v8058_v18 = vld [vmem:[#allocation89_spill] sm:$0xff]  ;;  %v8060_v33 = vld [vmem:[#allocation178_spill] sm:$0xff] }
 0x274   :  { %v2326_v24 = vsel %vm2258_vm2, %v2324_v6, %v2325_v42  ;;  %v2328_v39 = vsel %vm2262_vm4, %v8039_v29, %v8038_v52  ;;  %v8042_v12 = vrot.slane %v5994_v22, 5  ;;  %v8044_v44 = vrot.slane %v8043_v54, 6  ;;  %v8050_v58 = vld [vmem:[#allocation87_spill] sm:$0xff]  ;;  %v8056_v6 = vld [vmem:[#allocation177_spill] sm:$0xff] }
 0x275   :  { %v2331_v1 = vsel %vm2254_vm0, %v8041_v57, %v8040_v4  ;;  %v2329_v50 = vsel %vm2264_vm5, %v2327_v63, %v2328_v39  ;;  %v8045_v51 = vrot.slane %v5998_v20, 3  ;;  %v8047_v17 = vrot.slane %v8046_v32, 4  ;;  %v8054_v20 = vld [vmem:[#allocation88_spill] sm:$0xff]  ;;  %v8064_v39 = vld [vmem:[#allocation179_spill] sm:$0xff] }
 0x276   :  { %v2332_v26 = vsel %vm2256_vm1, %v8044_v44, %v8042_v12  ;;  %v8049_v21 = vrot.slane %v8048_v25, 1  ;;  %v8051_v53 = vrot.slane %v8050_v58, 2  ;;  %v6362_v60 = vsel %vm2266_vm6, %v2326_v24, %v2329_v50  ;;  %v8062_v24 = vld [vmem:[#allocation90_spill] sm:$0xff]  ;;  %v8066_v57 = vld [vmem:[#allocation91_spill] sm:$0xff]  ;;  %v8068_v44 = vld [vmem:[#allocation180_spill] sm:$0xff] }
 0x277   :  { %v2334_v0 = vsel %vm2260_vm3, %v8047_v17, %v8045_v51  ;;  %v2333_v22 = vsel %vm2258_vm2, %v2331_v1, %v2332_v26  ;;  %v8053_v47 = vrot.slane %v8052_v34, 7  ;;  %v8057_v40 = vrot.slane %v8056_v6, 5  ;;  %v8070_v51 = vld [vmem:[#allocation92_spill] sm:$0xff]  ;;  %v8071_v17 = vld [vmem:[#allocation181_spill] sm:$0xff] }
 0x278   :  { %v2335_v13 = vsel %vm2262_vm4, %v8051_v53, %v8049_v21  ;;  %v8059_v42 = vrot.slane %v8058_v18, 6  ;;  %v8061_v63 = vrot.slane %v8060_v33, 3  ;;  %v8063_v52 = vrot.slane %v8062_v24, 4  ;;  %v8073_v25 = vld [vmem:[#allocation93_spill] sm:$0xff]  ;;  %v8081_v18 = vld [vmem:[#allocation96_spill] sm:$0xff] }
 0x279   :  { %v2336_v55 = vsel %vm2264_vm5, %v2334_v0, %v2335_v13  ;;  %v2338_v14 = vsel %vm2254_vm0, %v8054_v20, %v8053_v47  ;;  %v8065_v4 = vrot.slane %v8064_v39, 1  ;;  %v8067_v1 = vrot.slane %v8066_v57, 2 }
 0x27a   :  { %v6371_v27 = vsel %vm2266_vm6, %v2333_v22, %v2336_v55  ;;  %v2339_v23 = vsel %vm2256_vm1, %v8059_v42, %v8057_v40  ;;  %v2341_v29 = vsel %vm2260_vm3, %v8063_v52, %v8061_v63  ;;  %v8069_v26 = vrot.slane %v8068_v44, 7 }
 0x27b   :  { %8055 = vst [vmem:[#allocation189_spill] sm:$0xff] %v6371_v27  ;;  %v2342_v50 = vsel %vm2262_vm4, %v8067_v1, %v8065_v4  ;;  %v2340_v12 = vsel %vm2258_vm2, %v2338_v14, %v2339_v23  ;;  %v8072_v0 = vrot.slane %v8071_v17, 5  ;;  %v8074_v21 = vrot.slane %v8073_v25, 6  ;;  %v8106_v25 = vld [vmem:[#allocation101_spill] sm:$0xff] }
 0x27c   :  { %v2343_v54 = vsel %vm2264_vm5, %v2341_v29, %v2342_v50  ;;  %v2345_v32 = vsel %vm2254_vm0, %v8070_v51, %v8069_v26  ;;  %v8076_v22 = vrot.slane %v7981_v10, 3  ;;  %v8077_v55 = vrot.slane %v7980_v41, 4  ;;  %v8090_v29 = vld [vmem:[#allocation100_spill] sm:$0xff] }
 0x27d   :  { %v2346_v58 = vsel %vm2256_vm1, %v8074_v21, %v8072_v0  ;;  %v6400_v53 = vsel %vm2266_vm6, %v2340_v12, %v2343_v54  ;;  %v8078_v47 = vrot.slane %v7983_v19, 1  ;;  %v8079_v20 = vrot.slane %v7982_v43, 2 }
 0x27e   :  { %8075 = vst [vmem:[#allocation102_spill] sm:$0xff] %v6400_v53  ;;  %v2347_v13 = vsel %vm2258_vm2, %v2345_v32, %v2346_v58  ;;  %v2348_v34 = vsel %vm2260_vm3, %v8077_v55, %v8076_v22  ;;  %v8080_v40 = vrot.slane %v7984_v48, 7  ;;  %v8082_v23 = vrot.slane %v7986_v35, 5  ;;  %v8110_v55 = vld [vmem:[#allocation26_spill] sm:$0xff] }
 0x27f   :  { %v2349_v14 = vsel %vm2262_vm4, %v8079_v20, %v8078_v47  ;;  %v8083_v10 = vrot.slane %v7985_v49, 6  ;;  %v8084_v33 = vrot.slane %v7988_v7, 3  ;;  %v8085_v19 = vrot.slane %v7987_v36, 4  ;;  %v8112_v47 = vld [vmem:[#allocation27_spill] sm:$0xff] }
 0x280   :  { %v2350_v6 = vsel %vm2264_vm5, %v2348_v34, %v2349_v14  ;;  %v2352_v42 = vsel %vm2254_vm0, %v8081_v18, %v8080_v40  ;;  %v8087_v24 = vrot.slane %v7990_v2, 1  ;;  %v8088_v52 = vrot.slane %v7989_v31, 2  ;;  %v8113_v14 = vld [vmem:[#allocation20_spill] sm:$0xff] }
 0x281   :  { %v2353_v41 = vsel %vm2256_vm1, %v8083_v10, %v8082_v23  ;;  %v2355_v43 = vsel %vm2260_vm3, %v8085_v19, %v8084_v33  ;;  %v6429_v63 = vsel %vm2266_vm6, %v2347_v13, %v2350_v6  ;;  %v8089_v49 = vrot.slane %v6118_v11, 7  ;;  %v8108_v13 = vld [vmem:[#allocation232_spill] sm:$0xff]  ;;  %v8114_v6 = vld [vmem:[#allocation21_spill] sm:$0xff]  ;;  %v8117_v10 = vld [vmem:[#allocation70_spill] sm:$0xff] }
 0x282   :  { %8086 = vst [vmem:[#allocation190_spill] sm:$0xff] %v6429_v63  ;;  %v2354_v48 = vsel %vm2258_vm2, %v2352_v42, %v2353_v41  ;;  %v2356_v35 = vsel %vm2262_vm4, %v8088_v52, %v8087_v24  ;;  %v8091_v39 = vrot.slane %v6122_v3, 5  ;;  %v8092_v4 = vrot.slane %v6120_v61, 6  ;;  %v8116_v42 = vld [vmem:[#allocation22_spill] sm:$0xff]  ;;  %v8121_v24 = vld [vmem:[#allocation71_spill] sm:$0xff] }
 0x283   :  { %v2359_v7 = vsel %vm2254_vm0, %v8090_v29, %v8089_v49  ;;  %v2357_v36 = vsel %vm2264_vm5, %v2355_v43, %v2356_v35  ;;  %v8093_v1 = vrot.slane %v6126_v15, 3  ;;  %v8094_v2 = vrot.slane %v6124_v9, 4  ;;  %v8099_v15 = vld [vmem:[#allocation188_spill] sm:$0xff]  ;;  %v8119_v19 = vld [vmem:[#allocation158_spill] sm:$0xff] }
 0x284   :  { %v2360_v57 = vsel %vm2256_vm1, %v8092_v4, %v8091_v39  ;;  %v8095_v50 = vrot.slane %v6130_v45, 1  ;;  %v8096_v11 = vrot.slane %v6128_v16, 2  ;;  %v6458_v54 = vsel %vm2266_vm6, %v2354_v48, %v2357_v36  ;;  %v8123_v49 = vld [vmem:[#allocation160_spill] sm:$0xff]  ;;  %v8125_v39 = vld [vmem:[#allocation159_spill] sm:$0xff] }
 0x285   :  { %v2362_v31 = vsel %vm2260_vm3, %v8094_v2, %v8093_v1  ;;  %8097 = vst [vmem:[#allocation103_spill] sm:$0xff] %v6458_v54  ;;  %v2361_v3 = vsel %vm2258_vm2, %v2359_v7, %v2360_v57  ;;  %v8098_v44 = vrot.slane %v6134_v30, 7  ;;  %v8101_v45 = vrot.slane %v6138_v8, 5  ;;  %v8124_v7 = vld [vmem:[#allocation73_spill] sm:$0xff]  ;;  %v8127_v1 = vld [vmem:[#allocation72_spill] sm:$0xff] }
 0x286   :  { %v2363_v12 = vsel %vm2262_vm4, %v8096_v11, %v8095_v50  ;;  %v8102_v16 = vrot.slane %v6136_v59, 6  ;;  %v8103_v32 = vrot.slane %v6142_v62, 3  ;;  %v8104_v17 = vrot.slane %v6140_v46, 4  ;;  %v8129_v50 = vld [vmem:[#allocation23_spill] sm:$0xff] }
 0x287   :  { %v2364_v61 = vsel %vm2264_vm5, %v2362_v31, %v2363_v12  ;;  %v2366_v9 = vsel %vm2254_vm0, %v8099_v15, %v8098_v44  ;;  %v8105_v30 = vrot.slane %v6146_v38, 1  ;;  %v8107_v21 = vrot.slane %v8106_v25, 2  ;;  %v8130_v12 = vld [vmem:[#allocation24_spill] sm:$0xff] }
 0x288   :  { %v6467_v26 = vsel %vm2266_vm6, %v2361_v3, %v2364_v61  ;;  %v2367_v51 = vsel %vm2256_vm1, %v8102_v16, %v8101_v45  ;;  %v2369_v0 = vsel %vm2260_vm3, %v8104_v17, %v8103_v32  ;;  %v8109_v22 = vrot.slane %v8108_v13, 2  ;;  %v8131_v61 = vld [vmem:[#allocation25_spill] sm:$0xff] }
 0x289   :  { %8100 = vst [vmem:[#allocation191_spill] sm:$0xff] %v6467_v26  ;;  %v2370_v58 = vsel %vm2262_vm4, %v8107_v21, %v8105_v30  ;;  %v8111_v59 = vrot.slane %v8110_v55, 4  ;;  %v2368_v62 = vsel %vm2258_vm2, %v2366_v9, %v2367_v51  ;;  %v1179_v20 = vrot.slane %v8112_v47, 1  ;;  %v8155_v26 = vld [vmem:[#allocation224_spill] sm:$0xff] }
 0x28a   :  { %v1227_v8 = vadd.f32 %v8109_v22, %v8108_v13  ;;  %v2371_v46 = vsel %vm2264_vm5, %v2369_v0, %v2370_v58  ;;  %v1186_v38 = vrot.slane %v8113_v14, 1  ;;  %v1193_v40 = vrot.slane %v8114_v6, 1 }
 0x28b   :  { %v1246_v34 = vadd.f32 %v8111_v59, %v8110_v55  ;;  %v6496_v18 = vsel %vm2266_vm6, %v2368_v62, %v2371_v46  ;;  %v1200_v23 = vrot.slane %v8116_v42, 1  ;;  %v8118_v41 = vrot.slane %v8117_v10, 4 }
 0x28c   :  { %8115 = vst [vmem:[#allocation104_spill] sm:$0xff] %v6496_v18  ;;  %v8120_v43 = vrot.slane %v8119_v19, 4  ;;  %v8122_v52 = vrot.slane %v8121_v24, 4  ;;  %v1233_v29 = vrot.slane %v8123_v49, 2  ;;  %v1240_v36 = vrot.slane %v8124_v7, 2 }
 0x28d   :  { %v1253_v33 = vadd.f32 %v8118_v41, %v8117_v10  ;;  %v8126_v4 = vrot.slane %v8125_v39, 4  ;;  %v8128_v2 = vrot.slane %v8127_v1, 4  ;;  %v1207_v11 = vrot.slane %v8129_v50, 1 }
 0x28e   :  { %v1260_v48 = vadd.f32 %v8120_v43, %v8119_v19  ;;  %v1267_v35 = vadd.f32 %v8122_v52, %v8121_v24  ;;  %v1214_v3 = vrot.slane %v8130_v12, 1  ;;  %v1221_v44 = vrot.slane %v8131_v61, 1  ;;  %v8138_v24 = vld [vmem:[#allocation57_spill] sm:$0xff]  ;;  %v8139_v52 = vld [vmem:[#allocation39_spill] sm:$0xff] }
 0x28f   :  { %v1274_v57 = vadd.f32 %v8126_v4, %v8125_v39  ;;  %v1281_v31 = vadd.f32 %v8128_v2, %v8127_v1  ;;  %v1247_v15 = vrot.slane %v1246_v34, 2  ;;  %v6520_v9 = vadd.f32 %v1179_v20, %v8112_v47  ;;  %v8132_v47 = vld [vmem:[#allocation237_spill] sm:$0xff]  ;;  %v8133_v20 = vld [vmem:[#allocation36_spill] sm:$0xff]  ;;  %v8140_v39 = vld [vmem:[#allocation58_spill] sm:$0xff] }
 0x290   :  { %v6523_v45 = vadd.f32 %v1186_v38, %v8113_v14  ;;  %v6526_v16 = vadd.f32 %v1193_v40, %v8114_v6  ;;  %v1228_v51 = vrot.slane %v1227_v8, 1  ;;  %v6529_v32 = vadd.f32 %v1200_v23, %v8116_v42  ;;  %v8134_v38 = vld [vmem:[#allocation238_spill] sm:$0xff]  ;;  %v8135_v6 = vld [vmem:[#allocation37_spill] sm:$0xff]  ;;  %v8136_v42 = vld [vmem:[#allocation55_spill] sm:$0xff] }
 0x291   :  { %v1254_v17 = vrot.slane %v1253_v33, 2  ;;  %v1261_v0 = vrot.slane %v1260_v48, 2  ;;  %v1268_v30 = vrot.slane %v1267_v35, 2  ;;  %v1234_v25 = vadd.f32 %v1233_v29, %v8123_v49  ;;  %v8137_v23 = vld [vmem:[#allocation38_spill] sm:$0xff]  ;;  %v8141_v4 = vld [vmem:[#allocation40_spill] sm:$0xff]  ;;  %v8142_v2 = vld [vmem:[#allocation59_spill] sm:$0xff] }
 0x292   :  { %v6533_v21 = vadd.f32 %v1240_v36, %v8124_v7  ;;  %v1275_v58 = vrot.slane %v1274_v57, 2  ;;  %v1282_v13 = vrot.slane %v1281_v31, 2  ;;  %v6536_v22 = vadd.f32 %v1207_v11, %v8129_v50  ;;  %v8143_v50 = vld [vmem:[#allocation41_spill] sm:$0xff] }
 0x293   :  { %v6539_v55 = vadd.f32 %v1214_v3, %v8130_v12  ;;  %v6542_v59 = vadd.f32 %v1221_v44, %v8131_v61  ;;  %v1248_v62 = vadd.f32 %v1247_v15, %v1246_v34  ;;  %v6544_v46 = vadd.f32 %v1228_v51, %v1227_v8  ;;  %v8144_v12 = vld [vmem:[#allocation60_spill] sm:$0xff]  ;;  %v8145_v3 = vld [vmem:[#allocation42_spill] sm:$0xff]  ;;  %v8146_v44 = vld [vmem:[#allocation61_spill] sm:$0xff] }
 0x294   :  { %v1286_v14 = vadd.f32 %v8133_v20, %v8132_v47  ;;  %v1293_v40 = vadd.f32 %v8135_v6, %v8134_v38  ;;  %v1300_v10 = vadd.f32 %v8137_v23, %v8136_v42  ;;  %v1255_v41 = vadd.f32 %v1254_v17, %v1253_v33  ;;  %v8147_v15 = vld [vmem:[#allocation43_spill] sm:$0xff]  ;;  %v8151_v47 = vld [vmem:[#allocation228_spill] sm:$0xff]  ;;  %v8152_v38 = vld [vmem:[#allocation229_spill] sm:$0xff] }
 0x295   :  { %v1262_v19 = vadd.f32 %v1261_v0, %v1260_v48  ;;  %v1269_v43 = vadd.f32 %v1268_v30, %v1267_v35  ;;  %v1307_v49 = vadd.f32 %v8139_v52, %v8138_v24  ;;  %v1235_v29 = vrot.slane %v1234_v25, 1  ;;  %v8148_v0 = vld [vmem:[#allocation225_spill] sm:$0xff]  ;;  %v8153_v42 = vld [vmem:[#allocation230_spill] sm:$0xff]  ;;  %v8154_v24 = vld [vmem:[#allocation231_spill] sm:$0xff] }
 0x296   :  { %v1242_v34 = vrot.slane %v6533_v21, 1  ;;  %v1276_v8 = vadd.f32 %v1275_v58, %v1274_v57  ;;  %v1283_v7 = vadd.f32 %v1282_v13, %v1281_v31  ;;  %v1249_v36 = vrot.slane %v1248_v62, 1  ;;  %v8149_v31 = vld [vmem:[#allocation226_spill] sm:$0xff]  ;;  %v8150_v58 = vld [vmem:[#allocation227_spill] sm:$0xff] }
 0x297   :  { %v1314_v1 = vadd.f32 %v8141_v4, %v8140_v39  ;;  %v1321_v11 = vadd.f32 %v8143_v50, %v8142_v2  ;;  %v1328_v33 = vadd.f32 %v8145_v3, %v8144_v12  ;;  %v1287_v48 = vrot.slane %v1286_v14, 4 }
 0x298   :  { %v1294_v35 = vrot.slane %v1293_v40, 4  ;;  %v1301_v61 = vrot.slane %v1300_v10, 4  ;;  %v1335_v51 = vadd.f32 %v8147_v15, %v8146_v44  ;;  %v1308_v17 = vrot.slane %v1307_v49, 4 }
 0x299   :  { %v2142_v57 = vrot.slane %v8148_v0, 7  ;;  %v2143_v30 = vrot.slane %v8149_v31, 6  ;;  %v2144_v13 = vrot.slane %v8150_v58, 5  ;;  %v2145_v20 = vrot.slane %v8151_v47, 4 }
 0x29a   :  { %v2146_v6 = vrot.slane %v8152_v38, 3  ;;  %v2147_v23 = vrot.slane %v8153_v42, 2  ;;  %v2148_v52 = vrot.slane %v8154_v24, 1  ;;  %v1256_v39 = vrot.slane %v1255_v41, 1 }
 0x29b   :  { %v1263_v4 = vrot.slane %v1262_v19, 1  ;;  %v1315_v2 = vrot.slane %v1314_v1, 4  ;;  %v1322_v50 = vrot.slane %v1321_v11, 4  ;;  %v1288_v12 = vadd.f32 %v1287_v48, %v1286_v14 }
 0x29c   :  { %v1295_v3 = vadd.f32 %v1294_v35, %v1293_v40  ;;  %v1329_v44 = vrot.slane %v1328_v33, 4  ;;  %v1336_v15 = vrot.slane %v1335_v51, 4  ;;  %v1270_v0 = vrot.slane %v1269_v43, 1 }
 0x29d   :  { %v1277_v31 = vrot.slane %v1276_v8, 1  ;;  %v1302_v18 = vadd.f32 %v1301_v61, %v1300_v10  ;;  %v1309_v58 = vadd.f32 %v1308_v17, %v1307_v49  ;;  %v2255_v47 = vsel %vm2254_vm0, %v8155_v26, %v2142_v57 }
 0x29e   :  { %v2257_v38 = vsel %vm2256_vm1, %v2143_v30, %v2144_v13  ;;  %v2261_v42 = vsel %vm2260_vm3, %v2145_v20, %v2146_v6  ;;  %v2263_v24 = vsel %vm2262_vm4, %v2147_v23, %v2148_v52  ;;  %v6575_v54 = vadd.f32 %v1235_v29, %v1234_v25 }
 0x29f   :  { %v1284_v63 = vrot.slane %v1283_v7, 1  ;;  %v1316_v14 = vadd.f32 %v1315_v2, %v1314_v1  ;;  %v1323_v40 = vadd.f32 %v1322_v50, %v1321_v11  ;;  %v1289_v48 = vrot.slane %v1288_v12, 2 }
 0x2a0   :  { %v1296_v35 = vrot.slane %v1295_v3, 2  ;;  %v1330_v53 = vadd.f32 %v1329_v44, %v1328_v33  ;;  %v1337_v27 = vadd.f32 %v1336_v15, %v1335_v51  ;;  %v1303_v10 = vrot.slane %v1302_v18, 2 }
 0x2a1   :  { %v1310_v49 = vrot.slane %v1309_v58, 2  ;;  %v2259_v61 = vsel %vm2258_vm2, %v2255_v47, %v2257_v38  ;;  %v2265_v26 = vsel %vm2264_vm5, %v2261_v42, %v2263_v24  ;;  %v6580_v17 = vadd.f32 %v1242_v34, %v6533_v21 }
 0x2a2   :  { %v6582_v57 = vadd.f32 %v1249_v36, %v1248_v62  ;;  %v6584_v25 = vadd.f32 %v1256_v39, %v1255_v41  ;;  %v6586_v29 = vadd.f32 %v1263_v4, %v1262_v19  ;;  %v6588_v1 = vadd.f32 %v1270_v0, %v1269_v43 }
 0x2a3   :  { %v6590_v11 = vadd.f32 %v1277_v31, %v1276_v8  ;;  %v6592_v33 = vadd.f32 %v1284_v63, %v1283_v7  ;;  %v1317_v51 = vrot.slane %v1316_v14, 2  ;;  %v1324_v30 = vrot.slane %v1323_v40, 2 }
 0x2a4   :  { %v1331_v13 = vrot.slane %v1330_v53, 2  ;;  %v1338_v20 = vrot.slane %v1337_v27, 2  ;;  %v6595_v6 = vsel %vm2266_vm6, %v2259_v61, %v2265_v26  ;;  %v1290_v21 = vadd.f32 %v1289_v48, %v1288_v12 }
 0x2a5   :  { %v1297_v62 = vadd.f32 %v1296_v35, %v1295_v3  ;;  %v1304_v34 = vadd.f32 %v1303_v10, %v1302_v18  ;;  %v1311_v41 = vadd.f32 %v1310_v49, %v1309_v58  ;;  %v2149_v19 = vrot.slane %v6523_v45, 7 }
 0x2a6   :  { %v2150_v43 = vrot.slane %v6526_v16, 6  ;;  %v2151_v8 = vrot.slane %v6529_v32, 5  ;;  %v2152_v63 = vrot.slane %v6536_v22, 4  ;;  %v2153_v7 = vrot.slane %v6539_v55, 3 }
 0x2a7   :  { %v2154_v36 = vrot.slane %v6542_v59, 2  ;;  %v2155_v23 = vrot.slane %v6544_v46, 1  ;;  %v2456_v52 = vperm.slane %v6595_v6, 0  ;;  %v1318_v39 = vadd.f32 %v1317_v51, %v1316_v14 }
 0x2a8   :  { %v1325_v4 = vadd.f32 %v1324_v30, %v1323_v40  ;;  %v2457_v18 = vperm.slane %v6595_v6, 1  ;;  %v2458_v45 = vperm.slane %v6595_v6, 2  ;;  %v1291_v2 = vrot.slane %v1290_v21, 1 }
 0x2a9   :  { %v1298_v16 = vrot.slane %v1297_v62, 1  ;;  %v1332_v50 = vadd.f32 %v1331_v13, %v1330_v53  ;;  %v6607_v32 = vadd.f32 %v1338_v20, %v1337_v27  ;;  %v1305_v22 = vrot.slane %v1304_v34, 1 }
 0x2aa   :  { %v1312_v12 = vrot.slane %v1311_v41, 1  ;;  %v2268_v55 = vsel %vm2254_vm0, %v6520_v9, %v2149_v19  ;;  %v2459_v59 = vperm.slane %v6595_v6, 3  ;;  %v2269_v46 = vsel %vm2256_vm1, %v2150_v43, %v2151_v8  ;;  %v8156_v19 = vld [vmem:[#allocation62_spill] sm:$0xff]  ;;  %v8158_v8 = vld [vmem:[#allocation63_spill] sm:$0xff] }
 0x2ab   :  { %v2271_v3 = vsel %vm2260_vm3, %v2152_v63, %v2153_v7  ;;  %v2272_v44 = vsel %vm2262_vm4, %v2154_v36, %v2155_v23  ;;  %v2712_v15 = vsel %vm2254_vm0, %v2456_v52, 0.0  ;;  %v1319_v0 = vrot.slane %v1318_v39, 1  ;;  %v8160_v23 = vld [vmem:[#allocation64_spill] sm:$0xff]  ;;  %v8161_v52 = vld [vmem:[#allocation46_spill] sm:$0xff] }
 0x2ac   :  { %v2460_v53 = vperm.slane %v6595_v6, 4  ;;  %v2713_v27 = vsel %vm2254_vm0, %v2457_v18, 0.0  ;;  %v2715_v31 = vsel %vm2254_vm0, %v2458_v45, 0.0  ;;  %v1326_v58 = vrot.slane %v1325_v4, 1  ;;  %v8163_v18 = vld [vmem:[#allocation47_spill] sm:$0xff] }
 0x2ad   :  { %v1333_v47 = vrot.slane %v1332_v50, 1  ;;  %v1340_v9 = vrot.slane %v6607_v32, 1  ;;  %v2714_v38 = vadd.f32 %v2713_v27, %v2712_v15  ;;  %v2270_v42 = vsel %vm2258_vm2, %v2268_v55, %v2269_v46  ;;  %v8167_v55 = vld [vmem:[#allocation49_spill] sm:$0xff]  ;;  %v8168_v46 = vld [vmem:[#allocation68_spill] sm:$0xff] }
 0x2ae   :  { %v2273_v24 = vsel %vm2264_vm5, %v2271_v3, %v2272_v44  ;;  %v2461_v14 = vperm.slane %v6595_v6, 5  ;;  %v2717_v40 = vsel %vm2254_vm0, %v2459_v59, 0.0  ;;  %v6624_v48 = vadd.f32 %v1291_v2, %v1290_v21  ;;  %v8164_v2 = vld [vmem:[#allocation66_spill] sm:$0xff] }
 0x2af   :  { %v6626_v35 = vadd.f32 %v1298_v16, %v1297_v62  ;;  %v6628_v10 = vadd.f32 %v1305_v22, %v1304_v34  ;;  %v2716_v49 = vadd.f32 %v2715_v31, %v2714_v38  ;;  %v6630_v61 = vadd.f32 %v1312_v12, %v1311_v41  ;;  %v8157_v34 = vld [vmem:[#allocation44_spill] sm:$0xff]  ;;  %v8159_v41 = vld [vmem:[#allocation45_spill] sm:$0xff]  ;;  %v8166_v12 = vld [vmem:[#allocation67_spill] sm:$0xff] }
 0x2b0   :  { %v6632_v26 = vadd.f32 %v1319_v0, %v1318_v39  ;;  %v2462_v51 = vperm.slane %v6595_v6, 6  ;;  %v2719_v30 = vsel %vm2254_vm0, %v2460_v53, 0.0  ;;  %v6636_v13 = vadd.f32 %v1326_v58, %v1325_v4  ;;  %v8162_v4 = vld [vmem:[#allocation65_spill] sm:$0xff]  ;;  %v8165_v16 = vld [vmem:[#allocation48_spill] sm:$0xff]  ;;  %v8169_v3 = vld [vmem:[#allocation50_spill] sm:$0xff] }
 0x2b1   :  { %v6638_v20 = vadd.f32 %v1333_v47, %v1332_v50  ;;  %v6641_v21 = vsel %vm2266_vm6, %v2270_v42, %v2273_v24  ;;  %v2718_v62 = vadd.f32 %v2717_v40, %v2716_v49  ;;  %v1342_v43 = vadd.f32 %v8157_v34, %v8156_v19  ;;  %v8170_v0 = vld [vmem:[#allocation69_spill] sm:$0xff]  ;;  %v8171_v53 = vld [vmem:[#allocation51_spill] sm:$0xff] }
 0x2b2   :  { %v1349_v63 = vadd.f32 %v8159_v41, %v8158_v8  ;;  %v2463_v7 = vperm.slane %v6595_v6, 7  ;;  %v2721_v36 = vsel %vm2254_vm0, %v2461_v14, 0.0  ;;  %v1356_v39 = vadd.f32 %v8161_v52, %v8160_v23 }
 0x2b3   :  { %v1363_v45 = vadd.f32 %v8163_v18, %v8162_v4  ;;  %v1370_v50 = vadd.f32 %v8165_v16, %v8164_v2  ;;  %v2720_v22 = vadd.f32 %v2719_v30, %v2718_v62  ;;  %v1377_v59 = vadd.f32 %v8167_v55, %v8166_v12 }
 0x2b4   :  { %v1384_v44 = vadd.f32 %v8169_v3, %v8168_v46  ;;  %v2464_v6 = vperm.slane %v6641_v21, 0  ;;  %v2723_v15 = vsel %vm2254_vm0, %v2462_v51, 0.0  ;;  %v1391_v27 = vadd.f32 %v8171_v53, %v8170_v0 }
 0x2b5   :  { %v2156_v31 = vrot.slane %v6580_v17, 7  ;;  %v2157_v58 = vrot.slane %v6582_v57, 6  ;;  %v2722_v47 = vadd.f32 %v2721_v36, %v2720_v22  ;;  %v2158_v38 = vrot.slane %v6584_v25, 5 }
 0x2b6   :  { %v2159_v42 = vrot.slane %v6586_v29, 4  ;;  %v2465_v24 = vperm.slane %v6641_v21, 1  ;;  %v2725_v14 = vsel %vm2254_vm0, %v2463_v7, 0.0  ;;  %v2160_v40 = vrot.slane %v6588_v1, 3 }
 0x2b7   :  { %v2161_v49 = vrot.slane %v6590_v11, 2  ;;  %v2162_v51 = vrot.slane %v6592_v33, 1  ;;  %v2724_v30 = vadd.f32 %v2723_v15, %v2722_v47  ;;  %v1343_v62 = vrot.slane %v1342_v43, 4 }
 0x2b8   :  { %v1350_v17 = vrot.slane %v1349_v63, 4  ;;  %v2466_v57 = vperm.slane %v6641_v21, 2  ;;  %v2727_v19 = vsel %vm2254_vm0, %v2464_v6, 0.0  ;;  %v1357_v25 = vrot.slane %v1356_v39, 4 }
 0x2b9   :  { %v1364_v34 = vrot.slane %v1363_v45, 4  ;;  %v1371_v29 = vrot.slane %v1370_v50, 4  ;;  %v2726_v8 = vadd.f32 %v2725_v14, %v2724_v30  ;;  %v1378_v41 = vrot.slane %v1377_v59, 4 }
 0x2ba   :  { %v2275_v7 = vsel %vm2254_vm0, %v6575_v54, %v2156_v31  ;;  %v2467_v1 = vperm.slane %v6641_v21, 3  ;;  %v2729_v11 = vsel %vm2254_vm0, %v2465_v24, 0.0  ;;  %v2276_v33 = vsel %vm2256_vm1, %v2157_v58, %v2158_v38 }
 0x2bb   :  { %v2278_v36 = vsel %vm2260_vm3, %v2159_v42, %v2160_v40  ;;  %v2279_v23 = vsel %vm2262_vm4, %v2161_v49, %v2162_v51  ;;  %v2728_v52 = vadd.f32 %v2727_v19, %v2726_v8  ;;  %v1385_v4 = vrot.slane %v1384_v44, 4 }
 0x2bc   :  { %v1392_v18 = vrot.slane %v1391_v27, 4  ;;  %v2468_v2 = vperm.slane %v6641_v21, 4  ;;  %v2731_v16 = vsel %vm2254_vm0, %v2466_v57, 0.0  ;;  %v1344_v22 = vadd.f32 %v1343_v62, %v1342_v43 }
 0x2bd   :  { %v1351_v12 = vadd.f32 %v1350_v17, %v1349_v63  ;;  %v1358_v54 = vadd.f32 %v1357_v25, %v1356_v39  ;;  %v2730_v55 = vadd.f32 %v2729_v11, %v2728_v52  ;;  %v2277_v46 = vsel %vm2258_vm2, %v2275_v7, %v2276_v33 }
 0x2be   :  { %v2280_v3 = vsel %vm2264_vm5, %v2278_v36, %v2279_v23  ;;  %v2469_v6 = vperm.slane %v6641_v21, 5  ;;  %v2733_v15 = vsel %vm2254_vm0, %v2467_v1, 0.0  ;;  %v1365_v0 = vadd.f32 %v1364_v34, %v1363_v45 }
 0x2bf   :  { %v1372_v53 = vadd.f32 %v1371_v29, %v1370_v50  ;;  %v1379_v31 = vadd.f32 %v1378_v41, %v1377_v59  ;;  %v2732_v58 = vadd.f32 %v2731_v16, %v2730_v55  ;;  %v1386_v47 = vadd.f32 %v1385_v4, %v1384_v44 }
 0x2c0   :  { %v1393_v38 = vadd.f32 %v1392_v18, %v1391_v27  ;;  %v2470_v42 = vperm.slane %v6641_v21, 6  ;;  %v2735_v43 = vsel %vm2254_vm0, %v2468_v2, 0.0  ;;  %v1341_v63 = vadd.f32 %v1340_v9, %v6607_v32 }
 0x2c1   :  { %v1352_v39 = vrot.slane %v1351_v12, 2  ;;  %v6693_v24 = vsel %vm2266_vm6, %v2277_v46, %v2280_v3  ;;  %v2734_v14 = vadd.f32 %v2733_v15, %v2732_v58  ;;  %v1345_v40 = vrot.slane %v1344_v22, 2 }
 0x2c2   :  { %v1359_v45 = vrot.slane %v1358_v54, 2  ;;  %v2471_v50 = vperm.slane %v6641_v21, 7  ;;  %v2737_v59 = vsel %vm2254_vm0, %v2469_v6, 0.0  ;;  %v1366_v44 = vrot.slane %v1365_v0, 2 }
 0x2c3   :  { %v1373_v27 = vrot.slane %v1372_v53, 2  ;;  %v1380_v49 = vrot.slane %v1379_v31, 2  ;;  %v2736_v51 = vadd.f32 %v2735_v43, %v2734_v14  ;;  %v1387_v30 = vrot.slane %v1386_v47, 2 }
 0x2c4   :  { %v1394_v62 = vrot.slane %v1393_v38, 2  ;;  %v2472_v17 = vperm.slane %v6693_v24, 0  ;;  %v2739_v32 = vsel %vm2254_vm0, %v2470_v42, 0.0  ;;  %v1353_v9 = vadd.f32 %v1352_v39, %v1351_v12 }
 0x2c5   :  { %v2163_v57 = vrot.slane %v6626_v35, 7  ;;  %v2164_v19 = vrot.slane %v6628_v10, 6  ;;  %v2738_v25 = vadd.f32 %v2737_v59, %v2736_v51  ;;  %v2165_v21 = vrot.slane %v6630_v61, 5 }
 0x2c6   :  { %v2166_v34 = vrot.slane %v6632_v26, 4  ;;  %v2473_v29 = vperm.slane %v6693_v24, 1  ;;  %v2741_v8 = vsel %vm2254_vm0, %v2471_v50, 0.0  ;;  %v2167_v41 = vrot.slane %v6636_v13, 3 }
 0x2c7   :  { %v2168_v7 = vrot.slane %v6638_v20, 2  ;;  %v2169_v1 = vrot.slane %v1341_v63, 1  ;;  %v2740_v11 = vadd.f32 %v2739_v32, %v2738_v25  ;;  %v1360_v33 = vadd.f32 %v1359_v45, %v1358_v54 }
 0x2c8   :  { %v1367_v36 = vadd.f32 %v1366_v44, %v1365_v0  ;;  %v2474_v35 = vperm.slane %v6693_v24, 2  ;;  %v2743_v10 = vsel %vm2254_vm0, %v2472_v17, 0.0  ;;  %v1374_v23 = vadd.f32 %v1373_v27, %v1372_v53 }
 0x2c9   :  { %v1381_v61 = vadd.f32 %v1380_v49, %v1379_v31  ;;  %v1388_v52 = vadd.f32 %v1387_v30, %v1386_v47  ;;  %v2742_v26 = vadd.f32 %v2741_v8, %v2740_v11  ;;  %v1395_v4 = vadd.f32 %v1394_v62, %v1393_v38 }
 0x2ca   :  { %v2282_v18 = vsel %vm2254_vm0, %v6624_v48, %v2163_v57  ;;  %v2475_v13 = vperm.slane %v6693_v24, 3  ;;  %v2745_v20 = vsel %vm2254_vm0, %v2473_v29, 0.0  ;;  %v2283_v2 = vsel %vm2256_vm1, %v2164_v19, %v2165_v21 }
 0x2cb   :  { %v2285_v16 = vsel %vm2260_vm3, %v2166_v34, %v2167_v41  ;;  %v2286_v12 = vsel %vm2262_vm4, %v2168_v7, %v2169_v1  ;;  %v2744_v54 = vadd.f32 %v2743_v10, %v2742_v26  ;;  %v1346_v55 = vadd.f32 %v1345_v40, %v1344_v22 }
 0x2cc   :  { %v1354_v46 = vrot.slane %v1353_v9, 1  ;;  %v2476_v3 = vperm.slane %v6693_v24, 4  ;;  %v2747_v6 = vsel %vm2254_vm0, %v2474_v35, 0.0  ;;  %v1361_v15 = vrot.slane %v1360_v33, 1 }
 0x2cd   :  { %v1368_v0 = vrot.slane %v1367_v36, 1  ;;  %v1375_v48 = vrot.slane %v1374_v23, 1  ;;  %v2746_v53 = vadd.f32 %v2745_v20, %v2744_v54  ;;  %v2284_v31 = vsel %vm2258_vm2, %v2282_v18, %v2283_v2 }
 0x2ce   :  { %v2287_v58 = vsel %vm2264_vm5, %v2285_v16, %v2286_v12  ;;  %v2477_v47 = vperm.slane %v6693_v24, 5  ;;  %v2749_v38 = vsel %vm2254_vm0, %v2475_v13, 0.0  ;;  %v1382_v42 = vrot.slane %v1381_v61, 1 }
 0x2cf   :  { %v1389_v43 = vrot.slane %v1388_v52, 1  ;;  %v1396_v22 = vrot.slane %v1395_v4, 1  ;;  %v2748_v63 = vadd.f32 %v2747_v6, %v2746_v53  ;;  %v1347_v39 = vrot.slane %v1346_v55, 1 }
 0x2d0   :  { %v2478_v14 = vperm.slane %v6693_v24, 6  ;;  %v2751_v40 = vsel %vm2254_vm0, %v2476_v3, 0.0  ;;  %v1355_v45 = vadd.f32 %v1354_v46, %v1353_v9  ;;  %v1362_v50 = vadd.f32 %v1361_v15, %v1360_v33 }
 0x2d1   :  { %v2288_v59 = vsel %vm2266_vm6, %v2284_v31, %v2287_v58  ;;  %v2750_v44 = vadd.f32 %v2749_v38, %v2748_v63  ;;  %v1369_v27 = vadd.f32 %v1368_v0, %v1367_v36  ;;  %v1376_v49 = vadd.f32 %v1375_v48, %v1374_v23 }
 0x2d2   :  { %v2479_v51 = vperm.slane %v6693_v24, 7  ;;  %v2753_v30 = vsel %vm2254_vm0, %v2477_v47, 0.0  ;;  %v1383_v62 = vadd.f32 %v1382_v42, %v1381_v61  ;;  %v1390_v17 = vadd.f32 %v1389_v43, %v1388_v52 }
 0x2d3   :  { %v1397_v32 = vadd.f32 %v1396_v22, %v1395_v4  ;;  %v2752_v57 = vadd.f32 %v2751_v40, %v2750_v44  ;;  %v2480_v19 = vperm.slane %v2288_v59, 0  ;;  %v2755_v25 = vsel %vm2254_vm0, %v2478_v14, 0.0 }
 0x2d4   :  { %v1348_v21 = vadd.f32 %v1347_v39, %v1346_v55  ;;  %v2170_v34 = vrot.slane %v1355_v45, 7  ;;  %v2171_v9 = vrot.slane %v1362_v50, 6  ;;  %v2172_v8 = vrot.slane %v1369_v27, 5 }
 0x2d5   :  { %v2754_v29 = vadd.f32 %v2753_v30, %v2752_v57  ;;  %v2173_v41 = vrot.slane %v1376_v49, 4  ;;  %v2481_v7 = vperm.slane %v2288_v59, 1  ;;  %v2757_v1 = vsel %vm2254_vm0, %v2479_v51, 0.0 }
 0x2d6   :  { %v2174_v11 = vrot.slane %v1383_v62, 3  ;;  %v2175_v24 = vrot.slane %v1390_v17, 2  ;;  %v2176_v33 = vrot.slane %v1397_v32, 1  ;;  %v2482_v35 = vperm.slane %v2288_v59, 2 }
 0x2d7   :  { %v2756_v36 = vadd.f32 %v2755_v25, %v2754_v29  ;;  %v2759_v10 = vsel %vm2254_vm0, %v2480_v19, 0.0  ;;  %v2289_v61 = vsel %vm2254_vm0, %v1348_v21, %v2170_v34  ;;  %v2483_v52 = vperm.slane %v2288_v59, 3 }
 0x2d8   :  { %v2761_v26 = vsel %vm2254_vm0, %v2481_v7, 0.0  ;;  %v2290_v4 = vsel %vm2256_vm1, %v2171_v9, %v2172_v8  ;;  %v2292_v18 = vsel %vm2260_vm3, %v2173_v41, %v2174_v11  ;;  %v2293_v13 = vsel %vm2262_vm4, %v2175_v24, %v2176_v33 }
 0x2d9   :  { %v2758_v23 = vadd.f32 %v2757_v1, %v2756_v36  ;;  %v2484_v2 = vperm.slane %v2288_v59, 4  ;;  %v2763_v16 = vsel %vm2254_vm0, %v2482_v35, 0.0  ;;  %v2291_v54 = vsel %vm2258_vm2, %v2289_v61, %v2290_v4 }
 0x2da   :  { %v2294_v55 = vsel %vm2264_vm5, %v2292_v18, %v2293_v13  ;;  %v2485_v46 = vperm.slane %v2288_v59, 5  ;;  %v2765_v3 = vsel %vm2254_vm0, %v2483_v52, 0.0  ;;  %v2486_v15 = vperm.slane %v2288_v59, 6 }
 0x2db   :  { %v2760_v20 = vadd.f32 %v2759_v10, %v2758_v23  ;;  %v2767_v0 = vsel %vm2254_vm0, %v2484_v2, 0.0  ;;  %v2295_v48 = vsel %vm2266_vm6, %v2291_v54, %v2294_v55  ;;  %v2487_v31 = vperm.slane %v2288_v59, 7 }
 0x2dc   :  { %v2769_v58 = vsel %vm2254_vm0, %v2485_v46, 0.0  ;;  %v2488_v38 = vperm.slane %v2295_v48, 0  ;;  %v2771_v42 = vsel %vm2254_vm0, %v2486_v15, 0.0  ;;  %v2489_v22 = vperm.slane %v2295_v48, 1 }
 0x2dd   :  { %v2762_v12 = vadd.f32 %v2761_v26, %v2760_v20  ;;  %v2773_v63 = vsel %vm2254_vm0, %v2487_v31, 0.0  ;;  %v2490_v14 = vperm.slane %v2295_v48, 2  ;;  %v2491_v50 = vperm.slane %v2295_v48, 3 }
 0x2de   :  { %v2775_v40 = vsel %vm2254_vm0, %v2488_v38, 0.0  ;;  %v2777_v44 = vsel %vm2254_vm0, %v2489_v22, 0.0  ;;  %v2492_v59 = vperm.slane %v2295_v48, 4  ;;  %v2493_v30 = vperm.slane %v2295_v48, 5 }
 0x2df   :  { %v2764_v6 = vadd.f32 %v2763_v16, %v2762_v12  ;;  %v2779_v49 = vsel %vm2254_vm0, %v2490_v14, 0.0  ;;  %v2781_v62 = vsel %vm2254_vm0, %v2491_v50, 0.0  ;;  %v2494_v32 = vperm.slane %v2295_v48, 6 }
 0x2e0   :  { %v2783_v57 = vsel %vm2254_vm0, %v2492_v59, 0.0  ;;  %v2495_v25 = vperm.slane %v2295_v48, 7  ;;  %v2785_v21 = vsel %vm2254_vm0, %v2493_v30, 0.0  ;;  %v2496_v9 = vperm.slane %v6266_v5, 0 }
 0x2e1   :  { %v2766_v53 = vadd.f32 %v2765_v3, %v2764_v6  ;;  %v2787_v29 = vsel %vm2254_vm0, %v2494_v32, 0.0  ;;  %v2497_v41 = vperm.slane %v6266_v5, 1  ;;  %v2498_v11 = vperm.slane %v6266_v5, 2 }
 0x2e2   :  { %v2789_v7 = vsel %vm2254_vm0, %v2495_v25, 0.0  ;;  %v2791_v24 = vsel %vm2254_vm0, %v2496_v9, 0.0  ;;  %v2499_v36 = vperm.slane %v6266_v5, 3  ;;  %v2500_v23 = vperm.slane %v6266_v5, 4 }
 0x2e3   :  { %v2768_v47 = vadd.f32 %v2767_v0, %v2766_v53  ;;  %v2793_v35 = vsel %vm2254_vm0, %v2497_v41, 0.0  ;;  %v2795_v61 = vsel %vm2254_vm0, %v2498_v11, 0.0  ;;  %v2501_v26 = vperm.slane %v6266_v5, 5 }
 0x2e4   :  { %v2797_v4 = vsel %vm2254_vm0, %v2499_v36, 0.0  ;;  %v2502_v13 = vperm.slane %v6266_v5, 6  ;;  %v2799_v20 = vsel %vm2254_vm0, %v2500_v23, 0.0  ;;  %v2503_v16 = vperm.slane %v6266_v5, 7 }
 0x2e5   :  { %v2770_v43 = vadd.f32 %v2769_v58, %v2768_v47  ;;  %v2801_v12 = vsel %vm2254_vm0, %v2501_v26, 0.0  ;;  %v2504_v55 = vperm.slane %v6275_v56, 0  ;;  %v2505_v6 = vperm.slane %v6275_v56, 1 }
 0x2e6   :  { %v2803_v46 = vsel %vm2254_vm0, %v2502_v13, 0.0  ;;  %v2805_v15 = vsel %vm2254_vm0, %v2503_v16, 0.0  ;;  %v2506_v48 = vperm.slane %v6275_v56, 2  ;;  %v2507_v5 = vperm.slane %v6275_v56, 3 }
 0x2e7   :  { %v2772_v39 = vadd.f32 %v2771_v42, %v2770_v43  ;;  %v2807_v53 = vsel %vm2254_vm0, %v2504_v55, 0.0  ;;  %v2809_v58 = vsel %vm2254_vm0, %v2505_v6, 0.0  ;;  %v2508_v38 = vperm.slane %v6275_v56, 4 }
 0x2e8   :  { %v2811_v42 = vsel %vm2254_vm0, %v2506_v48, 0.0  ;;  %v2509_v22 = vperm.slane %v6275_v56, 5  ;;  %v2510_v14 = vperm.slane %v6275_v56, 6  ;;  %v2511_v50 = vperm.slane %v6275_v56, 7 }
 0x2e9   :  { %v2774_v45 = vadd.f32 %v2773_v63, %v2772_v39  ;;  %v2813_v63 = vsel %vm2254_vm0, %v2507_v5, 0.0  ;;  %v2512_v59 = vperm.slane %v6304_v28, 0  ;;  %v2513_v30 = vperm.slane %v6304_v28, 1 }
 0x2ea   :  { %v2514_v32 = vperm.slane %v6304_v28, 2  ;;  %v2515_v56 = vperm.slane %v6304_v28, 3 }
 0x2eb   :  { %v2776_v27 = vadd.f32 %v2775_v40, %v2774_v45  ;;  %v2815_v40 = vsel %vm2254_vm0, %v2508_v38, 0.0  ;;  %v2825_v25 = vsel %vm2254_vm0, %v2513_v30, 0.0  ;;  %v2534_v30 = vperm.slane %v6362_v60, 6 }
 0x2ec   :  { %v2827_v9 = vsel %vm2254_vm0, %v2514_v32, 0.0  ;;  %v2829_v41 = vsel %vm2254_vm0, %v2515_v56, 0.0  ;;  %v2535_v32 = vperm.slane %v6362_v60, 7  ;;  %v8172_v56 = vld [vmem:[#allocation189_spill] sm:$0xff] }
 0x2ed   :  { %v2778_v51 = vadd.f32 %v2777_v44, %v2776_v27  ;;  %v2817_v44 = vsel %vm2254_vm0, %v2509_v22, 0.0 }
 0x2ef   :  { %v2780_v17 = vadd.f32 %v2779_v49, %v2778_v51  ;;  %v2819_v49 = vsel %vm2254_vm0, %v2510_v14, 0.0 }
 0x2f1   :  { %v2782_v19 = vadd.f32 %v2781_v62, %v2780_v17  ;;  %v2821_v62 = vsel %vm2254_vm0, %v2511_v50, 0.0  ;;  %v2532_v50 = vperm.slane %v6362_v60, 4 }
 0x2f3   :  { %v2784_v34 = vadd.f32 %v2783_v57, %v2782_v19  ;;  %v2823_v57 = vsel %vm2254_vm0, %v2512_v59, 0.0  ;;  %v2533_v59 = vperm.slane %v6362_v60, 5 }
 0x2f5   :  { %v2786_v8 = vadd.f32 %v2785_v21, %v2784_v34  ;;  %v2516_v34 = vperm.slane %v6304_v28, 4 }
 0x2f7   :  { %v2788_v1 = vadd.f32 %v2787_v29, %v2786_v8  ;;  %v2517_v8 = vperm.slane %v6304_v28, 5  ;;  %v2831_v11 = vsel %vm2254_vm0, %v2516_v34, 0.0 }
 0x2f9   :  { %v2790_v33 = vadd.f32 %v2789_v7, %v2788_v1  ;;  %v2518_v1 = vperm.slane %v6304_v28, 6  ;;  %v2833_v36 = vsel %vm2254_vm0, %v2517_v8, 0.0 }
 0x2fb   :  { %v2792_v10 = vadd.f32 %v2791_v24, %v2790_v33  ;;  %v2519_v33 = vperm.slane %v6304_v28, 7  ;;  %v2835_v23 = vsel %vm2254_vm0, %v2518_v1, 0.0  ;;  %v2523_v28 = vperm.slane %v6333_v37, 3 }
 0x2fd   :  { %v2794_v52 = vadd.f32 %v2793_v35, %v2792_v10  ;;  %v2520_v10 = vperm.slane %v6333_v37, 0  ;;  %v2837_v26 = vsel %vm2254_vm0, %v2519_v33, 0.0  ;;  %v2540_v33 = vperm.slane %v8172_v56, 4 }
 0x2ff   :  { %v2796_v18 = vadd.f32 %v2795_v61, %v2794_v52  ;;  %v2521_v52 = vperm.slane %v6333_v37, 1  ;;  %v2839_v13 = vsel %vm2254_vm0, %v2520_v10, 0.0  ;;  %v2541_v10 = vperm.slane %v8172_v56, 5 }
 0x301   :  { %v2798_v2 = vadd.f32 %v2797_v4, %v2796_v18  ;;  %v2522_v18 = vperm.slane %v6333_v37, 2 }
 0x303   :  { %v2800_v54 = vadd.f32 %v2799_v20, %v2798_v2  ;;  %v2841_v2 = vsel %vm2254_vm0, %v2521_v52, 0.0  ;;  %v2542_v52 = vperm.slane %v8172_v56, 6 }
 0x305   :  { %v2802_v3 = vadd.f32 %v2801_v12, %v2800_v54  ;;  %v2524_v12 = vperm.slane %v6333_v37, 4  ;;  %v2843_v54 = vsel %vm2254_vm0, %v2522_v18, 0.0  ;;  %v2543_v18 = vperm.slane %v8172_v56, 7 }
 0x307   :  { %v2804_v0 = vadd.f32 %v2803_v46, %v2802_v3  ;;  %v2525_v46 = vperm.slane %v6333_v37, 5  ;;  %v2845_v3 = vsel %vm2254_vm0, %v2523_v28, 0.0  ;;  %v8173_v28 = vld [vmem:[#allocation102_spill] sm:$0xff] }
 0x309   :  { %v2806_v31 = vadd.f32 %v2805_v15, %v2804_v0  ;;  %v2526_v15 = vperm.slane %v6333_v37, 6  ;;  %v2847_v0 = vsel %vm2254_vm0, %v2524_v12, 0.0 }
 0x30b   :  { %v2808_v47 = vadd.f32 %v2807_v53, %v2806_v31  ;;  %v2527_v53 = vperm.slane %v6333_v37, 7  ;;  %v2849_v31 = vsel %vm2254_vm0, %v2525_v46, 0.0  ;;  %v2531_v37 = vperm.slane %v6362_v60, 3 }
 0x30d   :  { %v2810_v43 = vadd.f32 %v2809_v58, %v2808_v47  ;;  %v2528_v58 = vperm.slane %v6362_v60, 0  ;;  %v2851_v47 = vsel %vm2254_vm0, %v2526_v15, 0.0 }
 0x30f   :  { %v2812_v39 = vadd.f32 %v2811_v42, %v2810_v43  ;;  %v2529_v42 = vperm.slane %v6362_v60, 1  ;;  %v2853_v43 = vsel %vm2254_vm0, %v2527_v53, 0.0 }
 0x311   :  { %v2814_v45 = vadd.f32 %v2813_v63, %v2812_v39  ;;  %v2530_v63 = vperm.slane %v6362_v60, 2  ;;  %v2855_v39 = vsel %vm2254_vm0, %v2528_v58, 0.0  ;;  %v2539_v60 = vperm.slane %v8172_v56, 3 }
 0x313   :  { %v2816_v27 = vadd.f32 %v2815_v40, %v2814_v45  ;;  %v2857_v40 = vsel %vm2254_vm0, %v2529_v42, 0.0 }
 0x315   :  { %v2818_v51 = vadd.f32 %v2817_v44, %v2816_v27  ;;  %v2859_v44 = vsel %vm2254_vm0, %v2530_v63, 0.0 }
 0x317   :  { %v2820_v17 = vadd.f32 %v2819_v49, %v2818_v51  ;;  %v2861_v49 = vsel %vm2254_vm0, %v2531_v37, 0.0 }
 0x319   :  { %v2822_v19 = vadd.f32 %v2821_v62, %v2820_v17  ;;  %v2863_v62 = vsel %vm2254_vm0, %v2532_v50, 0.0 }
 0x31b   :  { %v2824_v21 = vadd.f32 %v2823_v57, %v2822_v19  ;;  %v2865_v57 = vsel %vm2254_vm0, %v2533_v59, 0.0 }
 0x31d   :  { %v2826_v29 = vadd.f32 %v2825_v25, %v2824_v21  ;;  %v2536_v25 = vperm.slane %v8172_v56, 0  ;;  %v2867_v21 = vsel %vm2254_vm0, %v2534_v30, 0.0 }
 0x31f   :  { %v2828_v7 = vadd.f32 %v2827_v9, %v2826_v29  ;;  %v2537_v9 = vperm.slane %v8172_v56, 1  ;;  %v2869_v29 = vsel %vm2254_vm0, %v2535_v32, 0.0 }
 0x321   :  { %v2830_v24 = vadd.f32 %v2829_v41, %v2828_v7  ;;  %v2538_v41 = vperm.slane %v8172_v56, 2  ;;  %v2871_v7 = vsel %vm2254_vm0, %v2536_v25, 0.0 }
 0x323   :  { %v2832_v35 = vadd.f32 %v2831_v11, %v2830_v24  ;;  %v2873_v11 = vsel %vm2254_vm0, %v2537_v9, 0.0 }
 0x325   :  { %v2834_v61 = vadd.f32 %v2833_v36, %v2832_v35  ;;  %v2875_v36 = vsel %vm2254_vm0, %v2538_v41, 0.0 }
 0x327   :  { %v2836_v4 = vadd.f32 %v2835_v23, %v2834_v61  ;;  %v2877_v23 = vsel %vm2254_vm0, %v2539_v60, 0.0 }
 0x329   :  { %v2838_v20 = vadd.f32 %v2837_v26, %v2836_v4  ;;  %v2879_v26 = vsel %vm2254_vm0, %v2540_v33, 0.0 }
 0x32b   :  { %v2840_v16 = vadd.f32 %v2839_v13, %v2838_v20  ;;  %v2881_v13 = vsel %vm2254_vm0, %v2541_v10, 0.0 }
 0x32d   :  { %v2842_v55 = vadd.f32 %v2841_v2, %v2840_v16  ;;  %v2544_v2 = vperm.slane %v8173_v28, 0  ;;  %v2883_v16 = vsel %vm2254_vm0, %v2542_v52, 0.0 }
 0x32f   :  { %v2844_v6 = vadd.f32 %v2843_v54, %v2842_v55  ;;  %v2545_v54 = vperm.slane %v8173_v28, 1  ;;  %v2885_v55 = vsel %vm2254_vm0, %v2543_v18, 0.0 }
 0x331   :  { %v2846_v48 = vadd.f32 %v2845_v3, %v2844_v6  ;;  %v2546_v3 = vperm.slane %v8173_v28, 2  ;;  %v2887_v6 = vsel %vm2254_vm0, %v2544_v2, 0.0 }
 0x333   :  { %v2848_v5 = vadd.f32 %v2847_v0, %v2846_v48  ;;  %v2547_v0 = vperm.slane %v8173_v28, 3  ;;  %v2889_v48 = vsel %vm2254_vm0, %v2545_v54, 0.0 }
 0x335   :  { %v2850_v38 = vadd.f32 %v2849_v31, %v2848_v5  ;;  %v2548_v31 = vperm.slane %v8173_v28, 4  ;;  %v2891_v5 = vsel %vm2254_vm0, %v2546_v3, 0.0 }
 0x337   :  { %v2852_v22 = vadd.f32 %v2851_v47, %v2850_v38  ;;  %v2549_v47 = vperm.slane %v8173_v28, 5  ;;  %v2893_v38 = vsel %vm2254_vm0, %v2547_v0, 0.0 }
 0x339   :  { %v2854_v14 = vadd.f32 %v2853_v43, %v2852_v22  ;;  %v2550_v43 = vperm.slane %v8173_v28, 6  ;;  %v2895_v22 = vsel %vm2254_vm0, %v2548_v31, 0.0 }
 0x33b   :  { %v2856_v45 = vadd.f32 %v2855_v39, %v2854_v14  ;;  %v2551_v39 = vperm.slane %v8173_v28, 7  ;;  %v2897_v14 = vsel %vm2254_vm0, %v2549_v47, 0.0  ;;  %v2899_v50 = vsel %vm2254_vm0, %v2550_v43, 0.0 }
 0x33d   :  { %v2858_v27 = vadd.f32 %v2857_v40, %v2856_v45  ;;  %v8174_v40 = vld [vmem:[#allocation190_spill] sm:$0xff]  ;;  %v2901_v59 = vsel %vm2254_vm0, %v2551_v39, 0.0 }
 0x33e   :  { %v2552_v45 = vperm.slane %v8174_v40, 0 }
 0x33f   :  { %v2860_v51 = vadd.f32 %v2859_v44, %v2858_v27  ;;  %v2553_v27 = vperm.slane %v8174_v40, 1 }
 0x340   :  { %v2903_v30 = vsel %vm2254_vm0, %v2552_v45, 0.0 }
 0x341   :  { %v2862_v17 = vadd.f32 %v2861_v49, %v2860_v51  ;;  %v2554_v51 = vperm.slane %v8174_v40, 2  ;;  %v2905_v32 = vsel %vm2254_vm0, %v2553_v27, 0.0 }
 0x343   :  { %v2864_v19 = vadd.f32 %v2863_v62, %v2862_v17  ;;  %v2555_v17 = vperm.slane %v8174_v40, 3  ;;  %v2907_v56 = vsel %vm2254_vm0, %v2554_v51, 0.0 }
 0x345   :  { %v2866_v34 = vadd.f32 %v2865_v57, %v2864_v19  ;;  %v2556_v19 = vperm.slane %v8174_v40, 4 }
 0x347   :  { %v2868_v8 = vadd.f32 %v2867_v21, %v2866_v34  ;;  %v2557_v21 = vperm.slane %v8174_v40, 5  ;;  %v2909_v34 = vsel %vm2254_vm0, %v2555_v17, 0.0 }
 0x349   :  { %v2870_v1 = vadd.f32 %v2869_v29, %v2868_v8  ;;  %v2558_v29 = vperm.slane %v8174_v40, 6  ;;  %v2911_v8 = vsel %vm2254_vm0, %v2556_v19, 0.0 }
 0x34b   :  { %v2872_v24 = vadd.f32 %v2871_v7, %v2870_v1  ;;  %v2559_v7 = vperm.slane %v8174_v40, 7  ;;  %v2913_v1 = vsel %vm2254_vm0, %v2557_v21, 0.0  ;;  %v2915_v33 = vsel %vm2254_vm0, %v2558_v29, 0.0 }
 0x34d   :  { %v2874_v35 = vadd.f32 %v2873_v11, %v2872_v24  ;;  %v8175_v11 = vld [vmem:[#allocation103_spill] sm:$0xff]  ;;  %v2917_v10 = vsel %vm2254_vm0, %v2559_v7, 0.0 }
 0x34e   :  { %v2560_v24 = vperm.slane %v8175_v11, 0 }
 0x34f   :  { %v2876_v61 = vadd.f32 %v2875_v36, %v2874_v35  ;;  %v2561_v35 = vperm.slane %v8175_v11, 1 }
 0x350   :  { %v2919_v52 = vsel %vm2254_vm0, %v2560_v24, 0.0 }
 0x351   :  { %v2878_v4 = vadd.f32 %v2877_v23, %v2876_v61  ;;  %v2562_v61 = vperm.slane %v8175_v11, 2  ;;  %v2921_v18 = vsel %vm2254_vm0, %v2561_v35, 0.0 }
 0x353   :  { %v2880_v20 = vadd.f32 %v2879_v26, %v2878_v4  ;;  %v2563_v4 = vperm.slane %v8175_v11, 3  ;;  %v2923_v28 = vsel %vm2254_vm0, %v2562_v61, 0.0 }
 0x355   :  { %v2882_v12 = vadd.f32 %v2881_v13, %v2880_v20  ;;  %v2564_v20 = vperm.slane %v8175_v11, 4 }
 0x357   :  { %v2884_v46 = vadd.f32 %v2883_v16, %v2882_v12  ;;  %v2565_v16 = vperm.slane %v8175_v11, 5  ;;  %v2925_v12 = vsel %vm2254_vm0, %v2563_v4, 0.0 }
 0x359   :  { %v2886_v15 = vadd.f32 %v2885_v55, %v2884_v46  ;;  %v2566_v55 = vperm.slane %v8175_v11, 6  ;;  %v2927_v46 = vsel %vm2254_vm0, %v2564_v20, 0.0 }
 0x35b   :  { %v2888_v53 = vadd.f32 %v2887_v6, %v2886_v15  ;;  %v2567_v6 = vperm.slane %v8175_v11, 7  ;;  %v2929_v15 = vsel %vm2254_vm0, %v2565_v16, 0.0  ;;  %v2931_v31 = vsel %vm2254_vm0, %v2566_v55, 0.0 }
 0x35d   :  { %v2890_v58 = vadd.f32 %v2889_v48, %v2888_v53  ;;  %v8176_v48 = vld [vmem:[#allocation191_spill] sm:$0xff]  ;;  %v2933_v47 = vsel %vm2254_vm0, %v2567_v6, 0.0 }
 0x35e   :  { %v2568_v53 = vperm.slane %v8176_v48, 0 }
 0x35f   :  { %v2892_v42 = vadd.f32 %v2891_v5, %v2890_v58  ;;  %v2569_v58 = vperm.slane %v8176_v48, 1 }
 0x360   :  { %v2935_v43 = vsel %vm2254_vm0, %v2568_v53, 0.0 }
 0x361   :  { %v2894_v63 = vadd.f32 %v2893_v38, %v2892_v42  ;;  %v2570_v42 = vperm.slane %v8176_v48, 2  ;;  %v2937_v39 = vsel %vm2254_vm0, %v2569_v58, 0.0 }
 0x363   :  { %v2896_v37 = vadd.f32 %v2895_v22, %v2894_v63  ;;  %v2571_v63 = vperm.slane %v8176_v48, 3  ;;  %v2939_v40 = vsel %vm2254_vm0, %v2570_v42, 0.0 }
 0x365   :  { %v2898_v44 = vadd.f32 %v2897_v14, %v2896_v37  ;;  %v2572_v37 = vperm.slane %v8176_v48, 4 }
 0x367   :  { %v2900_v49 = vadd.f32 %v2899_v50, %v2898_v44  ;;  %v2573_v50 = vperm.slane %v8176_v48, 5  ;;  %v2941_v44 = vsel %vm2254_vm0, %v2571_v63, 0.0 }
 0x369   :  { %v2902_v62 = vadd.f32 %v2901_v59, %v2900_v49  ;;  %v2574_v59 = vperm.slane %v8176_v48, 6  ;;  %v2943_v49 = vsel %vm2254_vm0, %v2572_v37, 0.0 }
 0x36b   :  { %v2904_v57 = vadd.f32 %v2903_v30, %v2902_v62  ;;  %v2575_v30 = vperm.slane %v8176_v48, 7  ;;  %v2945_v62 = vsel %vm2254_vm0, %v2573_v50, 0.0  ;;  %v2947_v19 = vsel %vm2254_vm0, %v2574_v59, 0.0 }
 0x36d   :  { %v2906_v25 = vadd.f32 %v2905_v32, %v2904_v57  ;;  %v8177_v32 = vld [vmem:[#allocation104_spill] sm:$0xff]  ;;  %v2949_v21 = vsel %vm2254_vm0, %v2575_v30, 0.0 }
 0x36e   :  { %v2576_v57 = vperm.slane %v8177_v32, 0 }
 0x36f   :  { %v2908_v9 = vadd.f32 %v2907_v56, %v2906_v25  ;;  %v2577_v25 = vperm.slane %v8177_v32, 1 }
 0x370   :  { %v2951_v29 = vsel %vm2254_vm0, %v2576_v57, 0.0 }
 0x371   :  { %v2910_v41 = vadd.f32 %v2909_v34, %v2908_v9  ;;  %v2578_v9 = vperm.slane %v8177_v32, 2  ;;  %v2953_v7 = vsel %vm2254_vm0, %v2577_v25, 0.0 }
 0x373   :  { %v2912_v60 = vadd.f32 %v2911_v8, %v2910_v41  ;;  %v2579_v41 = vperm.slane %v8177_v32, 3  ;;  %v2955_v11 = vsel %vm2254_vm0, %v2578_v9, 0.0 }
 0x375   :  { %v2914_v36 = vadd.f32 %v2913_v1, %v2912_v60  ;;  %v2580_v60 = vperm.slane %v8177_v32, 4 }
 0x377   :  { %v2916_v23 = vadd.f32 %v2915_v33, %v2914_v36  ;;  %v2581_v33 = vperm.slane %v8177_v32, 5  ;;  %v2957_v36 = vsel %vm2254_vm0, %v2579_v41, 0.0 }
 0x379   :  { %v2918_v26 = vadd.f32 %v2917_v10, %v2916_v23  ;;  %v2582_v10 = vperm.slane %v8177_v32, 6  ;;  %v2959_v23 = vsel %vm2254_vm0, %v2580_v60, 0.0 }
 0x37b   :  { %v2920_v13 = vadd.f32 %v2919_v52, %v2918_v26  ;;  %v2583_v52 = vperm.slane %v8177_v32, 7  ;;  %v2961_v26 = vsel %vm2254_vm0, %v2581_v33, 0.0 }
 0x37d   :  { %v2922_v2 = vadd.f32 %v2921_v18, %v2920_v13  ;;  %v2963_v18 = vsel %vm2254_vm0, %v2582_v10, 0.0  ;;  %v2965_v20 = vsel %vm2254_vm0, %v2583_v52, 0.0 }
 0x37f   :  { %v2924_v54 = vadd.f32 %v2923_v28, %v2922_v2 }
 0x381   :  { %v2926_v3 = vadd.f32 %v2925_v12, %v2924_v54 }
 0x383   :  { %v2928_v0 = vadd.f32 %v2927_v46, %v2926_v3 }
 0x385   :  { %v2930_v5 = vadd.f32 %v2929_v15, %v2928_v0 }
 0x387   :  { %v2932_v38 = vadd.f32 %v2931_v31, %v2930_v5 }
 0x389   :  { %v2934_v22 = vadd.f32 %v2933_v47, %v2932_v38 }
 0x38b   :  { %v2936_v14 = vadd.f32 %v2935_v43, %v2934_v22 }
 0x38d   :  { %v2938_v45 = vadd.f32 %v2937_v39, %v2936_v14 }
 0x38f   :  { %v2940_v27 = vadd.f32 %v2939_v40, %v2938_v45 }
 0x391   :  { %v2942_v51 = vadd.f32 %v2941_v44, %v2940_v27 }
 0x393   :  { %v2944_v17 = vadd.f32 %v2943_v49, %v2942_v51 }
 0x395   :  { %v2946_v56 = vadd.f32 %v2945_v62, %v2944_v17 }
 0x397   :  { %v2948_v34 = vadd.f32 %v2947_v19, %v2946_v56 }
 0x399   :  { %v2950_v8 = vadd.f32 %v2949_v21, %v2948_v34 }
 0x39b   :  { %v2952_v1 = vadd.f32 %v2951_v29, %v2950_v8 }
 0x39d   :  { %v2954_v24 = vadd.f32 %v2953_v7, %v2952_v1 }
 0x39f   :  { %v2956_v35 = vadd.f32 %v2955_v11, %v2954_v24 }
 0x3a1   :  { %v2958_v61 = vadd.f32 %v2957_v36, %v2956_v35 }
 0x3a3   :  { %v2960_v4 = vadd.f32 %v2959_v23, %v2958_v61 }
 0x3a5   :  { %v2962_v13 = vadd.f32 %v2961_v26, %v2960_v4 }
 0x3a7   :  { %v2964_v28 = vadd.f32 %v2963_v18, %v2962_v13 }
 0x3a9   :  { %v2966_v2 = vadd.f32 %v2965_v20, %v2964_v28 }
 0x3ab   :  { %2967 = vadd.xlane.f32.xlu0 %v2966_v2 }
 0x41e   :  { %v2968_v16 = vpop.xlane.xlu0 %2967 }
 0x41f   :  { %v2969_v12 = vrot.slane %v2968_v16, 4 }
 0x421   :  { %v2970_v54 = vadd.f32 %v2969_v12, %v2968_v16 }
 0x423   :  { %v2971_v55 = vrot.slane %v2970_v54, 2 }
 0x425   :  { %v2972_v46 = vadd.f32 %v2971_v55, %v2970_v54 }
 0x427   :  { %v2973_v3 = vrot.slane %v2972_v46, 1 }
 0x429   :  { %v2974_v6 = vadd.f32 %v2973_v3, %v2972_v46 }
 0x42b   :  { %2997 = vpush %v2974_v6 }
 0x45c   :  { %s2998_s24 = spop %2997 }
 0x45d   :  { %s2976_s25 = smul.f32 7.6293945e-06, %s2998_s24 }
 0x45f   :  { %v2977_v15 = vstv %s2976_s25 }
 0x460   :  { %2978 = vst [vmem:[#allocation8] sm:$0xff] %v2977_v15 }
 0x461   :  { %2989 = dma.vmem_to_hbm [thread:$0]  %s2985_s1, 128, %s2987_s23, [#allocation5]  }
 0x462   :  { %3080 = dma.done.wait [#allocation5], 128  }
 0x463   :  { %3081 = vsyncadd [#allocation5], 4294967168 }
 0x464   :  { %2994 = vsyncpa [#allocation4], 1 }
 0x465   :  { %2995 = vsyncpa [#allocation7], 1 }
 0x466   :  { %2996 = vsyncpa [#allocation5], 1 }

</bundles_post_ra>
